<compile_context>
chip_gen: v7x
topology: tpu7x:2x2x1
jax: 0.10.0
libtpu: 0.0.40
codegen_flags: <defaults>
</compile_context>

<pallas_src>
import functools

import jax
import jax.numpy as jnp
import numpy as np
from jax.experimental import pallas as pl
from jax.experimental.pallas import tpu as pltpu

# ---- module hyperparameters (from the PyTorch module) ----
KERNEL_SIZE = 3
STRIDE = 2
PADDING = 1
OUTPUT_PADDING = 1


# ----------------------------- Pallas kernel -------------------------------
def _fused_kernel(a_ref, b_ref, bias_ref, add_ref, o_ref):
    # a_ref:   (tm, 8*Cin)     bf16  stacked shifted-input tile
    # b_ref:   (8*Cin, 8*Cout) bf16  phase-packed conv-transpose weights
    # bias_ref:(1, 8*Cout)     f32
    # add_ref: (tm, 8*Cout)    bf16  residual add (phase layout)
    # o_ref:   (tm, 8*Cout)    bf16
    acc = jnp.dot(a_ref[...], b_ref[...], preferred_element_type=jnp.float32)
    t = acc + bias_ref[...] + add_ref[...].astype(jnp.float32)
    hs = t * (jnp.clip(t + 3.0, 0.0, 6.0) * (1.0 / 6.0))   # hardswish(t)
    o_ref[...] = (t * hs).astype(o_ref.dtype)


def _pick_tile(M):
    """Largest tile; prefer an even number of grid steps (2 TCs on v7x)."""
    cands = (1024, 512, 256, 128, 64, 32, 16, 8)
    for c in cands:                      # big tile, even grid (>=2 steps)
        if M % c == 0 and (M // c) >= 2 and (M // c) % 2 == 0:
            return c, M
    for c in cands:                      # otherwise biggest exact divisor
        if M % c == 0:
            return c, M
    tm = 512                             # rare fallback: pad M
    return tm, pl.cdiv(M, tm) * tm


def _fused_matmul(a, b, bias2d, add2d):
    M, K = a.shape
    C = b.shape[1]
    tm, M_pad = _pick_tile(M)
    if M_pad != M:                       # demo shapes divide evenly
        a = jnp.pad(a, ((0, M_pad - M), (0, 0)))
        add2d = jnp.pad(add2d, ((0, M_pad - M), (0, 0)))

    out = pl.pallas_call(
        _fused_kernel,
        out_shape=jax.ShapeDtypeStruct((M_pad, C), jnp.bfloat16),
        grid_spec=pltpu.PrefetchScalarGridSpec(
            num_scalar_prefetch=0,
            grid=(M_pad // tm,),
            in_specs=[
                pl.BlockSpec((tm, K), lambda i: (i, 0)),
                pl.BlockSpec((K, C), lambda i: (0, 0)),    # constant: not re-DMA'd
                pl.BlockSpec((1, C), lambda i: (0, 0)),    # constant: not re-DMA'd
                pl.BlockSpec((tm, C), lambda i: (i, 0)),
            ],
            out_specs=pl.BlockSpec((tm, C), lambda i: (i, 0)),
        ),
        compiler_params=pltpu.CompilerParams(
            dimension_semantics=("parallel",)),
    )(a, b, bias2d, add2d)
    if M_pad != M:
        out = out[:M]
    return out


# ------------------- one-time parameter packing (host side) -----------------
def pack_conv_transpose_params(weight, bias, *, stride=STRIDE, padding=PADDING,
                               kernel_size=KERNEL_SIZE):
    """Phase-packed weight (8*Cin, 8*Cout) bf16 + tiled bias (1, 8*Cout) f32.

    Pure numpy; call ONCE when weights are loaded (weights are static), so no
    per-forward tracing / dynamic-update-slice ops.
    """
    w = np.asarray(weight, dtype=np.float32)          # (Cin, Cout, k, k, k)
    b = np.asarray(bias, dtype=np.float32)            # (Cout,)
    Cin, Cout, k = w.shape[0], w.shape[1], w.shape[2]
    assert k == kernel_size
    S = stride ** 3
    wb = np.zeros((S, Cin, S, Cout), np.float32)
    # output od = stride*d + pd gets tap kd = pd + padding - stride*sd from input d+sd
    for sd in range(stride):
        for sh in range(stride):
            for sw in range(stride):
                for pd in range(stride):
                    for ph in range(stride):
                        for pw in range(stride):
                            kd = pd + padding - stride * sd
                            kh = ph + padding - stride * sh
                            kw = pw + padding - stride * sw
                            if 0 <= kd < k and 0 <= kh < k and 0 <= kw < k:
                                s_idx = (sd * stride + sh) * stride + sw
                                p_idx = (pd * stride + ph) * stride + pw
                                wb[s_idx, :, p_idx, :] = w[:, :, kd, kh, kw]
    B = jnp.asarray(wb.reshape(S * Cin, S * Cout), dtype=jnp.bfloat16)
    bias2d = jnp.asarray(np.tile(b, S).reshape(1, S * Cout), dtype=jnp.float32)
    return B, bias2d


# ----------------------------- wrapper (glue) -------------------------------
@functools.partial(jax.jit, static_argnames=("stride", "padding", "output_padding"))
def model_forward(x, add_input, B, bias2d, *, stride, padding, output_padding):
    """x: (N,Cin,D,H,W); add_input: (N,Cout,2D,2H,2W); B/bias2d from pack_*."""
    N, Cin, D, H, W = x.shape
    # Phase decomposition below is specialized to the module's hyperparameters.
    assert (stride, padding, output_padding) == (2, 1, 1)
    S = stride ** 3                                   # 8 shifts / 8 output phases
    Cout = B.shape[1] // S
    Do, Ho, Wo = 2 * D, 2 * H, 2 * W
    M = N * D * H * W

    # ---- stacked shifted input (channels-last, bf16): (M, 8*Cin) ----
    xl = jnp.transpose(x, (0, 2, 3, 4, 1)).astype(jnp.bfloat16)     # (N,D,H,W,Cin)
    xp = jnp.pad(xl, ((0, 0), (0, 1), (0, 1), (0, 1), (0, 0)))
    parts = []
    for sd in range(2):
        for sh in range(2):
            for sw in range(2):
                parts.append(xp[:, sd:sd + D, sh:sh + H, sw:sw + W, :])
    A = jnp.concatenate(parts, axis=-1).reshape(M, S * Cin)

    # ---- residual rearranged into the phase layout, kept bf16: (M, 8*Cout) ----
    add_ph = add_input.astype(jnp.bfloat16)
    add_ph = add_ph.reshape(N, Cout, D, 2, H, 2, W, 2)
    add_ph = jnp.transpose(add_ph, (0, 2, 4, 6, 3, 5, 7, 1))
    add_ph = add_ph.reshape(M, S * Cout)

    out = _fused_matmul(A, B, bias2d, add_ph)                      # (M, 8*Cout) bf16

    # ---- phase layout -> NCDHW (final result in f32) ----
    out = out.reshape(N, D, H, W, 2, 2, 2, Cout)
    out = jnp.transpose(out, (0, 7, 1, 4, 2, 5, 3, 6))             # (N,Co,D,pd,H,ph,W,pw)
    return out.reshape(N, Cout, Do, Ho, Wo).astype(jnp.float32)


# ----------------------------- pure-JAX reference ---------------------------
def _reference(x, add_input, weight, bias, *, stride, padding, output_padding):
    k = weight.shape[2]
    wf = weight[:, :, ::-1, ::-1, ::-1]
    rhs = jnp.transpose(wf, (2, 3, 4, 0, 1)).astype(jnp.bfloat16)  # (k,k,k,Cin,Cout)
    lhs = jnp.transpose(x, (0, 2, 3, 4, 1)).astype(jnp.bfloat16)   # NDHWC
    pad = [(k - 1 - padding, k - 1 - padding + output_padding)] * 3
    y = jax.lax.conv_general_dilated(
        lhs, rhs, window_strides=(1, 1, 1), padding=pad,
        lhs_dilation=(stride,) * 3,
        dimension_numbers=("NDHWC", "DHWIO", "NDHWC"),
        preferred_element_type=jnp.float32)
    y = y + bias
    y = jnp.transpose(y, (0, 4, 1, 2, 3))
    t = y + add_input
    return t * (t * jnp.clip(t + 3.0, 0.0, 6.0) / 6.0)


# --------------------------------- main -------------------------------------
if __name__ == "__main__":
    # small shapes consistent with the module (channels kept, spatial reduced)
    N, Cin, Cout = 2, 32, 64
    D = H = W = 8
    k, s, p, op = KERNEL_SIZE, STRIDE, PADDING, OUTPUT_PADDING
    Do = (D - 1) * s - 2 * p + k + op

    key = jax.random.PRNGKey(0)
    kx, ka, kw, kb = jax.random.split(key, 4)
    x = jax.random.normal(kx, (N, Cin, D, H, W), jnp.float32)
    add_input = jax.random.normal(ka, (N, Cout, Do, Do, Do), jnp.float32)
    fan = Cin * k * k * k
    bound = 1.0 / np.sqrt(fan)
    weight = jax.random.uniform(kw, (Cin, Cout, k, k, k), jnp.float32, -bound, bound)
    bias = jax.random.uniform(kb, (Cout,), jnp.float32, -bound, bound) + 0.02

    # one-time (weights are static): phase-packed weight + tiled bias
    B, bias2d = pack_conv_transpose_params(weight, bias, stride=s, padding=p,
                                           kernel_size=k)

    out = model_forward(x, add_input, B, bias2d,
                        stride=s, padding=p, output_padding=op)
    out = jax.block_until_ready(out)

    ref = _reference(x, add_input, weight, bias,
                     stride=s, padding=p, output_padding=op)
    # kernel uses bf16 MXU inputs, bf16 residual read and bf16 phase-layout
    # writeback (f32 accumulation / epilogue); t*hardswish(t) amplifies the
    # bf16 rounding, hence the looser tolerance vs the f32 reference epilogue.
    np.testing.assert_allclose(np.asarray(out), np.asarray(ref),
                               rtol=2e-2, atol=2e-2)
    print("KERNEL_OK")
</pallas_src>

<mosaic_0001>
module attributes {stable_mosaic.version = 11 : i64} {
  func.func @_fused_kernel(%arg0: i32, %arg1: memref<512x256xbf16, #tpu.memory_space<vmem>>, %arg2: memref<256x512xbf16, #tpu.memory_space<vmem>>, %arg3: memref<1x512xf32, #tpu.memory_space<vmem>>, %arg4: memref<512x512xbf16, #tpu.memory_space<vmem>>, %arg5: memref<512x512xbf16, #tpu.memory_space<vmem>>) attributes {dimension_semantics = [#tpu.dimension_semantics<parallel>], iteration_bounds = array<i64: 2>, scalar_prefetch = 0 : i64, scratch_operands = 0 : i64, tpu.core_type = #tpu.core_type<tc>, window_params = [{transform_indices = @transform_0, window_bounds = array<i64: 512, 256>}, {pipeline_mode = #tpu.pipeline_mode<synchronous>, transform_indices = @transform_1, window_bounds = array<i64: 256, 512>}, {pipeline_mode = #tpu.pipeline_mode<synchronous>, transform_indices = @transform_2, window_bounds = array<i64: 1, 512>}, {transform_indices = @transform_3, window_bounds = array<i64: 512, 512>}, {transform_indices = @transform_4, window_bounds = array<i64: 512, 512>}]} {
    %c0 = arith.constant 0 : index
    %c0_0 = arith.constant 0 : index
    %0 = vector.load %arg1[%c0, %c0_0] : memref<512x256xbf16, #tpu.memory_space<vmem>>, vector<512x256xbf16>
    %c0_1 = arith.constant 0 : index
    %c0_2 = arith.constant 0 : index
    %1 = vector.load %arg2[%c0_1, %c0_2] : memref<256x512xbf16, #tpu.memory_space<vmem>>, vector<256x512xbf16>
    %cst = arith.constant dense<0.000000e+00> : vector<512x512xf32>
    %2 = tpu.matmul %0, %1, %cst {dimension_numbers = #tpu.dot_dimension_numbers<[1], [0], [0], [1], [0, 0, 1, 1], [], []>} : vector<512x256xbf16>, vector<256x512xbf16>, vector<512x512xf32> -> vector<512x512xf32>
    %c0_3 = arith.constant 0 : index
    %c0_4 = arith.constant 0 : index
    %3 = vector.load %arg3[%c0_3, %c0_4] : memref<1x512xf32, #tpu.memory_space<vmem>>, vector<1x512xf32>
    %4 = vector.broadcast %3 : vector<1x512xf32> to vector<512x512xf32>
    %5 = arith.addf %2, %4 : vector<512x512xf32>
    %c0_5 = arith.constant 0 : index
    %c0_6 = arith.constant 0 : index
    %6 = vector.load %arg4[%c0_5, %c0_6] : memref<512x512xbf16, #tpu.memory_space<vmem>>, vector<512x512xbf16>
    %7 = arith.extf %6 : vector<512x512xbf16> to vector<512x512xf32>
    %8 = arith.addf %5, %7 : vector<512x512xf32>
    %cst_7 = arith.constant 3.000000e+00 : f32
    %9 = vector.broadcast %cst_7 : f32 to vector<512x512xf32>
    %10 = arith.addf %8, %9 : vector<512x512xf32>
    %cst_8 = arith.constant 0.000000e+00 : f32
    %cst_9 = arith.constant 6.000000e+00 : f32
    %11 = vector.broadcast %cst_8 : f32 to vector<512x512xf32>
    %12 = arith.maximumf %11, %10 : vector<512x512xf32>
    %13 = vector.broadcast %cst_9 : f32 to vector<512x512xf32>
    %14 = arith.minimumf %13, %12 : vector<512x512xf32>
    %cst_10 = arith.constant 0.166666672 : f32
    %15 = vector.broadcast %cst_10 : f32 to vector<512x512xf32>
    %16 = arith.mulf %14, %15 : vector<512x512xf32>
    %17 = arith.mulf %8, %16 : vector<512x512xf32>
    %18 = arith.mulf %8, %17 : vector<512x512xf32>
    %19 = arith.truncf %18 : vector<512x512xf32> to vector<512x512xbf16>
    %c0_11 = arith.constant 0 : index
    %c0_12 = arith.constant 0 : index
    %20 = vector.load %arg5[%c0_11, %c0_12] : memref<512x512xbf16, #tpu.memory_space<vmem>>, vector<512x512xbf16>
    tpu.vector_store %arg5[%c0_11, %c0_12], %19 {strides = array<i32>} : memref<512x512xbf16, #tpu.memory_space<vmem>>, vector<512x512xbf16>,
    return
  }
  func.func @transform_0(%arg0: i32) -> (i32, i32) {
    %c0_i32 = arith.constant 0 : i32
    %c0_i32_0 = arith.constant 0 : i32
    return %arg0, %c0_i32 : i32, i32
  }
  func.func @transform_1(%arg0: i32) -> (i32, i32) {
    %c0_i32 = arith.constant 0 : i32
    %c0_i32_0 = arith.constant 0 : i32
    %c0_i32_1 = arith.constant 0 : i32
    return %c0_i32, %c0_i32_0 : i32, i32
  }
  func.func @transform_2(%arg0: i32) -> (i32, i32) {
    %c0_i32 = arith.constant 0 : i32
    %c0_i32_0 = arith.constant 0 : i32
    %c0_i32_1 = arith.constant 0 : i32
    return %c0_i32, %c0_i32_0 : i32, i32
  }
  func.func @transform_3(%arg0: i32) -> (i32, i32) {
    %c0_i32 = arith.constant 0 : i32
    %c0_i32_0 = arith.constant 0 : i32
    return %arg0, %c0_i32 : i32, i32
  }
  func.func @transform_4(%arg0: i32) -> (i32, i32) {
    %c0_i32 = arith.constant 0 : i32
    %c0_i32_0 = arith.constant 0 : i32
    return %arg0, %c0_i32 : i32, i32
  }
}

</mosaic_0001>

<bundles_post_ra>
// kernel: model_forward.1
= control target key start
LH: loop header
LB: loop body
LE: loop exit
PB: predicated region body
PF: predicated region fallthrough
CT: control target
= control target key end

     0   :  { %s5505_s15 = smov 0   ;;  %s7385_s0 = inlined_call_operand.vmem [shape: bf16[1024,256], index: 0, kind: input, shape index: {}]   ;;  %s7386_s1 = inlined_call_operand.vmem [shape: bf16[256,512], index: 1, kind: input, shape index: {}]   ;;  %s7387_s2 = inlined_call_operand.vmem [shape: f32[1,512], index: 2, kind: input, shape index: {}]   ;;  %s7388_s3 = inlined_call_operand.vmem [shape: bf16[1024,512], index: 3, kind: input, shape index: {}]   ;;  %s7389_s4 = inlined_call_operand.vmem [shape: bf16[1024,512], index: 4, kind: output, shape index: {}]  }
   0x1 LB: > { %s4869_s16 = sadd.s32 4294967295, %s5478_s15   ;;  %p4873_p0 = scmp.ge.s32.totalorder %s5478_s15, 1  ;;  %s5478_s15 = sphi %s5505_s15, %s14_s15  }
   0x2   : > { %p176_p1 = scmp.lt.s32.totalorder %s5478_s15, 3 }
   0x4   : > { %p177_p2 = pnand %p4873_p0, %p176_p1 }
   0x6   : > { %180 = sbr.rel (%p177_p2) target bundleno = 907 (0x38b), region = 36 }
   0xd   : > { %v5280_v0 = vld [vmem:[%s7386_s1 + $0x4] ss:$16 sps:$4 sm:$0xff]   ;;  %v5282_v1 = vld [vmem:[%s7386_s1 + $0xc] ss:$16 sps:$4 sm:$0xff]   ;;  %v5284_v2 = vld [vmem:[%s7386_s1] ss:$16 sps:$4 sm:$0xff]  }
   0xe   : > { %1021 = vmatprep.subr.bf16.mxu0 %v5280_v0  ;;  %v5285_v3 = vld [vmem:[%s7386_s1 + $0x8] ss:$16 sps:$4 sm:$0xff]   ;;  %1374 = vmatprep.subr.bf16.mxu1 %v5282_v1  ;;  %v5286_v4 = vld [vmem:[%s7386_s1 + $0x24] ss:$16 sps:$4 sm:$0xff]   ;;  %v5288_v5 = vld [vmem:[%s7386_s1 + $0x2c] ss:$16 sps:$4 sm:$0xff]  }
   0xf   : > { %1022 = vmatpush1.bf16.msra.mxu0 %v5284_v2  ;;  %1375 = vmatpush1.bf16.msra.mxu1 %v5285_v3  ;;  %v5290_v6 = vld [vmem:[%s7386_s1 + $0x20] ss:$16 sps:$4 sm:$0xff]   ;;  %v5291_v7 = vld [vmem:[%s7386_s1 + $0x28] ss:$16 sps:$4 sm:$0xff]   ;;  %v5292_v8 = vld [vmem:[%s7386_s1 + $0x44] ss:$16 sps:$4 sm:$0xff]  }
  0x10   : > { %1023 = vmatprep.subr.bf16.mxu0 %v5286_v4  ;;  %1376 = vmatprep.subr.bf16.mxu1 %v5288_v5  ;;  %v5294_v9 = vld [vmem:[%s7386_s1 + $0x4c] ss:$16 sps:$4 sm:$0xff]   ;;  %v5296_v10 = vld [vmem:[%s7386_s1 + $0x40] ss:$16 sps:$4 sm:$0xff]   ;;  %v5297_v11 = vld [vmem:[%s7386_s1 + $0x48] ss:$16 sps:$4 sm:$0xff]  }
  0x11   : > { %v5298_v12 = vld [vmem:[%s7386_s1 + $0x64] ss:$16 sps:$4 sm:$0xff]   ;;  %v5300_v13 = vld [vmem:[%s7386_s1 + $0x6c] ss:$16 sps:$4 sm:$0xff]   ;;  %v5302_v14 = vld [vmem:[%s7386_s1 + $0x60] ss:$16 sps:$4 sm:$0xff]  }
  0x12   : > { %v5303_v15 = vld [vmem:[%s7386_s1 + $0x68] ss:$16 sps:$4 sm:$0xff]   ;;  %v5304_v16 = vld [vmem:[%s7386_s1 + $0x84] ss:$16 sps:$4 sm:$0xff]   ;;  %v5306_v17 = vld [vmem:[%s7386_s1 + $0x8c] ss:$16 sps:$4 sm:$0xff]  }
  0x13   : > { %1024 = vmatpush1.bf16.msra.mxu0 %v5290_v6  ;;  %1377 = vmatpush1.bf16.msra.mxu1 %v5291_v7  ;;  %v5308_v18 = vld [vmem:[%s7386_s1 + $0x80] ss:$16 sps:$4 sm:$0xff]   ;;  %v5309_v19 = vld [vmem:[%s7386_s1 + $0x88] ss:$16 sps:$4 sm:$0xff]   ;;  %v5310_v20 = vld [vmem:[%s7386_s1 + $0xa4] ss:$16 sps:$4 sm:$0xff]  }
  0x14   : > { %1025 = vmatprep.subr.bf16.mxu0 %v5292_v8  ;;  %1378 = vmatprep.subr.bf16.mxu1 %v5294_v9  ;;  %v5312_v21 = vld [vmem:[%s7386_s1 + $0xac] ss:$16 sps:$4 sm:$0xff]   ;;  %v5314_v22 = vld [vmem:[%s7386_s1 + $0xa0] ss:$16 sps:$4 sm:$0xff]   ;;  %v5315_v23 = vld [vmem:[%s7386_s1 + $0xa8] ss:$16 sps:$4 sm:$0xff]  }
  0x15   : > { %v5316_v24 = vld [vmem:[%s7386_s1 + $0xc4] ss:$16 sps:$4 sm:$0xff]   ;;  %v5318_v25 = vld [vmem:[%s7386_s1 + $0xcc] ss:$16 sps:$4 sm:$0xff]   ;;  %v5320_v26 = vld [vmem:[%s7386_s1 + $0xc0] ss:$16 sps:$4 sm:$0xff]  }
  0x16   : > { %v5321_v27 = vld [vmem:[%s7386_s1 + $0xc8] ss:$16 sps:$4 sm:$0xff]   ;;  %v5322_v28 = vld [vmem:[%s7386_s1 + $0xe4] ss:$16 sps:$4 sm:$0xff]   ;;  %v5324_v29 = vld [vmem:[%s7386_s1 + $0xec] ss:$16 sps:$4 sm:$0xff]  }
  0x17   : > { %1026 = vmatpush1.bf16.msra.mxu0 %v5296_v10  ;;  %1379 = vmatpush1.bf16.msra.mxu1 %v5297_v11  ;;  %s4874_s29 = sshll.u32 %s4869_s16, 6  ;;  %v5326_v30 = vld [vmem:[%s7386_s1 + $0xe0] ss:$16 sps:$4 sm:$0xff]   ;;  %v5327_v31 = vld [vmem:[%s7386_s1 + $0xe8] ss:$16 sps:$4 sm:$0xff]  }
  0x18   : > { %1027 = vmatprep.subr.bf16.mxu0 %v5298_v12  ;;  %1380 = vmatprep.subr.bf16.mxu1 %v5300_v13  ;;  %v5328_v32 = vld [vmem:[%s7386_s1 + $0x104] ss:$16 sps:$4 sm:$0xff]   ;;  %v5330_v33 = vld [vmem:[%s7386_s1 + $0x10c] ss:$16 sps:$4 sm:$0xff]   ;;  %p211_p3 = scmp.lt.s32.totalorder %s4874_s29, 127 }
  0x19   : > { %v5332_v34 = vld [vmem:[%s7386_s1 + $0x100] ss:$16 sps:$4 sm:$0xff]   ;;  %v5333_v35 = vld [vmem:[%s7386_s1 + $0x108] ss:$16 sps:$4 sm:$0xff]   ;;  %v5334_v36 = vld [vmem:[%s7386_s1 + $0x124] ss:$16 sps:$4 sm:$0xff]  }
  0x1a   : > { %v5336_v37 = vld [vmem:[%s7386_s1 + $0x12c] ss:$16 sps:$4 sm:$0xff]   ;;  %s7713_s29 = smov (!%p211_p3, %s4874_s29), 127  ;;  %v5338_v38 = vld [vmem:[%s7386_s1 + $0x120] ss:$16 sps:$4 sm:$0xff]  }
  0x1b   : > { %1028 = vmatpush1.bf16.msra.mxu0 %v5302_v14  ;;  %1381 = vmatpush1.bf16.msra.mxu1 %v5303_v15  ;;  %v5339_v39 = vld [vmem:[%s7386_s1 + $0x128] ss:$16 sps:$4 sm:$0xff]   ;;  %v5340_v40 = vld [vmem:[%s7386_s1 + $0x144] ss:$16 sps:$4 sm:$0xff]   ;;  %v5342_v41 = vld [vmem:[%s7386_s1 + $0x14c] ss:$16 sps:$4 sm:$0xff]  }
  0x1c   : > { %1029 = vmatprep.subr.bf16.mxu0 %v5304_v16  ;;  %1382 = vmatprep.subr.bf16.mxu1 %v5306_v17  ;;  %s5141_s30 = sshll.u32 %s7713_s29, 3  ;;  %v5344_v42 = vld [vmem:[%s7386_s1 + $0x140] ss:$16 sps:$4 sm:$0xff]   ;;  %v5345_v43 = vld [vmem:[%s7386_s1 + $0x148] ss:$16 sps:$4 sm:$0xff]   ;;  %s5142_s5 = sshll.u32 %s7713_s29, 4 }
  0x1d   : > { %v5346_v44 = vld [vmem:[%s7386_s1 + $0x164] ss:$16 sps:$4 sm:$0xff]   ;;  %s5656_s12 = scalar_lea.vmem %s7385_s0, %s5141_s30  ;;  %v5348_v45 = vld [vmem:[%s7386_s1 + $0x16c] ss:$16 sps:$4 sm:$0xff]   ;;  %v5350_v46 = vld [vmem:[%s7386_s1 + $0x160] ss:$16 sps:$4 sm:$0xff]   ;;  %s5772_s8 = scalar_lea.vmem %s7388_s3, %s5142_s5 }
  0x1e   : > { %v5351_v47 = vld [vmem:[%s7386_s1 + $0x168] ss:$16 sps:$4 sm:$0xff]   ;;  %v5378_v48 = vld [vmem:[%s5656_s12 + $0x4] ss:$8 sps:$4 sm:$0xff]   ;;  %v5356_v51 = vld [vmem:[%s7386_s1 + $0x180] ss:$16 sps:$4 sm:$0xff]   ;;  %s6022_s13 = scalar_lea.vmem %s7389_s4, %s5142_s5 }
  0x1f   : > { %1030 = vmatpush1.bf16.msra.mxu0 %v5308_v18  ;;  %1383 = vmatpush1.bf16.msra.mxu1 %v5309_v19  ;;  %v5352_v49 = vld [vmem:[%s7386_s1 + $0x184] ss:$16 sps:$4 sm:$0xff]   ;;  %v5354_v50 = vld [vmem:[%s7386_s1 + $0x18c] ss:$16 sps:$4 sm:$0xff]   ;;  %v5357_v52 = vld [vmem:[%s7386_s1 + $0x188] ss:$16 sps:$4 sm:$0xff]  }
  0x20   : > { %1031 = vmatprep.subr.bf16.mxu0 %v5310_v20  ;;  %1384 = vmatprep.subr.bf16.mxu1 %v5312_v21  ;;  %v5358_v53 = vld [vmem:[%s7386_s1 + $0x1a4] ss:$16 sps:$4 sm:$0xff]   ;;  %v5360_v54 = vld [vmem:[%s7386_s1 + $0x1ac] ss:$16 sps:$4 sm:$0xff]   ;;  %v5362_v55 = vld [vmem:[%s7386_s1 + $0x1a0] ss:$16 sps:$4 sm:$0xff]  }
  0x21   : > { %1053 = vmatprep.mubr.bf16.mxu0 %v5378_v48  ;;  %1406 = vmatprep.mubr.bf16.mxu1 %v5378_v48  ;;  %v5363_v56 = vld [vmem:[%s7386_s1 + $0x1a8] ss:$16 sps:$4 sm:$0xff]   ;;  %v5364_v57 = vld [vmem:[%s7386_s1 + $0x1c4] ss:$16 sps:$4 sm:$0xff]   ;;  %v5366_v58 = vld [vmem:[%s7386_s1 + $0x1cc] ss:$16 sps:$4 sm:$0xff]  }
  0x22   : > { %v5368_v59 = vld [vmem:[%s7386_s1 + $0x1c0] ss:$16 sps:$4 sm:$0xff]   ;;  %v5369_v60 = vld [vmem:[%s7386_s1 + $0x1c8] ss:$16 sps:$4 sm:$0xff]   ;;  %v5370_v61 = vld [vmem:[%s7386_s1 + $0x1e4] ss:$16 sps:$4 sm:$0xff]  }
  0x23   : > { %1032 = vmatpush1.bf16.msra.mxu0 %v5314_v22  ;;  %1385 = vmatpush1.bf16.msra.mxu1 %v5315_v23  ;;  %v5372_v62 = vld [vmem:[%s7386_s1 + $0x1ec] ss:$16 sps:$4 sm:$0xff]   ;;  %v5374_v63 = vld [vmem:[%s7386_s1 + $0x1e0] ss:$16 sps:$4 sm:$0xff]   ;;  %v5375_v0 = vld [vmem:[%s7386_s1 + $0x1e8] ss:$16 sps:$4 sm:$0xff]  }
  0x24   : > { %1033 = vmatprep.subr.bf16.mxu0 %v5316_v24  ;;  %1386 = vmatprep.subr.bf16.mxu1 %v5318_v25  ;;  %v5376_v1 = vld [vmem:[%s5656_s12] ss:$8 sps:$4 sm:$0xff]   ;;  %v5379_v2 = vld [vmem:[%s5656_s12 + $0x14] ss:$8 sps:$4 sm:$0xff]   ;;  %v5381_v3 = vld [vmem:[%s5656_s12 + $0x10] ss:$8 sps:$4 sm:$0xff]  }
  0x25   : > { %v5382_v4 = vld [vmem:[%s5656_s12 + $0x24] ss:$8 sps:$4 sm:$0xff]   ;;  %v5384_v5 = vld [vmem:[%s5656_s12 + $0x20] ss:$8 sps:$4 sm:$0xff]   ;;  %v5385_v6 = vld [vmem:[%s5656_s12 + $0x34] ss:$8 sps:$4 sm:$0xff]  }
  0x26   : > { %v5387_v7 = vld [vmem:[%s5656_s12 + $0x30] ss:$8 sps:$4 sm:$0xff]   ;;  %v5388_v8 = vld [vmem:[%s5656_s12 + $0x44] ss:$8 sps:$4 sm:$0xff]   ;;  %v5390_v9 = vld [vmem:[%s5656_s12 + $0x40] ss:$8 sps:$4 sm:$0xff]  }
  0x27   : > { %1034 = vmatpush1.bf16.msra.mxu0 %v5320_v26  ;;  %1387 = vmatpush1.bf16.msra.mxu1 %v5321_v27  ;;  %v5391_v10 = vld [vmem:[%s5656_s12 + $0x54] ss:$8 sps:$4 sm:$0xff]   ;;  %v5393_v11 = vld [vmem:[%s5656_s12 + $0x50] ss:$8 sps:$4 sm:$0xff]   ;;  %v5394_v12 = vld [vmem:[%s5656_s12 + $0x64] ss:$8 sps:$4 sm:$0xff]  }
  0x28   : > { %1035 = vmatprep.subr.bf16.mxu0 %v5322_v28  ;;  %1388 = vmatprep.subr.bf16.mxu1 %v5324_v29  ;;  %v5396_v13 = vld [vmem:[%s5656_s12 + $0x60] ss:$8 sps:$4 sm:$0xff]   ;;  %v5397_v14 = vld [vmem:[%s5656_s12 + $0x74] ss:$8 sps:$4 sm:$0xff]   ;;  %v5399_v15 = vld [vmem:[%s5656_s12 + $0x70] ss:$8 sps:$4 sm:$0xff]  }
  0x29   : > { %v5400_v16 = vld [vmem:[%s5656_s12 + $0x84] ss:$8 sps:$4 sm:$0xff]   ;;  %v5402_v17 = vld [vmem:[%s5656_s12 + $0x80] ss:$8 sps:$4 sm:$0xff]   ;;  %v5403_v18 = vld [vmem:[%s5656_s12 + $0x94] ss:$8 sps:$4 sm:$0xff]  }
  0x2a   : > { %v5405_v19 = vld [vmem:[%s5656_s12 + $0x90] ss:$8 sps:$4 sm:$0xff]   ;;  %v5406_v20 = vld [vmem:[%s5656_s12 + $0xa4] ss:$8 sps:$4 sm:$0xff]   ;;  %v5408_v21 = vld [vmem:[%s5656_s12 + $0xa0] ss:$8 sps:$4 sm:$0xff]  }
  0x2b   : > { %1036 = vmatpush1.bf16.msra.mxu0 %v5326_v30  ;;  %1389 = vmatpush1.bf16.msra.mxu1 %v5327_v31  ;;  %v5409_v22 = vld [vmem:[%s5656_s12 + $0xb4] ss:$8 sps:$4 sm:$0xff]   ;;  %v5411_v23 = vld [vmem:[%s5656_s12 + $0xb0] ss:$8 sps:$4 sm:$0xff]   ;;  %v5412_v24 = vld [vmem:[%s5656_s12 + $0xc4] ss:$8 sps:$4 sm:$0xff]  }
  0x2c   : > { %1037 = vmatprep.subr.bf16.mxu0 %v5328_v32  ;;  %1390 = vmatprep.subr.bf16.mxu1 %v5330_v33  ;;  %v5414_v25 = vld [vmem:[%s5656_s12 + $0xc0] ss:$8 sps:$4 sm:$0xff]   ;;  %v5415_v26 = vld [vmem:[%s5656_s12 + $0xd4] ss:$8 sps:$4 sm:$0xff]   ;;  %v5417_v27 = vld [vmem:[%s5656_s12 + $0xd0] ss:$8 sps:$4 sm:$0xff]  }
  0x2d   : > { %v5418_v28 = vld [vmem:[%s5656_s12 + $0xe4] ss:$8 sps:$4 sm:$0xff]   ;;  %v5420_v29 = vld [vmem:[%s5656_s12 + $0xe0] ss:$8 sps:$4 sm:$0xff]   ;;  %v5421_v30 = vld [vmem:[%s5656_s12 + $0xf4] ss:$8 sps:$4 sm:$0xff]  }
  0x2e   : > { %v5423_v31 = vld [vmem:[%s5656_s12 + $0xf0] ss:$8 sps:$4 sm:$0xff]   ;;  %v5424_v32 = vld [vmem:[%s5656_s12 + $0x104] ss:$8 sps:$4 sm:$0xff]   ;;  %v5426_v33 = vld [vmem:[%s5656_s12 + $0x100] ss:$8 sps:$4 sm:$0xff]  }
  0x2f   : > { %1038 = vmatpush1.bf16.msra.mxu0 %v5332_v34  ;;  %1391 = vmatpush1.bf16.msra.mxu1 %v5333_v35  ;;  %v5427_v34 = vld [vmem:[%s5656_s12 + $0x114] ss:$8 sps:$4 sm:$0xff]   ;;  %v5429_v35 = vld [vmem:[%s5656_s12 + $0x110] ss:$8 sps:$4 sm:$0xff]   ;;  %v5448_v48 = vld [vmem:[%s5656_s12 + $0x184] ss:$8 sps:$4 sm:$0xff]  }
  0x30   : > { %1039 = vmatprep.subr.bf16.mxu0 %v5334_v36  ;;  %1392 = vmatprep.subr.bf16.mxu1 %v5336_v37  ;;  %v5430_v36 = vld [vmem:[%s5656_s12 + $0x124] ss:$8 sps:$4 sm:$0xff]   ;;  %v5432_v37 = vld [vmem:[%s5656_s12 + $0x120] ss:$8 sps:$4 sm:$0xff]  }
  0x33   : > { %1040 = vmatpush1.bf16.msra.mxu0 %v5338_v38  ;;  %1393 = vmatpush1.bf16.msra.mxu1 %v5339_v39  ;;  %v5433_v38 = vld [vmem:[%s5656_s12 + $0x134] ss:$8 sps:$4 sm:$0xff]   ;;  %v5435_v39 = vld [vmem:[%s5656_s12 + $0x130] ss:$8 sps:$4 sm:$0xff]  }
  0x34   : > { %1041 = vmatprep.subr.bf16.mxu0 %v5340_v40  ;;  %1394 = vmatprep.subr.bf16.mxu1 %v5342_v41  ;;  %v5436_v40 = vld [vmem:[%s5656_s12 + $0x144] ss:$8 sps:$4 sm:$0xff]   ;;  %v5438_v41 = vld [vmem:[%s5656_s12 + $0x140] ss:$8 sps:$4 sm:$0xff]  }
  0x37   : > { %1042 = vmatpush1.bf16.msra.mxu0 %v5344_v42  ;;  %1395 = vmatpush1.bf16.msra.mxu1 %v5345_v43  ;;  %v5439_v42 = vld [vmem:[%s5656_s12 + $0x154] ss:$8 sps:$4 sm:$0xff]   ;;  %v5441_v43 = vld [vmem:[%s5656_s12 + $0x150] ss:$8 sps:$4 sm:$0xff]  }
  0x38   : > { %1043 = vmatprep.subr.bf16.mxu0 %v5346_v44  ;;  %1396 = vmatprep.subr.bf16.mxu1 %v5348_v45  ;;  %v5442_v44 = vld [vmem:[%s5656_s12 + $0x164] ss:$8 sps:$4 sm:$0xff]   ;;  %v5444_v45 = vld [vmem:[%s5656_s12 + $0x160] ss:$8 sps:$4 sm:$0xff]  }
  0x3b   : > { %1044 = vmatpush1.bf16.msra.mxu0 %v5350_v46  ;;  %1397 = vmatpush1.bf16.msra.mxu1 %v5351_v47  ;;  %v5445_v46 = vld [vmem:[%s5656_s12 + $0x174] ss:$8 sps:$4 sm:$0xff]   ;;  %v5447_v47 = vld [vmem:[%s5656_s12 + $0x170] ss:$8 sps:$4 sm:$0xff]  }
  0x3c   : > { %1045 = vmatprep.subr.bf16.mxu0 %v5352_v49  ;;  %1398 = vmatprep.subr.bf16.mxu1 %v5354_v50  ;;  %v361_v49 = vlaneseq  ;;  %v5450_v50 = vld [vmem:[%s5656_s12 + $0x180] ss:$8 sps:$4 sm:$0xff]  }
  0x3f   : > { %1046 = vmatpush1.bf16.msra.mxu0 %v5356_v51  ;;  %1399 = vmatpush1.bf16.msra.mxu1 %v5357_v52  ;;  %v362_v51 = vshrl.u32 %v361_v49, 7  ;;  %v5451_v52 = vld [vmem:[%s5656_s12 + $0x194] ss:$8 sps:$4 sm:$0xff]  }
  0x40   : > { %1047 = vmatprep.subr.bf16.mxu0 %v5358_v53  ;;  %1400 = vmatprep.subr.bf16.mxu1 %v5360_v54 }
  0x41   : > { %v363_v53 = vsub.s32 0, %v362_v51  ;;  %v371_v54 = vsub.s32 2, %v362_v51 }
  0x43   : > { %1048 = vmatpush1.bf16.msra.mxu0 %v5362_v55  ;;  %1401 = vmatpush1.bf16.msra.mxu1 %v5363_v56  ;;  %v367_v55 = vsub.s32 1, %v362_v51  ;;  %v375_v56 = vsub.s32 3, %v362_v51  ;;  %v5895_v51 = vld [vmem:[%s5772_s8 + $0xb8] sm:$0xff] }
  0x44   : > { %1049 = vmatprep.subr.bf16.mxu0 %v5364_v57  ;;  %1402 = vmatprep.subr.bf16.mxu1 %v5366_v58  ;;  %v359_v57 = vld [vmem:[%s7387_s2] sm:$0xf]  ;;  %7417 = vst [vmem:[#allocation5_spill] sm:$0xff] %v5895_v51 }
  0x45   : > { %v5778_v58 = vld [vmem:[%s5772_s8] sm:$0xff] }
  0x47   : > { %1050 = vmatpush1.bf16.msra.mxu0 %v5368_v59  ;;  %1403 = vmatpush1.bf16.msra.mxu1 %v5369_v60  ;;  %v5781_v59 = vld [vmem:[%s5772_s8 + $0x8] sm:$0xff]  ;;  %v5784_v60 = vld [vmem:[%s5772_s8 + $0x10] sm:$0xff] }
  0x48   : > { %1051 = vmatprep.subr.bf16.mxu0 %v5370_v61  ;;  %1404 = vmatprep.subr.bf16.mxu1 %v5372_v62  ;;  %v5787_v61 = vld [vmem:[%s5772_s8 + $0x18] sm:$0xff] }
  0x49   : > { %v5453_v62 = vld [vmem:[%s5656_s12 + $0x190] ss:$8 sps:$4 sm:$0xff]  }
  0x4b   : > { %1052 = vmatpush1.bf16.msra.mxu0 %v5374_v63  ;;  %1405 = vmatpush1.bf16.msra.mxu1 %v5375_v0  ;;  %v5790_v63 = vrot.slane %v359_v57, %v363_v53  ;;  %v5792_v0 = vrot.slane %v359_v57, %v371_v54  ;;  %v5881_v53 = vld [vmem:[%s5772_s8 + $0xa0] sm:$0xff]  ;;  %v5884_v54 = vld [vmem:[%s5772_s8 + $0xa8] sm:$0xff] }
  0x4c   : > { %7414 = vst [vmem:[#allocation2_spill] sm:$0xff] %v5881_v53  ;;  %7415 = vst [vmem:[#allocation3_spill] sm:$0xff] %v5884_v54 }
  0x4e   : > { %1054 = vmatmul.mubr.bf16.vlgmr.msra.gmra.mrb[0].mxu0 %v5376_v1  ;;  %1407 = vmatmul.mubr.bf16.vlgmr.msra.gmra.mrb[0].mxu1 %v5376_v1  ;;  %v5794_v1 = vrot.slane %v359_v57, %v367_v55  ;;  %v5457_v55 = vld [vmem:[%s5656_s12 + $0x1b4] ss:$8 sps:$4 sm:$0xff]  }
  0x4f   : > { %1063 = vmatprep.mubr.bf16.mxu0 %v5379_v2  ;;  %1416 = vmatprep.mubr.bf16.mxu1 %v5379_v2  ;;  %v5796_v2 = vrot.slane %v359_v57, %v375_v56  ;;  %v5902_v57 = vld [vmem:[%s5772_s8 + $0xc0] sm:$0xff] }
  0x50   : > { %7418 = vst [vmem:[#allocation6_spill] sm:$0xff] %v5902_v57 }
  0x56   : > { %1064 = vmatmul.mubr.bf16.gmra.mrb[4].mxu0 %v5381_v3  ;;  %1417 = vmatmul.mubr.bf16.gmra.mrb[4].mxu1 %v5381_v3  ;;  %v5799_v3 = vld [vmem:[%s5772_s8 + $0x20] sm:$0xff] }
  0x57   : > { %1073 = vmatprep.mubr.bf16.mxu0 %v5382_v4  ;;  %1426 = vmatprep.mubr.bf16.mxu1 %v5382_v4  ;;  %v5802_v4 = vld [vmem:[%s5772_s8 + $0x28] sm:$0xff] }
  0x5e   : > { %1074 = vmatmul.mubr.bf16.gmra.mrb[8].mxu0 %v5384_v5  ;;  %1427 = vmatmul.mubr.bf16.gmra.mrb[8].mxu1 %v5384_v5  ;;  %v5454_v5 = vld [vmem:[%s5656_s12 + $0x1a4] ss:$8 sps:$4 sm:$0xff]  }
  0x5f   : > { %1083 = vmatprep.mubr.bf16.mxu0 %v5385_v6  ;;  %1436 = vmatprep.mubr.bf16.mxu1 %v5385_v6  ;;  %v1855_v6 = vunpack.c.l.bf16 %v5778_v58 }
  0x66   : > { %1084 = vmatmul.mubr.bf16.gmra.mrb[12].mxu0 %v5387_v7  ;;  %1437 = vmatmul.mubr.bf16.gmra.mrb[12].mxu1 %v5387_v7  ;;  %v1857_v7 = vunpack.c.l.bf16 %v5781_v59 }
  0x67   : > { %1093 = vmatprep.mubr.bf16.mxu0 %v5388_v8  ;;  %1446 = vmatprep.mubr.bf16.mxu1 %v5388_v8  ;;  %v1856_v8 = vunpack.c.h.bf16 %v5778_v58 }
  0x6e   : > { %1094 = vmatmul.mubr.bf16.gmra.mrb[16].mxu0 %v5390_v9  ;;  %1447 = vmatmul.mubr.bf16.gmra.mrb[16].mxu1 %v5390_v9  ;;  %v1858_v9 = vunpack.c.h.bf16 %v5781_v59 }
  0x6f   : > { %1103 = vmatprep.mubr.bf16.mxu0 %v5391_v10  ;;  %1456 = vmatprep.mubr.bf16.mxu1 %v5391_v10  ;;  %v5810_v10 = vld [vmem:[%s5772_s8 + $0x30] sm:$0xff] }
  0x76   : > { %1104 = vmatmul.mubr.bf16.gmra.mrb[20].mxu0 %v5393_v11  ;;  %1457 = vmatmul.mubr.bf16.gmra.mrb[20].mxu1 %v5393_v11  ;;  %v5813_v11 = vld [vmem:[%s5772_s8 + $0x38] sm:$0xff] }
  0x77   : > { %1113 = vmatprep.mubr.bf16.mxu0 %v5394_v12  ;;  %1466 = vmatprep.mubr.bf16.mxu1 %v5394_v12  ;;  %v1859_v12 = vunpack.c.l.bf16 %v5784_v60 }
  0x7e   : > { %1114 = vmatmul.mubr.bf16.gmra.mrb[24].mxu0 %v5396_v13  ;;  %1467 = vmatmul.mubr.bf16.gmra.mrb[24].mxu1 %v5396_v13  ;;  %v1861_v13 = vunpack.c.l.bf16 %v5787_v61 }
  0x7f   : > { %1123 = vmatprep.mubr.bf16.mxu0 %v5397_v14  ;;  %1476 = vmatprep.mubr.bf16.mxu1 %v5397_v14  ;;  %v1860_v14 = vunpack.c.h.bf16 %v5784_v60 }
  0x86   : > { %1124 = vmatmul.mubr.bf16.gmra.mrb[28].mxu0 %v5399_v15  ;;  %1477 = vmatmul.mubr.bf16.gmra.mrb[28].mxu1 %v5399_v15  ;;  %v1862_v15 = vunpack.c.h.bf16 %v5787_v61  ;;  %v5463_v61 = vld [vmem:[%s5656_s12 + $0x1d4] ss:$8 sps:$4 sm:$0xff]  }
  0x87   : > { %1133 = vmatprep.mubr.bf16.mxu0 %v5400_v16  ;;  %1486 = vmatprep.mubr.bf16.mxu1 %v5400_v16  ;;  %v5820_v16 = vld [vmem:[%s5772_s8 + $0x40] sm:$0xff] }
  0x8e   : > { %1134 = vmatmul.mubr.bf16.gmra.mrb[32].mxu0 %v5402_v17  ;;  %1487 = vmatmul.mubr.bf16.gmra.mrb[32].mxu1 %v5402_v17  ;;  %v5823_v17 = vld [vmem:[%s5772_s8 + $0x48] sm:$0xff] }
  0x8f   : > { %1143 = vmatprep.mubr.bf16.mxu0 %v5403_v18  ;;  %1496 = vmatprep.mubr.bf16.mxu1 %v5403_v18 }
  0x96   : > { %1144 = vmatmul.mubr.bf16.gmra.mrb[36].mxu0 %v5405_v19  ;;  %1497 = vmatmul.mubr.bf16.gmra.mrb[36].mxu1 %v5405_v19 }
  0x97   : > { %1153 = vmatprep.mubr.bf16.mxu0 %v5406_v20  ;;  %1506 = vmatprep.mubr.bf16.mxu1 %v5406_v20 }
  0x9e   : > { %1154 = vmatmul.mubr.bf16.gmra.mrb[40].mxu0 %v5408_v21  ;;  %1507 = vmatmul.mubr.bf16.gmra.mrb[40].mxu1 %v5408_v21 }
  0x9f   : > { %1163 = vmatprep.mubr.bf16.mxu0 %v5409_v22  ;;  %1516 = vmatprep.mubr.bf16.mxu1 %v5409_v22  ;;  %v5830_v22 = vld [vmem:[%s5772_s8 + $0x50] sm:$0xff] }
  0xa6   : > { %1164 = vmatmul.mubr.bf16.gmra.mrb[44].mxu0 %v5411_v23  ;;  %1517 = vmatmul.mubr.bf16.gmra.mrb[44].mxu1 %v5411_v23  ;;  %v5833_v23 = vld [vmem:[%s5772_s8 + $0x58] sm:$0xff] }
  0xa7   : > { %1173 = vmatprep.mubr.bf16.mxu0 %v5412_v24  ;;  %1526 = vmatprep.mubr.bf16.mxu1 %v5412_v24 }
  0xae   : > { %1174 = vmatmul.mubr.bf16.gmra.mrb[48].mxu0 %v5414_v25  ;;  %1527 = vmatmul.mubr.bf16.gmra.mrb[48].mxu1 %v5414_v25 }
  0xaf   : > { %1183 = vmatprep.mubr.bf16.mxu0 %v5415_v26  ;;  %1536 = vmatprep.mubr.bf16.mxu1 %v5415_v26 }
  0xb6   : > { %1184 = vmatmul.mubr.bf16.gmra.mrb[52].mxu0 %v5417_v27  ;;  %1537 = vmatmul.mubr.bf16.gmra.mrb[52].mxu1 %v5417_v27 }
  0xb7   : > { %1193 = vmatprep.mubr.bf16.mxu0 %v5418_v28  ;;  %1546 = vmatprep.mubr.bf16.mxu1 %v5418_v28  ;;  %v5840_v28 = vld [vmem:[%s5772_s8 + $0x60] sm:$0xff] }
  0xbe   : > { %1194 = vmatmul.mubr.bf16.gmra.mrb[56].mxu0 %v5420_v29  ;;  %1547 = vmatmul.mubr.bf16.gmra.mrb[56].mxu1 %v5420_v29  ;;  %v5843_v29 = vld [vmem:[%s5772_s8 + $0x68] sm:$0xff] }
  0xbf   : > { %1203 = vmatprep.mubr.bf16.mxu0 %v5421_v30  ;;  %1556 = vmatprep.mubr.bf16.mxu1 %v5421_v30 }
  0xc6   : > { %1204 = vmatmul.mubr.bf16.gmra.mrb[60].mxu0 %v5423_v31  ;;  %1557 = vmatmul.mubr.bf16.gmra.mrb[60].mxu1 %v5423_v31 }
  0xc7   : > { %1213 = vmatprep.mubr.bf16.mxu0 %v5424_v32  ;;  %1566 = vmatprep.mubr.bf16.mxu1 %v5424_v32 }
  0xce   : > { %1214 = vmatmul.mubr.bf16.gmra.mrb[64].mxu0 %v5426_v33  ;;  %1567 = vmatmul.mubr.bf16.gmra.mrb[64].mxu1 %v5426_v33 }
  0xcf   : > { %1223 = vmatprep.mubr.bf16.mxu0 %v5427_v34  ;;  %1576 = vmatprep.mubr.bf16.mxu1 %v5427_v34  ;;  %v5850_v34 = vld [vmem:[%s5772_s8 + $0x70] sm:$0xff] }
  0xd6   : > { %1224 = vmatmul.mubr.bf16.gmra.mrb[68].mxu0 %v5429_v35  ;;  %1577 = vmatmul.mubr.bf16.gmra.mrb[68].mxu1 %v5429_v35  ;;  %v5853_v35 = vld [vmem:[%s5772_s8 + $0x78] sm:$0xff] }
  0xd7   : > { %1233 = vmatprep.mubr.bf16.mxu0 %v5430_v36  ;;  %1586 = vmatprep.mubr.bf16.mxu1 %v5430_v36  ;;  %v5459_v36 = vld [vmem:[%s5656_s12 + $0x1b0] ss:$8 sps:$4 sm:$0xff]  }
  0xde   : > { %1234 = vmatmul.mubr.bf16.gmra.mrb[72].mxu0 %v5432_v37  ;;  %1587 = vmatmul.mubr.bf16.gmra.mrb[72].mxu1 %v5432_v37  ;;  %v5932_v37 = vld [vmem:[%s5772_s8 + $0xf0] sm:$0xff] }
  0xdf   : > { %1243 = vmatprep.mubr.bf16.mxu0 %v5433_v38  ;;  %1596 = vmatprep.mubr.bf16.mxu1 %v5433_v38  ;;  %7424 = vst [vmem:[#allocation12_spill] sm:$0xff] %v5932_v37  ;;  %v5460_v38 = vld [vmem:[%s5656_s12 + $0x1c4] ss:$8 sps:$4 sm:$0xff]  }
  0xe6   : > { %1244 = vmatmul.mubr.bf16.gmra.mrb[76].mxu0 %v5435_v39  ;;  %1597 = vmatmul.mubr.bf16.gmra.mrb[76].mxu1 %v5435_v39  ;;  %v5922_v39 = vld [vmem:[%s5772_s8 + $0xe0] sm:$0xff] }
  0xe7   : > { %1253 = vmatprep.mubr.bf16.mxu0 %v5436_v40  ;;  %1606 = vmatprep.mubr.bf16.mxu1 %v5436_v40  ;;  %v5860_v40 = vld [vmem:[%s5772_s8 + $0x80] sm:$0xff]  ;;  %7422 = vst [vmem:[#allocation10_spill] sm:$0xff] %v5922_v39 }
  0xee   : > { %1254 = vmatmul.mubr.bf16.gmra.mrb[80].mxu0 %v5438_v41  ;;  %1607 = vmatmul.mubr.bf16.gmra.mrb[80].mxu1 %v5438_v41  ;;  %v5863_v41 = vld [vmem:[%s5772_s8 + $0x88] sm:$0xff] }
  0xef   : > { %1263 = vmatprep.mubr.bf16.mxu0 %v5439_v42  ;;  %1616 = vmatprep.mubr.bf16.mxu1 %v5439_v42  ;;  %v5912_v42 = vld [vmem:[%s5772_s8 + $0xd0] sm:$0xff] }
  0xf0   : > { %7420 = vst [vmem:[#allocation8_spill] sm:$0xff] %v5912_v42 }
  0xf6   : > { %1264 = vmatmul.mubr.bf16.gmra.mrb[84].mxu0 %v5441_v43  ;;  %1617 = vmatmul.mubr.bf16.gmra.mrb[84].mxu1 %v5441_v43  ;;  %v5925_v43 = vld [vmem:[%s5772_s8 + $0xe8] sm:$0xff] }
  0xf7   : > { %1273 = vmatprep.mubr.bf16.mxu0 %v5442_v44  ;;  %1626 = vmatprep.mubr.bf16.mxu1 %v5442_v44  ;;  %v5905_v44 = vld [vmem:[%s5772_s8 + $0xc8] sm:$0xff]  ;;  %7423 = vst [vmem:[#allocation11_spill] sm:$0xff] %v5925_v43 }
  0xf8   : > { %7419 = vst [vmem:[#allocation7_spill] sm:$0xff] %v5905_v44 }
  0xfe   : > { %1274 = vmatmul.mubr.bf16.gmra.mrb[88].mxu0 %v5444_v45  ;;  %1627 = vmatmul.mubr.bf16.gmra.mrb[88].mxu1 %v5444_v45  ;;  %v5915_v45 = vld [vmem:[%s5772_s8 + $0xd8] sm:$0xff] }
  0xff   : > { %1283 = vmatprep.mubr.bf16.mxu0 %v5445_v46  ;;  %1636 = vmatprep.mubr.bf16.mxu1 %v5445_v46  ;;  %v5870_v46 = vld [vmem:[%s5772_s8 + $0x90] sm:$0xff]  ;;  %7421 = vst [vmem:[#allocation9_spill] sm:$0xff] %v5915_v45 }
 0x106   : > { %1284 = vmatmul.mubr.bf16.gmra.mrb[92].mxu0 %v5447_v47  ;;  %1637 = vmatmul.mubr.bf16.gmra.mrb[92].mxu1 %v5447_v47  ;;  %v5873_v47 = vld [vmem:[%s5772_s8 + $0x98] sm:$0xff] }
 0x107   : > { %1293 = vmatprep.mubr.bf16.mxu0 %v5448_v48  ;;  %1646 = vmatprep.mubr.bf16.mxu1 %v5448_v48  ;;  %v5456_v48 = vld [vmem:[%s5656_s12 + $0x1a0] ss:$8 sps:$4 sm:$0xff]  }
 0x10e   : > { %1294 = vmatmul.mubr.bf16.gmra.mrb[96].mxu0 %v5450_v50  ;;  %1647 = vmatmul.mubr.bf16.gmra.mrb[96].mxu1 %v5450_v50  ;;  %v5892_v50 = vld [vmem:[%s5772_s8 + $0xb0] sm:$0xff] }
 0x10f   : > { %1303 = vmatprep.mubr.bf16.mxu0 %v5451_v52  ;;  %1656 = vmatprep.mubr.bf16.mxu1 %v5451_v52  ;;  %7416 = vst [vmem:[#allocation4_spill] sm:$0xff] %v5892_v50 }
 0x116   : > { %1304 = vmatmul.mubr.bf16.gmra.mrb[100].mxu0 %v5453_v62  ;;  %1657 = vmatmul.mubr.bf16.gmra.mrb[100].mxu1 %v5453_v62 }
 0x117   : > { %1313 = vmatprep.mubr.bf16.mxu0 %v5454_v5  ;;  %1666 = vmatprep.mubr.bf16.mxu1 %v5454_v5  ;;  %v5935_v5 = vld [vmem:[%s5772_s8 + $0xf8] sm:$0xff] }
 0x118   : > { %7425 = vst [vmem:[#allocation13_spill] sm:$0xff] %v5935_v5 }
 0x11e   : > { %1314 = vmatmul.mubr.bf16.gmra.mrb[104].mxu0 %v5456_v48  ;;  %1667 = vmatmul.mubr.bf16.gmra.mrb[104].mxu1 %v5456_v48 }
 0x11f   : > { %1323 = vmatprep.mubr.bf16.mxu0 %v5457_v55  ;;  %1676 = vmatprep.mubr.bf16.mxu1 %v5457_v55 }
 0x121   : > { %v1055_v52 = vpop.f32.mrb[0].mxu0  ;;  %v1408_v33 = vpop.f32.mrb[0].mxu1 }
 0x122   : > { %v1056_v31 = vadd.f32 %v1055_v52, %v5790_v63  ;;  %v1409_v62 = vadd.f32 %v1408_v33, %v5792_v0  ;;  %v1057_v49 = vpop.f32.mrb[1].mxu0  ;;  %v1410_v30 = vpop.f32.mrb[1].mxu1 }
 0x123   : > { %v1058_v26 = vadd.f32 %v1057_v49, %v5794_v1  ;;  %v1411_v48 = vadd.f32 %v1410_v30, %v5796_v2  ;;  %v1059_v56 = vpop.f32.mrb[2].mxu0  ;;  %v1412_v25 = vpop.f32.mrb[2].mxu1 }
 0x124   : > { %v5957_v33 = vadd.f32 %v1855_v6, %v1056_v31  ;;  %v5961_v55 = vadd.f32 %v1857_v7, %v1409_v62  ;;  %v1060_v27 = vadd.f32 %v1059_v56, %v5790_v63  ;;  %v1413_v49 = vadd.f32 %v1412_v25, %v5792_v0  ;;  %v1061_v30 = vpop.f32.mrb[3].mxu0  ;;  %v1414_v24 = vpop.f32.mrb[3].mxu1 }
 0x125   : > { %v5967_v21 = vadd.f32 %v1856_v8, %v1058_v26  ;;  %v5971_v52 = vadd.f32 %v1858_v9, %v1411_v48  ;;  %v1062_v6 = vadd.f32 %v1061_v30, %v5794_v1  ;;  %v1415_v31 = vadd.f32 %v1414_v24, %v5796_v2 }
 0x126   : > { %v2367_v7 = vadd.f32 3.0, %v5957_v33  ;;  %v2369_v56 = vadd.f32 3.0, %v5961_v55  ;;  %v5979_v25 = vadd.f32 %v1859_v12, %v1060_v27  ;;  %v5983_v58 = vadd.f32 %v1861_v13, %v1413_v49  ;;  %1324 = vmatmul.mubr.bf16.gmra.mrb[108].mxu0 %v5459_v36  ;;  %1677 = vmatmul.mubr.bf16.gmra.mrb[108].mxu1 %v5459_v36  ;;  %v5462_v36 = vld [vmem:[%s5656_s12 + $0x1c0] ss:$8 sps:$4 sm:$0xff]  }
 0x127   : > { %v2368_v59 = vadd.f32 3.0, %v5967_v21  ;;  %v2370_v8 = vadd.f32 3.0, %v5971_v52  ;;  %v5989_v9 = vadd.f32 %v1860_v14, %v1062_v6  ;;  %v5993_v24 = vadd.f32 %v1862_v15, %v1415_v31  ;;  %1333 = vmatprep.mubr.bf16.mxu0 %v5460_v38  ;;  %1686 = vmatprep.mubr.bf16.mxu1 %v5460_v38 }
 0x128   : > { %v2623_v12 = vmax.f32 %v2367_v7, 0.0  ;;  %v2625_v13 = vmax.f32 %v2369_v56, 0.0  ;;  %v2371_v26 = vadd.f32 3.0, %v5979_v25  ;;  %v2373_v27 = vadd.f32 3.0, %v5983_v58 }
 0x129   : > { %v2624_v62 = vmax.f32 %v2368_v59, 0.0  ;;  %v2626_v48 = vmax.f32 %v2370_v8, 0.0  ;;  %v2372_v60 = vadd.f32 3.0, %v5989_v9  ;;  %v2374_v14 = vadd.f32 3.0, %v5993_v24  ;;  %v1065_v49 = vpop.f32.mrb[4].mxu0  ;;  %v1418_v30 = vpop.f32.mrb[4].mxu1 }
 0x12a   : > { %v2879_v15 = vmin.f32 %v2623_v12, 6.0  ;;  %v2881_v6 = vmin.f32 %v2625_v13, 6.0  ;;  %v2627_v31 = vmax.f32 %v2371_v26, 0.0  ;;  %v2629_v38 = vmax.f32 %v2373_v27, 0.0  ;;  %v1067_v7 = vpop.f32.mrb[5].mxu0  ;;  %v1420_v56 = vpop.f32.mrb[5].mxu1 }
 0x12b   : > { %v2880_v32 = vmin.f32 %v2624_v62, 6.0  ;;  %v2882_v20 = vmin.f32 %v2626_v48, 6.0  ;;  %v2628_v19 = vmax.f32 %v2372_v60, 0.0  ;;  %v2630_v18 = vmax.f32 %v2374_v14, 0.0  ;;  %v1069_v5 = vpop.f32.mrb[6].mxu0  ;;  %v1422_v59 = vpop.f32.mrb[6].mxu1 }
 0x12c   : > { %v3135_v8 = vmul.f32 0.16666667, %v2879_v15  ;;  %v3137_v37 = vmul.f32 0.16666667, %v2881_v6  ;;  %v2883_v43 = vmin.f32 %v2627_v31, 6.0  ;;  %v2885_v39 = vmin.f32 %v2629_v38, 6.0 }
 0x12d   : > { %v3136_v45 = vmul.f32 0.16666667, %v2880_v32  ;;  %v3138_v42 = vmul.f32 0.16666667, %v2882_v20  ;;  %v2884_v44 = vmin.f32 %v2628_v19, 6.0  ;;  %v2886_v57 = vmin.f32 %v2630_v18, 6.0 }
 0x12e   : > { %v3391_v12 = vmul.f32 %v3135_v8, %v5957_v33  ;;  %v3393_v13 = vmul.f32 %v3137_v37, %v5961_v55  ;;  %v3139_v26 = vmul.f32 0.16666667, %v2883_v43  ;;  %v3141_v27 = vmul.f32 0.16666667, %v2885_v39  ;;  %v1071_v62 = vpop.f32.mrb[7].mxu0  ;;  %v1424_v48 = vpop.f32.mrb[7].mxu1  ;;  %1334 = vmatmul.mubr.bf16.gmra.mrb[112].mxu0 %v5462_v36  ;;  %1687 = vmatmul.mubr.bf16.gmra.mrb[112].mxu1 %v5462_v36 }
 0x12f   : > { %v3392_v60 = vmul.f32 %v3136_v45, %v5967_v21  ;;  %v3394_v14 = vmul.f32 %v3138_v42, %v5971_v52  ;;  %v3140_v15 = vmul.f32 0.16666667, %v2884_v44  ;;  %v3142_v32 = vmul.f32 0.16666667, %v2886_v57  ;;  %1343 = vmatprep.mubr.bf16.mxu0 %v5463_v61  ;;  %1696 = vmatprep.mubr.bf16.mxu1 %v5463_v61  ;;  %v5465_v6 = vld [vmem:[%s5656_s12 + $0x1d0] ss:$8 sps:$4 sm:$0xff]  }
 0x130   : > { %v3647_v18 = vmul.f32 %v3391_v12, %v5957_v33  ;;  %v3649_v19 = vmul.f32 %v3393_v13, %v5961_v55  ;;  %v3395_v20 = vmul.f32 %v3139_v26, %v5979_v25  ;;  %v3397_v37 = vmul.f32 %v3141_v27, %v5983_v58 }
 0x131   : > { %v3648_v39 = vmul.f32 %v3392_v60, %v5967_v21  ;;  %v3650_v43 = vmul.f32 %v3394_v14, %v5971_v52  ;;  %v3396_v45 = vmul.f32 %v3140_v15, %v5989_v9  ;;  %v3398_v42 = vmul.f32 %v3142_v32, %v5993_v24  ;;  %v6013_v44 = vpop.f32.mrb[8].mxu0  ;;  %v6015_v57 = vpop.f32.mrb[8].mxu1 }
 0x132   : > { %v3651_v55 = vmul.f32 %v3395_v20, %v5979_v25  ;;  %v3653_v21 = vmul.f32 %v3397_v37, %v5983_v58  ;;  %v1066_v52 = vadd.f32 %v1065_v49, %v5790_v63  ;;  %v1419_v33 = vadd.f32 %v1418_v30, %v5792_v0  ;;  %v6028_v36 = vpop.f32.mrb[9].mxu0  ;;  %v6030_v61 = vpop.f32.mrb[9].mxu1  ;;  %v5466_v49 = vld [vmem:[%s5656_s12 + $0x1e4] ss:$8 sps:$4 sm:$0xff]  }
 0x133   : > { %v5144_v31 = vpack.c.bf16 %v3648_v39, %v3647_v18  ;;  %v5145_v38 = vpack.c.bf16 %v3650_v43, %v3649_v19  ;;  %v3652_v8 = vmul.f32 %v3396_v45, %v5989_v9  ;;  %v3654_v12 = vmul.f32 %v3398_v42, %v5993_v24  ;;  %v6035_v25 = vpop.f32.mrb[10].mxu0  ;;  %v6037_v58 = vpop.f32.mrb[10].mxu1 }
 0x134   : > { %v7426_v30 = vunpack.c.l.bf16 %v5799_v3  ;;  %v7427_v26 = vunpack.c.l.bf16 %v5802_v4  ;;  %v1068_v60 = vadd.f32 %v1067_v7, %v5794_v1  ;;  %v1421_v9 = vadd.f32 %v1420_v56, %v5796_v2  ;;  %v6050_v24 = vpop.f32.mrb[11].mxu0  ;;  %v6052_v14 = vpop.f32.mrb[11].mxu1 }
 0x135   : > { %4671 = vst [vmem:[%s6022_s13] sm:$0xff] %v5144_v31  ;;  %4672 = vst [vmem:[%s6022_s13 + $0x8] sm:$0xff] %v5145_v38  ;;  %v5146_v15 = vpack.c.bf16 %v3652_v8, %v3651_v55  ;;  %v5147_v32 = vpack.c.bf16 %v3654_v12, %v3653_v21  ;;  %v1070_v18 = vadd.f32 %v1069_v5, %v5790_v63  ;;  %v7428_v37 = vunpack.c.h.bf16 %v5799_v3 }
 0x136   : > { %v6042_v13 = vadd.f32 %v7426_v30, %v1066_v52  ;;  %v6046_v27 = vadd.f32 %v7427_v26, %v1419_v33  ;;  %v1423_v19 = vadd.f32 %v1422_v59, %v5792_v0  ;;  %v7429_v39 = vunpack.c.h.bf16 %v5802_v4  ;;  %1344 = vmatmul.mubr.bf16.gmra.mrb[116].mxu0 %v5465_v6  ;;  %1697 = vmatmul.mubr.bf16.gmra.mrb[116].mxu1 %v5465_v6  ;;  %v5468_v6 = vld [vmem:[%s5656_s12 + $0x1e0] ss:$8 sps:$4 sm:$0xff]  }
 0x137   : > { %v6062_v56 = vadd.f32 %v7428_v37, %v1068_v60  ;;  %4673 = vst [vmem:[%s6022_s13 + $0x10] sm:$0xff] %v5146_v15  ;;  %4674 = vst [vmem:[%s6022_s13 + $0x18] sm:$0xff] %v5147_v32  ;;  %v7430_v5 = vunpack.c.l.bf16 %v5810_v10  ;;  %v7431_v45 = vunpack.c.l.bf16 %v5813_v11  ;;  %v1072_v3 = vadd.f32 %v1071_v62, %v5794_v1  ;;  %1353 = vmatprep.mubr.bf16.mxu0 %v5466_v49  ;;  %v5469_v60 = vld [vmem:[%s5656_s12 + $0x1f4] ss:$8 sps:$4 sm:$0xff]  }
 0x138   : > { %v2375_v20 = vadd.f32 3.0, %v6042_v13  ;;  %v2377_v7 = vadd.f32 3.0, %v6046_v27  ;;  %v6066_v43 = vadd.f32 %v7429_v39, %v1421_v9  ;;  %v1425_v4 = vadd.f32 %v1424_v48, %v5796_v2  ;;  %1706 = vmatprep.mubr.bf16.mxu1 %v5466_v49 }
 0x139   : > { %v6072_v59 = vadd.f32 %v7430_v5, %v1070_v18  ;;  %v6076_v42 = vadd.f32 %v7431_v45, %v1423_v19  ;;  %v2376_v52 = vadd.f32 3.0, %v6062_v56  ;;  %v7432_v8 = vunpack.c.h.bf16 %v5810_v10  ;;  %v6093_v30 = vpop.f32.mrb[12].mxu0  ;;  %v6095_v26 = vpop.f32.mrb[12].mxu1 }
 0x13a   : > { %v2631_v55 = vmax.f32 %v2375_v20, 0.0  ;;  %v2633_v21 = vmax.f32 %v2377_v7, 0.0  ;;  %v2378_v33 = vadd.f32 3.0, %v6066_v43  ;;  %v7433_v62 = vunpack.c.h.bf16 %v5813_v11  ;;  %v6098_v18 = vpop.f32.mrb[13].mxu0  ;;  %v6100_v19 = vpop.f32.mrb[13].mxu1 }
 0x13b   : > { %v2379_v31 = vadd.f32 3.0, %v6072_v59  ;;  %v2381_v38 = vadd.f32 3.0, %v6076_v42  ;;  %v6087_v12 = vadd.f32 %v7432_v8, %v1072_v3  ;;  %v2632_v15 = vmax.f32 %v2376_v52, 0.0  ;;  %v6104_v37 = vpop.f32.mrb[14].mxu0  ;;  %v6106_v39 = vpop.f32.mrb[14].mxu1 }
 0x13c   : > { %v6091_v48 = vadd.f32 %v7433_v62, %v1425_v4  ;;  %v2887_v9 = vmin.f32 %v2631_v55, 6.0  ;;  %v2889_v49 = vmin.f32 %v2633_v21, 6.0  ;;  %v2634_v32 = vmax.f32 %v2378_v33, 0.0  ;;  %v6108_v8 = vpop.f32.mrb[15].mxu0 }
 0x13d   : > { %v2635_v10 = vmax.f32 %v2379_v31, 0.0  ;;  %v2637_v20 = vmax.f32 %v2381_v38, 0.0  ;;  %v2380_v7 = vadd.f32 3.0, %v6087_v12  ;;  %v2888_v3 = vmin.f32 %v2632_v15, 6.0  ;;  %v6110_v31 = vpop.f32.mrb[15].mxu1 }
 0x13e   : > { %v2382_v11 = vadd.f32 3.0, %v6091_v48  ;;  %v3143_v5 = vmul.f32 0.16666667, %v2887_v9  ;;  %v3145_v45 = vmul.f32 0.16666667, %v2889_v49  ;;  %v2890_v4 = vmin.f32 %v2634_v32, 6.0  ;;  %1354 = vmatmul.mubr.bf16.gmra.mrb[120].mxu0 %v5468_v6  ;;  %1707 = vmatmul.mubr.bf16.gmra.mrb[120].mxu1 %v5468_v6 }
 0x13f   : > { %v2891_v55 = vmin.f32 %v2635_v10, 6.0  ;;  %v2893_v21 = vmin.f32 %v2637_v20, 6.0  ;;  %v2636_v52 = vmax.f32 %v2380_v7, 0.0  ;;  %v3144_v51 = vmul.f32 0.16666667, %v2888_v3  ;;  %1363 = vmatprep.mubr.bf16.mxu0 %v5469_v60  ;;  %1716 = vmatprep.mubr.bf16.mxu1 %v5469_v60 }
 0x140   : > { %v2638_v33 = vmax.f32 %v2382_v11, 0.0  ;;  %v3399_v38 = vmul.f32 %v3143_v5, %v6042_v13  ;;  %v3401_v62 = vmul.f32 %v3145_v45, %v6046_v27  ;;  %v3146_v50 = vmul.f32 0.16666667, %v2890_v4 }
 0x141   : > { %v3147_v9 = vmul.f32 0.16666667, %v2891_v55  ;;  %v3149_v49 = vmul.f32 0.16666667, %v2893_v21  ;;  %v2892_v15 = vmin.f32 %v2636_v52, 6.0  ;;  %v3400_v7 = vmul.f32 %v3144_v51, %v6062_v56  ;;  %v6120_v4 = vpop.f32.mrb[16].mxu0 }
 0x142   : > { %v2894_v32 = vmin.f32 %v2638_v33, 6.0  ;;  %v3655_v10 = vmul.f32 %v3399_v38, %v6042_v13  ;;  %v3657_v20 = vmul.f32 %v3401_v62, %v6046_v27  ;;  %v3402_v11 = vmul.f32 %v3146_v50, %v6066_v43  ;;  %v6122_v55 = vpop.f32.mrb[16].mxu1  ;;  %v6130_v51 = vpop.f32.mrb[17].mxu0  ;;  %v5471_v52 = vld [vmem:[%s5656_s12 + $0x1f0] ss:$8 sps:$4 sm:$0xff]  }
 0x143   : > { %v3403_v5 = vmul.f32 %v3147_v9, %v6072_v59  ;;  %v3405_v45 = vmul.f32 %v3149_v49, %v6076_v42  ;;  %v3148_v6 = vmul.f32 0.16666667, %v2892_v15  ;;  %v3656_v60 = vmul.f32 %v3400_v7, %v6062_v56  ;;  %v6132_v21 = vpop.f32.mrb[17].mxu1  ;;  %v6139_v62 = vpop.f32.mrb[18].mxu0 }
 0x144   : > { %v3150_v3 = vmul.f32 0.16666667, %v2894_v32  ;;  %v3658_v13 = vmul.f32 %v3402_v11, %v6066_v43  ;;  %v1076_v27 = vadd.f32 %v6013_v44, %v5790_v63  ;;  %v1429_v50 = vadd.f32 %v6015_v57, %v5792_v0  ;;  %v6141_v44 = vpop.f32.mrb[18].mxu1  ;;  %v6147_v7 = vpop.f32.mrb[19].mxu0 }
 0x145   : > { %v3659_v33 = vmul.f32 %v3403_v5, %v6072_v59  ;;  %v3661_v38 = vmul.f32 %v3405_v45, %v6076_v42  ;;  %v3404_v56 = vmul.f32 %v3148_v6, %v6087_v12  ;;  %v5148_v57 = vpack.c.bf16 %v3656_v60, %v3655_v10  ;;  %v6149_v42 = vpop.f32.mrb[19].mxu1 }
 0x146   : > { %v3406_v43 = vmul.f32 %v3150_v3, %v6091_v48  ;;  %v5149_v9 = vpack.c.bf16 %v3658_v13, %v3657_v20  ;;  %v7434_v49 = vunpack.c.l.bf16 %v5820_v16  ;;  %v7435_v32 = vunpack.c.l.bf16 %v5823_v17  ;;  %1364 = vmatmul.mubr.bf16.gmra.mrb[124].mxu0 %v5471_v52  ;;  %1717 = vmatmul.mubr.bf16.gmra.mrb[124].mxu1 %v5471_v52 }
 0x147   : > { %v3660_v11 = vmul.f32 %v3404_v56, %v6087_v12  ;;  %v1078_v45 = vadd.f32 %v6028_v36, %v5794_v1  ;;  %v1431_v10 = vadd.f32 %v6030_v61, %v5796_v2  ;;  %4675 = vst [vmem:[%s6022_s13 + $0x20] sm:$0xff] %v5148_v57  ;;  %v1080_v3 = vadd.f32 %v6035_v25, %v5790_v63 }
 0x148   : > { %v2127_v15 = vadd.f32 %v7434_v49, %v1076_v27  ;;  %v2129_v59 = vadd.f32 %v7435_v32, %v1429_v50  ;;  %v3662_v5 = vmul.f32 %v3406_v43, %v6091_v48  ;;  %4676 = vst [vmem:[%s6022_s13 + $0x28] sm:$0xff] %v5149_v9  ;;  %v1433_v12 = vadd.f32 %v6037_v58, %v5792_v0 }
 0x149   : > { %v5150_v48 = vpack.c.bf16 %v3660_v11, %v3659_v33  ;;  %v7436_v36 = vunpack.c.h.bf16 %v5820_v16  ;;  %v7437_v61 = vunpack.c.h.bf16 %v5823_v17  ;;  %v7438_v43 = vunpack.c.l.bf16 %v5830_v22  ;;  %v6177_v17 = vpop.f32.mrb[20].mxu0 }
 0x14a   : > { %v2383_v20 = vadd.f32 3.0, %v2127_v15  ;;  %v2385_v6 = vadd.f32 3.0, %v2129_v59  ;;  %v5151_v60 = vpack.c.bf16 %v3662_v5, %v3661_v38  ;;  %v7439_v25 = vunpack.c.l.bf16 %v5833_v23  ;;  %v6179_v38 = vpop.f32.mrb[20].mxu1 }
 0x14b   : > { %v2128_v13 = vadd.f32 %v7436_v36, %v1078_v45  ;;  %v2130_v27 = vadd.f32 %v7437_v61, %v1431_v10  ;;  %v2131_v57 = vadd.f32 %v7438_v43, %v1080_v3  ;;  %4677 = vst [vmem:[%s6022_s13 + $0x30] sm:$0xff] %v5150_v48  ;;  %v1082_v33 = vadd.f32 %v6050_v24, %v5794_v1  ;;  %v6181_v45 = vpop.f32.mrb[21].mxu0  ;;  %v6183_v10 = vpop.f32.mrb[21].mxu1 }
 0x14c   : > { %v2639_v50 = vmax.f32 %v2383_v20, 0.0  ;;  %v2641_v56 = vmax.f32 %v2385_v6, 0.0  ;;  %v2133_v9 = vadd.f32 %v7439_v25, %v1433_v12  ;;  %4678 = vst [vmem:[%s6022_s13 + $0x38] sm:$0xff] %v5151_v60  ;;  %v1435_v16 = vadd.f32 %v6052_v14, %v5796_v2  ;;  %7440 = vst [vmem:[#allocation14_spill] sm:$0xff] %v6179_v38  ;;  %v6189_v48 = vpop.f32.mrb[22].mxu0  ;;  %v6191_v60 = vpop.f32.mrb[22].mxu1 }
 0x14d   : > { %v2384_v58 = vadd.f32 3.0, %v2128_v13  ;;  %v2386_v52 = vadd.f32 3.0, %v2130_v27  ;;  %v2387_v11 = vadd.f32 3.0, %v2131_v57  ;;  %7441 = vst [vmem:[#allocation15_spill] sm:$0xff] %v6181_v45  ;;  %7442 = vst [vmem:[#allocation16_spill] sm:$0xff] %v6183_v10  ;;  %v7443_v3 = vunpack.c.h.bf16 %v5830_v22 }
 0x14e   : > { %v2895_v49 = vmin.f32 %v2639_v50, 6.0  ;;  %v2897_v32 = vmin.f32 %v2641_v56, 6.0  ;;  %v2389_v5 = vadd.f32 3.0, %v2133_v9  ;;  %v7444_v12 = vunpack.c.h.bf16 %v5833_v23  ;;  %7445 = vst [vmem:[#allocation17_spill] sm:$0xff] %v6189_v48  ;;  %7446 = vst [vmem:[#allocation18_spill] sm:$0xff] %v6191_v60 }
 0x14f   : > { %v2640_v20 = vmax.f32 %v2384_v58, 0.0  ;;  %v2642_v6 = vmax.f32 %v2386_v52, 0.0  ;;  %v2132_v24 = vadd.f32 %v7443_v3, %v1082_v33  ;;  %v2643_v50 = vmax.f32 %v2387_v11, 0.0  ;;  %v6193_v58 = vpop.f32.mrb[23].mxu0  ;;  %v6195_v52 = vpop.f32.mrb[23].mxu1 }
 0x150   : > { %v2134_v14 = vadd.f32 %v7444_v12, %v1435_v16  ;;  %v3151_v36 = vmul.f32 0.16666667, %v2895_v49  ;;  %v3153_v61 = vmul.f32 0.16666667, %v2897_v32  ;;  %v2645_v56 = vmax.f32 %v2389_v5, 0.0  ;;  %7447 = vst [vmem:[#allocation19_spill] sm:$0xff] %v6193_v58 }
 0x151   : > { %v2896_v43 = vmin.f32 %v2640_v20, 6.0  ;;  %v2898_v25 = vmin.f32 %v2642_v6, 6.0  ;;  %v2388_v45 = vadd.f32 3.0, %v2132_v24  ;;  %v2899_v23 = vmin.f32 %v2643_v50, 6.0  ;;  %v6197_v38 = vpop.f32.mrb[24].mxu0  ;;  %v6199_v58 = vpop.f32.mrb[24].mxu1 }
 0x152   : > { %v2390_v10 = vadd.f32 3.0, %v2134_v14  ;;  %v3407_v22 = vmul.f32 %v3151_v36, %v2127_v15  ;;  %v3409_v33 = vmul.f32 %v3153_v61, %v2129_v59  ;;  %v2901_v16 = vmin.f32 %v2645_v56, 6.0 }
 0x153   : > { %v3152_v3 = vmul.f32 0.16666667, %v2896_v43  ;;  %v3154_v12 = vmul.f32 0.16666667, %v2898_v25  ;;  %v2644_v48 = vmax.f32 %v2388_v45, 0.0  ;;  %v1086_v50 = vadd.f32 %v6093_v30, %v5790_v63 }
 0x154   : > { %v2646_v60 = vmax.f32 %v2390_v10, 0.0  ;;  %v3663_v49 = vmul.f32 %v3407_v22, %v2127_v15  ;;  %v3665_v32 = vmul.f32 %v3409_v33, %v2129_v59  ;;  %v3155_v11 = vmul.f32 0.16666667, %v2899_v23  ;;  %v6205_v15 = vpop.f32.mrb[25].mxu0  ;;  %v6207_v59 = vpop.f32.mrb[25].mxu1 }
 0x155   : > { %v3157_v5 = vmul.f32 0.16666667, %v2901_v16  ;;  %v3408_v20 = vmul.f32 %v3152_v3, %v2128_v13  ;;  %v3410_v6 = vmul.f32 %v3154_v12, %v2130_v27  ;;  %v2900_v54 = vmin.f32 %v2644_v48, 6.0  ;;  %v6209_v43 = vpop.f32.mrb[26].mxu0  ;;  %v6211_v25 = vpop.f32.mrb[26].mxu1 }
 0x156   : > { %v2902_v53 = vmin.f32 %v2646_v60, 6.0  ;;  %v3411_v36 = vmul.f32 %v3155_v11, %v2131_v57  ;;  %v1439_v45 = vadd.f32 %v6095_v26, %v5792_v0  ;;  %v7448_v30 = vunpack.c.l.bf16 %v5840_v28  ;;  %v6217_v3 = vpop.f32.mrb[27].mxu0 }
 0x157   : > { %v3413_v61 = vmul.f32 %v3157_v5, %v2133_v9  ;;  %v3664_v10 = vmul.f32 %v3408_v20, %v2128_v13  ;;  %v3666_v56 = vmul.f32 %v3410_v6, %v2130_v27  ;;  %v3156_v48 = vmul.f32 0.16666667, %v2900_v54  ;;  %v6219_v13 = vpop.f32.mrb[27].mxu1 }
 0x158   : > { %v3158_v60 = vmul.f32 0.16666667, %v2902_v53  ;;  %v3667_v22 = vmul.f32 %v3411_v36, %v2131_v57  ;;  %v2135_v23 = vadd.f32 %v7448_v30, %v1086_v50  ;;  %v7449_v26 = vunpack.c.l.bf16 %v5843_v29 }
 0x159   : > { %v3669_v33 = vmul.f32 %v3413_v61, %v2133_v9  ;;  %v5152_v54 = vpack.c.bf16 %v3664_v10, %v3663_v49  ;;  %v5153_v53 = vpack.c.bf16 %v3666_v56, %v3665_v32  ;;  %v3412_v27 = vmul.f32 %v3156_v48, %v2132_v24 }
 0x15a   : > { %v2137_v16 = vadd.f32 %v7449_v26, %v1439_v45  ;;  %v3414_v12 = vmul.f32 %v3158_v60, %v2134_v14  ;;  %v2391_v11 = vadd.f32 3.0, %v2135_v23  ;;  %v1088_v57 = vadd.f32 %v6098_v18, %v5794_v1  ;;  %v6239_v60 = vpop.f32.mrb[28].mxu0 }
 0x15b   : > { %v1441_v9 = vadd.f32 %v6100_v19, %v5796_v2  ;;  %4679 = vst [vmem:[%s6022_s13 + $0x40] sm:$0xff] %v5152_v54  ;;  %4680 = vst [vmem:[%s6022_s13 + $0x48] sm:$0xff] %v5153_v53  ;;  %v3668_v20 = vmul.f32 %v3412_v27, %v2132_v24  ;;  %v1090_v36 = vadd.f32 %v6104_v37, %v5790_v63  ;;  %v7450_v50 = vunpack.c.h.bf16 %v5840_v28  ;;  %v6243_v53 = vpop.f32.mrb[29].mxu0 }
 0x15c   : > { %v2393_v5 = vadd.f32 3.0, %v2137_v16  ;;  %v3670_v6 = vmul.f32 %v3414_v12, %v2134_v14  ;;  %v1443_v49 = vadd.f32 %v6106_v39, %v5792_v0  ;;  %v2647_v32 = vmax.f32 %v2391_v11, 0.0  ;;  %v6241_v39 = vpop.f32.mrb[28].mxu1  ;;  %v6253_v11 = vpop.f32.mrb[30].mxu0 }
 0x15d   : > { %v2136_v18 = vadd.f32 %v7450_v50, %v1088_v57  ;;  %v7451_v45 = vunpack.c.h.bf16 %v5843_v29  ;;  %v5154_v10 = vpack.c.bf16 %v3668_v20, %v3667_v22  ;;  %v7452_v24 = vunpack.c.l.bf16 %v5850_v34  ;;  %v6245_v29 = vpop.f32.mrb[29].mxu1 }
 0x15e   : > { %v2649_v61 = vmax.f32 %v2393_v5, 0.0  ;;  %v5155_v56 = vpack.c.bf16 %v3670_v6, %v3669_v33  ;;  %v7453_v37 = vunpack.c.l.bf16 %v5853_v35  ;;  %v2903_v30 = vmin.f32 %v2647_v32, 6.0  ;;  %v6255_v5 = vpop.f32.mrb[30].mxu1 }
 0x15f   : > { %v2138_v19 = vadd.f32 %v7451_v45, %v1441_v9  ;;  %v2139_v14 = vadd.f32 %v7452_v24, %v1090_v36  ;;  %v2392_v28 = vadd.f32 3.0, %v2136_v18  ;;  %4681 = vst [vmem:[%s6022_s13 + $0x50] sm:$0xff] %v5154_v10  ;;  %v1092_v27 = vadd.f32 %v6108_v8, %v5794_v1  ;;  %7454 = vst [vmem:[#allocation20_spill] sm:$0xff] %v6255_v5  ;;  %v6261_v8 = vpop.f32.mrb[31].mxu0  ;;  %v6263_v10 = vpop.f32.mrb[31].mxu1 }
 0x160   : > { %v2141_v48 = vadd.f32 %v7453_v37, %v1443_v49  ;;  %v2905_v26 = vmin.f32 %v2649_v61, 6.0  ;;  %4682 = vst [vmem:[%s6022_s13 + $0x58] sm:$0xff] %v5155_v56  ;;  %v1445_v12 = vadd.f32 %v6110_v31, %v5796_v2  ;;  %v3159_v57 = vmul.f32 0.16666667, %v2903_v30  ;;  %7457 = vst [vmem:[#allocation21_spill] sm:$0xff] %v6261_v8 }
 0x161   : > { %v2394_v54 = vadd.f32 3.0, %v2138_v19  ;;  %v2395_v22 = vadd.f32 3.0, %v2139_v14  ;;  %v2648_v20 = vmax.f32 %v2392_v28, 0.0  ;;  %v7455_v32 = vunpack.c.h.bf16 %v5850_v34 }
 0x162   : > { %v2397_v33 = vadd.f32 3.0, %v2141_v48  ;;  %v3161_v9 = vmul.f32 0.16666667, %v2905_v26  ;;  %v7456_v50 = vunpack.c.h.bf16 %v5853_v35  ;;  %v3415_v31 = vmul.f32 %v3159_v57, %v2135_v23 }
 0x163   : > { %v2650_v6 = vmax.f32 %v2394_v54, 0.0  ;;  %v2651_v36 = vmax.f32 %v2395_v22, 0.0  ;;  %v2140_v61 = vadd.f32 %v7455_v32, %v1092_v27  ;;  %v2904_v24 = vmin.f32 %v2648_v20, 6.0  ;;  %v6269_v20 = vpop.f32.mrb[32].mxu0 }
 0x164   : > { %v2653_v49 = vmax.f32 %v2397_v33, 0.0  ;;  %v2142_v45 = vadd.f32 %v7456_v50, %v1445_v12  ;;  %v3417_v56 = vmul.f32 %v3161_v9, %v2137_v16  ;;  %v3671_v22 = vmul.f32 %v3415_v31, %v2135_v23  ;;  %v6273_v31 = vpop.f32.mrb[33].mxu0 }
 0x165   : > { %v2906_v37 = vmin.f32 %v2650_v6, 6.0  ;;  %v2907_v30 = vmin.f32 %v2651_v36, 6.0  ;;  %v2396_v28 = vadd.f32 3.0, %v2140_v61  ;;  %v3160_v5 = vmul.f32 0.16666667, %v2904_v24  ;;  %v6271_v6 = vpop.f32.mrb[32].mxu1 }
 0x166   : > { %v2909_v26 = vmin.f32 %v2653_v49, 6.0  ;;  %v2398_v54 = vadd.f32 3.0, %v2142_v45  ;;  %v3673_v33 = vmul.f32 %v3417_v56, %v2137_v16  ;;  %v1096_v57 = vadd.f32 %v6120_v4, %v5790_v63  ;;  %v6275_v56 = vpop.f32.mrb[33].mxu1 }
 0x167   : > { %v3162_v34 = vmul.f32 0.16666667, %v2906_v37  ;;  %v3163_v27 = vmul.f32 0.16666667, %v2907_v30  ;;  %v2652_v35 = vmax.f32 %v2396_v28, 0.0  ;;  %v3416_v50 = vmul.f32 %v3160_v5, %v2136_v18  ;;  %v6283_v28 = vpop.f32.mrb[34].mxu1 }
 0x168   : > { %v3165_v32 = vmul.f32 0.16666667, %v2909_v26  ;;  %v2654_v12 = vmax.f32 %v2398_v54, 0.0  ;;  %v1449_v9 = vadd.f32 %v6122_v55, %v5792_v0  ;;  %v7458_v37 = vunpack.c.l.bf16 %v5860_v40  ;;  %v6281_v26 = vpop.f32.mrb[34].mxu0 }
 0x169   : > { %v3418_v8 = vmul.f32 %v3162_v34, %v2138_v19  ;;  %v3419_v23 = vmul.f32 %v3163_v27, %v2139_v14  ;;  %v2908_v36 = vmin.f32 %v2652_v35, 6.0  ;;  %v3672_v5 = vmul.f32 %v3416_v50, %v2136_v18  ;;  %v6285_v35 = vpop.f32.mrb[35].mxu0  ;;  %v6287_v18 = vpop.f32.mrb[35].mxu1 }
 0x16a   : > { %v3421_v16 = vmul.f32 %v3165_v32, %v2141_v48  ;;  %v2910_v49 = vmin.f32 %v2654_v12, 6.0  ;;  %v2143_v4 = vadd.f32 %v7458_v37, %v1096_v57  ;;  %v7459_v30 = vunpack.c.l.bf16 %v5863_v41 }
 0x16b   : > { %v3674_v24 = vmul.f32 %v3418_v8, %v2138_v19  ;;  %v3675_v54 = vmul.f32 %v3419_v23, %v2139_v14  ;;  %v3164_v27 = vmul.f32 0.16666667, %v2908_v36  ;;  %v5156_v19 = vpack.c.bf16 %v3672_v5, %v3671_v22 }
 0x16c   : > { %v2145_v55 = vadd.f32 %v7459_v30, %v1449_v9  ;;  %v3677_v34 = vmul.f32 %v3421_v16, %v2141_v48  ;;  %v3166_v32 = vmul.f32 0.16666667, %v2910_v49  ;;  %v2399_v12 = vadd.f32 3.0, %v2143_v4 }
 0x16d   : > { %v5157_v8 = vpack.c.bf16 %v3674_v24, %v3673_v33  ;;  %v3420_v57 = vmul.f32 %v3164_v27, %v2140_v61  ;;  %v1098_v37 = vadd.f32 %v6130_v51, %v5794_v1  ;;  %v1451_v30 = vadd.f32 %v6132_v21, %v5796_v2  ;;  %4683 = vst [vmem:[%s6022_s13 + $0x60] sm:$0xff] %v5156_v19  ;;  %v6303_v24 = vpop.f32.mrb[36].mxu0  ;;  %v6305_v21 = vpop.f32.mrb[36].mxu1 }
 0x16e   : > { %v2401_v50 = vadd.f32 3.0, %v2145_v55  ;;  %v3422_v9 = vmul.f32 %v3166_v32, %v2142_v45  ;;  %v2655_v14 = vmax.f32 %v2399_v12, 0.0  ;;  %v1100_v23 = vadd.f32 %v6139_v62, %v5790_v63 }
 0x16f   : > { %4684 = vst [vmem:[%s6022_s13 + $0x68] sm:$0xff] %v5157_v8  ;;  %v1453_v22 = vadd.f32 %v6141_v44, %v5792_v0  ;;  %v3676_v33 = vmul.f32 %v3420_v57, %v2140_v61  ;;  %v7460_v36 = vunpack.c.h.bf16 %v5860_v40  ;;  %v7461_v51 = vunpack.c.h.bf16 %v5863_v41  ;;  %v6313_v40 = vpop.f32.mrb[37].mxu1 }
 0x170   : > { %v2657_v48 = vmax.f32 %v2401_v50, 0.0  ;;  %v3678_v16 = vmul.f32 %v3422_v9, %v2142_v45  ;;  %v2911_v27 = vmin.f32 %v2655_v14, 6.0  ;;  %v7462_v62 = vunpack.c.l.bf16 %v5870_v46  ;;  %v6311_v45 = vpop.f32.mrb[37].mxu0  ;;  %7465 = vst [vmem:[#allocation23_spill] sm:$0xff] %v6313_v40  ;;  %v6317_v9 = vpop.f32.mrb[38].mxu1 }
 0x171   : > { %v2144_v49 = vadd.f32 %v7460_v36, %v1098_v37  ;;  %v2146_v5 = vadd.f32 %v7461_v51, %v1451_v30  ;;  %v7463_v44 = vunpack.c.l.bf16 %v5873_v47  ;;  %7464 = vst [vmem:[#allocation22_spill] sm:$0xff] %v6311_v45  ;;  %v5158_v41 = vpack.c.bf16 %v3676_v33, %v3675_v54  ;;  %v6315_v57 = vpop.f32.mrb[38].mxu0  ;;  %7467 = vst [vmem:[#allocation25_spill] sm:$0xff] %v6317_v9  ;;  %v6327_v33 = vpop.f32.mrb[39].mxu1 }
 0x172   : > { %v2913_v32 = vmin.f32 %v2657_v48, 6.0  ;;  %v2147_v19 = vadd.f32 %v7462_v62, %v1100_v23  ;;  %v5159_v8 = vpack.c.bf16 %v3678_v16, %v3677_v34  ;;  %7466 = vst [vmem:[#allocation24_spill] sm:$0xff] %v6315_v57  ;;  %v3167_v37 = vmul.f32 0.16666667, %v2911_v27  ;;  %v6325_v34 = vpop.f32.mrb[39].mxu0  ;;  %7469 = vst [vmem:[#allocation27_spill] sm:$0xff] %v6327_v33 }
 0x173   : > { %v2149_v61 = vadd.f32 %v7463_v44, %v1453_v22  ;;  %v2400_v12 = vadd.f32 3.0, %v2144_v49  ;;  %v2402_v50 = vadd.f32 3.0, %v2146_v5  ;;  %4685 = vst [vmem:[%s6022_s13 + $0x70] sm:$0xff] %v5158_v41  ;;  %v1102_v36 = vadd.f32 %v6147_v7, %v5794_v1  ;;  %7468 = vst [vmem:[#allocation26_spill] sm:$0xff] %v6325_v34 }
 0x174   : > { %v3169_v30 = vmul.f32 0.16666667, %v2913_v32  ;;  %v2403_v14 = vadd.f32 3.0, %v2147_v19  ;;  %4686 = vst [vmem:[%s6022_s13 + $0x78] sm:$0xff] %v5159_v8  ;;  %v1455_v54 = vadd.f32 %v6149_v42, %v5796_v2  ;;  %v3423_v16 = vmul.f32 %v3167_v37, %v2143_v4 }
 0x175   : > { %v2405_v48 = vadd.f32 3.0, %v2149_v61  ;;  %v2656_v23 = vmax.f32 %v2400_v12, 0.0  ;;  %v2658_v22 = vmax.f32 %v2402_v50, 0.0  ;;  %v7470_v41 = vunpack.c.h.bf16 %v5870_v46 }
 0x176   : > { %v3425_v51 = vmul.f32 %v3169_v30, %v2145_v55  ;;  %v2659_v27 = vmax.f32 %v2403_v14, 0.0  ;;  %v7471_v12 = vunpack.c.h.bf16 %v5873_v47  ;;  %v3679_v7 = vmul.f32 %v3423_v16, %v2143_v4  ;;  %v6339_v47 = vpop.f32.mrb[40].mxu1 }
 0x177   : > { %v2661_v32 = vmax.f32 %v2405_v48, 0.0  ;;  %v2912_v62 = vmin.f32 %v2656_v23, 6.0  ;;  %v2914_v44 = vmin.f32 %v2658_v22, 6.0  ;;  %v2148_v8 = vadd.f32 %v7470_v41, %v1102_v36  ;;  %v7472_v48 = vld [vmem:[#allocation14_spill] sm:$0xff]  ;;  %v6337_v23 = vpop.f32.mrb[40].mxu0  ;;  %v6343_v16 = vpop.f32.mrb[41].mxu1 }
 0x178   : > { %v2150_v50 = vadd.f32 %v7471_v12, %v1455_v54  ;;  %v3681_v9 = vmul.f32 %v3425_v51, %v2145_v55  ;;  %v2915_v57 = vmin.f32 %v2659_v27, 6.0  ;;  %v1106_v14 = vadd.f32 %v6177_v17, %v5790_v63  ;;  %7473 = vst [vmem:[#allocation14_spill] sm:$0xff] %v6339_v47  ;;  %v6341_v54 = vpop.f32.mrb[41].mxu0  ;;  %7475 = vst [vmem:[#allocation29_spill] sm:$0xff] %v6343_v16  ;;  %v7476_v27 = vld [vmem:[#allocation2_spill] sm:$0xff] }
 0x179   : > { %v2917_v42 = vmin.f32 %v2661_v32, 6.0  ;;  %v3168_v40 = vmul.f32 0.16666667, %v2912_v62  ;;  %v3170_v34 = vmul.f32 0.16666667, %v2914_v44  ;;  %v2404_v45 = vadd.f32 3.0, %v2148_v8 }
 0x17a   : > { %v2406_v33 = vadd.f32 3.0, %v2150_v50  ;;  %v3171_v37 = vmul.f32 0.16666667, %v2915_v57  ;;  %v1459_v46 = vadd.f32 %v7472_v48, %v5792_v0  ;;  %7474 = vst [vmem:[#allocation28_spill] sm:$0xff] %v6341_v54  ;;  %v7477_v32 = vunpack.c.l.bf16 %v7476_v27  ;;  %v7478_v62 = vld [vmem:[#allocation3_spill] sm:$0xff]  ;;  %v6349_v12 = vpop.f32.mrb[42].mxu0 }
 0x17b   : > { %v3173_v30 = vmul.f32 0.16666667, %v2917_v42  ;;  %v3424_v4 = vmul.f32 %v3168_v40, %v2144_v49  ;;  %v3426_v55 = vmul.f32 %v3170_v34, %v2146_v5  ;;  %v2660_v22 = vmax.f32 %v2404_v45, 0.0  ;;  %7480 = vst [vmem:[#allocation2_spill] sm:$0xff] %v6349_v12  ;;  %v6351_v42 = vpop.f32.mrb[42].mxu1  ;;  %v6353_v48 = vpop.f32.mrb[43].mxu0 }
 0x17c   : > { %v2662_v36 = vmax.f32 %v2406_v33, 0.0  ;;  %v3427_v57 = vmul.f32 %v3171_v37, %v2147_v19  ;;  %v2151_v17 = vadd.f32 %v7477_v32, %v1106_v14  ;;  %v7479_v44 = vunpack.c.l.bf16 %v7478_v62  ;;  %7481 = vst [vmem:[#allocation3_spill] sm:$0xff] %v6351_v42  ;;  %v6355_v37 = vpop.f32.mrb[43].mxu1 }
 0x17d   : > { %v3429_v51 = vmul.f32 %v3173_v30, %v2149_v61  ;;  %v3680_v40 = vmul.f32 %v3424_v4, %v2144_v49  ;;  %v3682_v34 = vmul.f32 %v3426_v55, %v2146_v5  ;;  %v2916_v45 = vmin.f32 %v2660_v22, 6.0  ;;  %v7482_v49 = vld [vmem:[#allocation15_spill] sm:$0xff]  ;;  %v7483_v4 = vld [vmem:[#allocation16_spill] sm:$0xff] }
 0x17e   : > { %v2153_v41 = vadd.f32 %v7479_v44, %v1459_v46  ;;  %v2918_v33 = vmin.f32 %v2662_v36, 6.0  ;;  %v3683_v30 = vmul.f32 %v3427_v57, %v2147_v19  ;;  %v2407_v14 = vadd.f32 3.0, %v2151_v17  ;;  %v7484_v19 = vld [vmem:[#allocation17_spill] sm:$0xff]  ;;  %v6367_v57 = vpop.f32.mrb[44].mxu0 }
 0x17f   : > { %v3685_v16 = vmul.f32 %v3429_v51, %v2149_v61  ;;  %v5160_v54 = vpack.c.bf16 %v3680_v40, %v3679_v7  ;;  %v5161_v46 = vpack.c.bf16 %v3682_v34, %v3681_v9  ;;  %v3172_v44 = vmul.f32 0.16666667, %v2916_v45  ;;  %v7485_v7 = vld [vmem:[#allocation18_spill] sm:$0xff]  ;;  %7486 = vst [vmem:[#allocation15_spill] sm:$0xff] %v6367_v57  ;;  %v6369_v51 = vpop.f32.mrb[44].mxu1 }
 0x180   : > { %v2409_v32 = vadd.f32 3.0, %v2153_v41  ;;  %v3174_v12 = vmul.f32 0.16666667, %v2918_v33  ;;  %v2663_v47 = vmax.f32 %v2407_v14, 0.0  ;;  %v1108_v5 = vadd.f32 %v7482_v49, %v5794_v1  ;;  %7487 = vst [vmem:[#allocation16_spill] sm:$0xff] %v6369_v51  ;;  %v7491_v49 = vld [vmem:[#allocation4_spill] sm:$0xff] }
 0x181   : > { %v1461_v55 = vadd.f32 %v7483_v4, %v5796_v2  ;;  %4687 = vst [vmem:[%s6022_s13 + $0x80] sm:$0xff] %v5160_v54  ;;  %4688 = vst [vmem:[%s6022_s13 + $0x88] sm:$0xff] %v5161_v46  ;;  %v3428_v22 = vmul.f32 %v3172_v44, %v2148_v8  ;;  %v1110_v61 = vadd.f32 %v7484_v19, %v5790_v63  ;;  %v7488_v45 = vunpack.c.h.bf16 %v7476_v27 }
 0x182   : > { %v2665_v42 = vmax.f32 %v2409_v32, 0.0  ;;  %v3430_v36 = vmul.f32 %v3174_v12, %v2150_v50  ;;  %v1463_v9 = vadd.f32 %v7485_v7, %v5792_v0  ;;  %v2919_v40 = vmin.f32 %v2663_v47, 6.0  ;;  %v6375_v32 = vpop.f32.mrb[45].mxu0  ;;  %v6377_v12 = vpop.f32.mrb[45].mxu1  ;;  %v7493_v7 = vld [vmem:[#allocation5_spill] sm:$0xff] }
 0x183   : > { %v2152_v33 = vadd.f32 %v7488_v45, %v1108_v5  ;;  %v7489_v54 = vunpack.c.h.bf16 %v7478_v62  ;;  %7490 = vst [vmem:[#allocation17_spill] sm:$0xff] %v6377_v12  ;;  %v3684_v46 = vmul.f32 %v3428_v22, %v2148_v8  ;;  %v7492_v4 = vunpack.c.l.bf16 %v7491_v49  ;;  %v6383_v47 = vpop.f32.mrb[46].mxu0  ;;  %v6385_v27 = vpop.f32.mrb[46].mxu1 }
 0x184   : > { %v2921_v34 = vmin.f32 %v2665_v42, 6.0  ;;  %v3686_v44 = vmul.f32 %v3430_v36, %v2150_v50  ;;  %v7494_v57 = vunpack.c.l.bf16 %v7493_v7  ;;  %7495 = vst [vmem:[#allocation18_spill] sm:$0xff] %v6383_v47  ;;  %7496 = vst [vmem:[#allocation4_spill] sm:$0xff] %v6385_v27  ;;  %v3175_v62 = vmul.f32 0.16666667, %v2919_v40  ;;  %v6387_v22 = vpop.f32.mrb[47].mxu0 }
 0x185   : > { %v2154_v14 = vadd.f32 %v7489_v54, %v1461_v55  ;;  %v2155_v19 = vadd.f32 %v7492_v4, %v1110_v61  ;;  %v2408_v5 = vadd.f32 3.0, %v2152_v33  ;;  %v5162_v45 = vpack.c.bf16 %v3684_v46, %v3683_v30  ;;  %7497 = vst [vmem:[#allocation5_spill] sm:$0xff] %v6387_v22  ;;  %v6389_v36 = vpop.f32.mrb[47].mxu1  ;;  %v7499_v40 = vld [vmem:[#allocation19_spill] sm:$0xff] }
 0x186   : > { %v2157_v51 = vadd.f32 %v7494_v57, %v1463_v9  ;;  %v3177_v42 = vmul.f32 0.16666667, %v2921_v34  ;;  %v5163_v54 = vpack.c.bf16 %v3686_v44, %v3685_v16  ;;  %7498 = vst [vmem:[#allocation30_spill] sm:$0xff] %v6389_v36  ;;  %v3431_v61 = vmul.f32 %v3175_v62, %v2151_v17 }
 0x187   : > { %v2410_v55 = vadd.f32 3.0, %v2154_v14  ;;  %v2411_v8 = vadd.f32 3.0, %v2155_v19  ;;  %v2664_v57 = vmax.f32 %v2408_v5, 0.0  ;;  %4689 = vst [vmem:[%s6022_s13 + $0x90] sm:$0xff] %v5162_v45  ;;  %v1112_v34 = vadd.f32 %v7499_v40, %v5794_v1  ;;  %v6401_v45 = vpop.f32.mrb[48].mxu0 }
 0x188   : > { %v2413_v50 = vadd.f32 3.0, %v2157_v51  ;;  %v3433_v9 = vmul.f32 %v3177_v42, %v2153_v41  ;;  %4690 = vst [vmem:[%s6022_s13 + $0x98] sm:$0xff] %v5163_v54  ;;  %v1465_v16 = vadd.f32 %v6195_v52, %v5796_v2  ;;  %v3687_v30 = vmul.f32 %v3431_v61, %v2151_v17  ;;  %7502 = vst [vmem:[#allocation19_spill] sm:$0xff] %v6401_v45  ;;  %v6403_v54 = vpop.f32.mrb[48].mxu1 }
 0x189   : > { %v2666_v4 = vmax.f32 %v2410_v55, 0.0  ;;  %v2667_v27 = vmax.f32 %v2411_v8, 0.0  ;;  %v2920_v44 = vmin.f32 %v2664_v57, 6.0  ;;  %v7500_v62 = vunpack.c.h.bf16 %v7491_v49  ;;  %7503 = vst [vmem:[#allocation31_spill] sm:$0xff] %v6403_v54 }
 0x18a   : > { %v2669_v47 = vmax.f32 %v2413_v50, 0.0  ;;  %v3689_v46 = vmul.f32 %v3433_v9, %v2153_v41  ;;  %v7501_v5 = vunpack.c.h.bf16 %v7493_v7  ;;  %v1116_v52 = vadd.f32 %v6197_v38, %v5790_v63  ;;  %v6409_v41 = vpop.f32.mrb[49].mxu0 }
 0x18b   : > { %v2922_v22 = vmin.f32 %v2666_v4, 6.0  ;;  %v2923_v12 = vmin.f32 %v2667_v27, 6.0  ;;  %v2156_v42 = vadd.f32 %v7500_v62, %v1112_v34  ;;  %v3176_v8 = vmul.f32 0.16666667, %v2920_v44  ;;  %7504 = vst [vmem:[#allocation32_spill] sm:$0xff] %v6409_v41  ;;  %v7506_v4 = vld [vmem:[#allocation6_spill] sm:$0xff] }
 0x18c   : > { %v2925_v36 = vmin.f32 %v2669_v47, 6.0  ;;  %v2158_v55 = vadd.f32 %v7501_v5, %v1465_v16  ;;  %v1469_v17 = vadd.f32 %v6199_v58, %v5792_v0  ;;  %v6411_v47 = vpop.f32.mrb[49].mxu1  ;;  %v7507_v40 = vunpack.c.l.bf16 %v7506_v4  ;;  %v6417_v38 = vpop.f32.mrb[50].mxu0 }
 0x18d   : > { %v3178_v50 = vmul.f32 0.16666667, %v2922_v22  ;;  %7505 = vst [vmem:[#allocation33_spill] sm:$0xff] %v6411_v47  ;;  %v3179_v49 = vmul.f32 0.16666667, %v2923_v12  ;;  %v2412_v7 = vadd.f32 3.0, %v2156_v42  ;;  %v3432_v9 = vmul.f32 %v3176_v8, %v2152_v33 }
 0x18e   : > { %v3181_v27 = vmul.f32 0.16666667, %v2925_v36  ;;  %v2414_v61 = vadd.f32 3.0, %v2158_v55  ;;  %v2159_v34 = vadd.f32 %v7507_v40, %v1116_v52  ;;  %v7508_v22 = vld [vmem:[#allocation7_spill] sm:$0xff]  ;;  %7510 = vst [vmem:[#allocation6_spill] sm:$0xff] %v6417_v38  ;;  %v6419_v62 = vpop.f32.mrb[50].mxu1 }
 0x18f   : > { %v3434_v57 = vmul.f32 %v3178_v50, %v2154_v14  ;;  %v7509_v16 = vunpack.c.l.bf16 %v7508_v22  ;;  %7511 = vst [vmem:[#allocation7_spill] sm:$0xff] %v6419_v62  ;;  %v3435_v58 = vmul.f32 %v3179_v49, %v2155_v19  ;;  %v2668_v41 = vmax.f32 %v2412_v7, 0.0  ;;  %v6421_v12 = vpop.f32.mrb[51].mxu0  ;;  %v6423_v36 = vpop.f32.mrb[51].mxu1 }
 0x190   : > { %v3437_v5 = vmul.f32 %v3181_v27, %v2157_v51  ;;  %v2670_v47 = vmax.f32 %v2414_v61, 0.0  ;;  %7512 = vst [vmem:[#allocation34_spill] sm:$0xff] %v6421_v12  ;;  %v3688_v8 = vmul.f32 %v3432_v9, %v2152_v33  ;;  %v2415_v54 = vadd.f32 3.0, %v2159_v34  ;;  %v6431_v9 = vpop.f32.mrb[52].mxu1 }
 0x191   : > { %v2161_v44 = vadd.f32 %v7509_v16, %v1469_v17  ;;  %v3690_v50 = vmul.f32 %v3434_v57, %v2154_v14  ;;  %v3691_v40 = vmul.f32 %v3435_v58, %v2155_v19  ;;  %v2924_v16 = vmin.f32 %v2668_v41, 6.0  ;;  %v6429_v14 = vpop.f32.mrb[52].mxu0 }
 0x192   : > { %v3693_v17 = vmul.f32 %v3437_v5, %v2157_v51  ;;  %v2926_v38 = vmin.f32 %v2670_v47, 6.0  ;;  %v5164_v45 = vpack.c.bf16 %v3688_v8, %v3687_v30  ;;  %v2671_v49 = vmax.f32 %v2415_v54, 0.0  ;;  %v6439_v54 = vpop.f32.mrb[53].mxu0 }
 0x193   : > { %v2417_v52 = vadd.f32 3.0, %v2161_v44  ;;  %v5165_v62 = vpack.c.bf16 %v3690_v50, %v3689_v46  ;;  %v3180_v7 = vmul.f32 0.16666667, %v2924_v16  ;;  %v1118_v12 = vadd.f32 %v6205_v15, %v5794_v1  ;;  %v6441_v15 = vpop.f32.mrb[53].mxu1 }
 0x194   : > { %v3182_v61 = vmul.f32 0.16666667, %v2926_v38  ;;  %v1471_v33 = vadd.f32 %v6207_v59, %v5796_v2  ;;  %4691 = vst [vmem:[%s6022_s13 + $0xa0] sm:$0xff] %v5164_v45  ;;  %v2927_v51 = vmin.f32 %v2671_v49, 6.0  ;;  %v1120_v30 = vadd.f32 %v6209_v43, %v5790_v63  ;;  %7513 = vst [vmem:[#allocation35_spill] sm:$0xff] %v6441_v15  ;;  %v7517_v43 = vld [vmem:[#allocation8_spill] sm:$0xff] }
 0x195   : > { %v2673_v27 = vmax.f32 %v2417_v52, 0.0  ;;  %4692 = vst [vmem:[%s6022_s13 + $0xa8] sm:$0xff] %v5165_v62  ;;  %v1473_v46 = vadd.f32 %v6211_v25, %v5792_v0  ;;  %v3436_v41 = vmul.f32 %v3180_v7, %v2156_v42  ;;  %v7514_v47 = vunpack.c.h.bf16 %v7506_v4  ;;  %v6447_v62 = vpop.f32.mrb[54].mxu0  ;;  %v7519_v25 = vld [vmem:[#allocation9_spill] sm:$0xff]  ;;  %v6453_v49 = vpop.f32.mrb[54].mxu1 }
 0x196   : > { %v3438_v59 = vmul.f32 %v3182_v61, %v2158_v55  ;;  %v7515_v45 = vunpack.c.h.bf16 %v7508_v22  ;;  %7516 = vst [vmem:[#allocation36_spill] sm:$0xff] %v6447_v62  ;;  %v3183_v58 = vmul.f32 0.16666667, %v2927_v51  ;;  %v7518_v8 = vunpack.c.l.bf16 %v7517_v43 }
 0x197   : > { %v2929_v19 = vmin.f32 %v2673_v27, 6.0  ;;  %v2160_v57 = vadd.f32 %v7514_v47, %v1118_v12  ;;  %v7520_v52 = vunpack.c.l.bf16 %v7519_v25  ;;  %v3692_v27 = vmul.f32 %v3436_v41, %v2156_v42 }
 0x198   : > { %v2162_v38 = vadd.f32 %v7515_v45, %v1471_v33  ;;  %v2163_v50 = vadd.f32 %v7518_v8, %v1120_v30  ;;  %v3694_v7 = vmul.f32 %v3438_v59, %v2158_v55  ;;  %v3439_v22 = vmul.f32 %v3183_v58, %v2159_v34  ;;  %v6467_v58 = vpop.f32.mrb[55].mxu1 }
 0x199   : > { %v3185_v5 = vmul.f32 0.16666667, %v2929_v19  ;;  %v2165_v16 = vadd.f32 %v7520_v52, %v1473_v46  ;;  %v2416_v4 = vadd.f32 3.0, %v2160_v57  ;;  %v5166_v51 = vpack.c.bf16 %v3692_v27, %v3691_v40  ;;  %v6455_v52 = vpop.f32.mrb[55].mxu0 }
 0x19a   : > { %v2418_v12 = vadd.f32 3.0, %v2162_v38  ;;  %v2419_v33 = vadd.f32 3.0, %v2163_v50  ;;  %v5167_v19 = vpack.c.bf16 %v3694_v7, %v3693_v17  ;;  %v3695_v30 = vmul.f32 %v3439_v22, %v2159_v34 }
 0x19b   : > { %v3441_v61 = vmul.f32 %v3185_v5, %v2161_v44  ;;  %v2421_v47 = vadd.f32 3.0, %v2165_v16  ;;  %v2672_v45 = vmax.f32 %v2416_v4, 0.0  ;;  %4693 = vst [vmem:[%s6022_s13 + $0xb0] sm:$0xff] %v5166_v51  ;;  %v1122_v41 = vadd.f32 %v6217_v3, %v5794_v1 }
 0x19c   : > { %v2674_v62 = vmax.f32 %v2418_v12, 0.0  ;;  %v2675_v15 = vmax.f32 %v2419_v33, 0.0  ;;  %4694 = vst [vmem:[%s6022_s13 + $0xb8] sm:$0xff] %v5167_v19  ;;  %v1475_v59 = vadd.f32 %v6219_v13, %v5796_v2  ;;  %v1126_v34 = vadd.f32 %v6239_v60, %v5790_v63  ;;  %v7525_v33 = vld [vmem:[#allocation11_spill] sm:$0xff] }
 0x19d   : > { %v3697_v8 = vmul.f32 %v3441_v61, %v2161_v44  ;;  %v2677_v46 = vmax.f32 %v2421_v47, 0.0  ;;  %v2928_v42 = vmin.f32 %v2672_v45, 6.0  ;;  %v1479_v44 = vadd.f32 %v6241_v39, %v5792_v0 }
 0x19e   : > { %v2930_v55 = vmin.f32 %v2674_v62, 6.0  ;;  %v2931_v40 = vmin.f32 %v2675_v15, 6.0  ;;  %v7521_v62 = vunpack.c.h.bf16 %v7517_v43  ;;  %v7522_v3 = vunpack.c.h.bf16 %v7519_v25  ;;  %v7523_v15 = vld [vmem:[#allocation10_spill] sm:$0xff] }
 0x19f   : > { %v2933_v17 = vmin.f32 %v2677_v46, 6.0  ;;  %v3184_v5 = vmul.f32 0.16666667, %v2928_v42  ;;  %v7524_v22 = vunpack.c.l.bf16 %v7523_v15  ;;  %v7526_v60 = vunpack.c.l.bf16 %v7525_v33 }
 0x1a0   : > { %v3186_v27 = vmul.f32 0.16666667, %v2930_v55  ;;  %v2164_v7 = vadd.f32 %v7521_v62, %v1122_v41  ;;  %v2166_v4 = vadd.f32 %v7522_v3, %v1475_v59  ;;  %v3187_v12 = vmul.f32 0.16666667, %v2931_v40 }
 0x1a1   : > { %v3189_v13 = vmul.f32 0.16666667, %v2933_v17  ;;  %v2167_v61 = vadd.f32 %v7524_v22, %v1126_v34  ;;  %v2169_v47 = vadd.f32 %v7526_v60, %v1479_v44  ;;  %v3440_v51 = vmul.f32 %v3184_v5, %v2160_v57  ;;  %v6477_v22 = vpop.f32.mrb[56].mxu0  ;;  %v6479_v44 = vpop.f32.mrb[56].mxu1 }
 0x1a2   : > { %v3442_v39 = vmul.f32 %v3186_v27, %v2162_v38  ;;  %v2420_v19 = vadd.f32 3.0, %v2164_v7  ;;  %v2422_v45 = vadd.f32 3.0, %v2166_v4  ;;  %v3443_v46 = vmul.f32 %v3187_v12, %v2163_v50  ;;  %v6481_v60 = vpop.f32.mrb[57].mxu0 }
 0x1a3   : > { %v3445_v42 = vmul.f32 %v3189_v13, %v2165_v16  ;;  %v2423_v55 = vadd.f32 3.0, %v2167_v61  ;;  %v2425_v43 = vadd.f32 3.0, %v2169_v47  ;;  %v3696_v41 = vmul.f32 %v3440_v51, %v2160_v57 }
 0x1a4   : > { %v3698_v62 = vmul.f32 %v3442_v39, %v2162_v38  ;;  %v2676_v25 = vmax.f32 %v2420_v19, 0.0  ;;  %v2678_v59 = vmax.f32 %v2422_v45, 0.0  ;;  %v3699_v40 = vmul.f32 %v3443_v46, %v2163_v50 }
 0x1a5   : > { %v3701_v17 = vmul.f32 %v3445_v42, %v2165_v16  ;;  %v2679_v34 = vmax.f32 %v2423_v55, 0.0  ;;  %v2681_v3 = vmax.f32 %v2425_v43, 0.0  ;;  %v5168_v5 = vpack.c.bf16 %v3696_v41, %v3695_v30  ;;  %v6497_v41 = vpop.f32.mrb[57].mxu1 }
 0x1a6   : > { %v5169_v27 = vpack.c.bf16 %v3698_v62, %v3697_v8  ;;  %v2932_v12 = vmin.f32 %v2676_v25, 6.0  ;;  %v2934_v13 = vmin.f32 %v2678_v59, 6.0  ;;  %v1128_v51 = vadd.f32 %v6243_v53, %v5794_v1  ;;  %v7527_v8 = vld [vmem:[#allocation20_spill] sm:$0xff] }
 0x1a7   : > { %v2935_v57 = vmin.f32 %v2679_v34, 6.0  ;;  %v2937_v38 = vmin.f32 %v2681_v3, 6.0  ;;  %v1481_v50 = vadd.f32 %v6245_v29, %v5796_v2  ;;  %4695 = vst [vmem:[%s6022_s13 + $0xc0] sm:$0xff] %v5168_v5  ;;  %v1130_v30 = vadd.f32 %v6253_v11, %v5790_v63  ;;  %v7530_v25 = vld [vmem:[#allocation12_spill] sm:$0xff]  ;;  %v7532_v3 = vld [vmem:[#allocation13_spill] sm:$0xff] }
 0x1a8   : > { %4696 = vst [vmem:[%s6022_s13 + $0xc8] sm:$0xff] %v5169_v27  ;;  %v3188_v16 = vmul.f32 0.16666667, %v2932_v12  ;;  %v3190_v39 = vmul.f32 0.16666667, %v2934_v13  ;;  %v1483_v19 = vadd.f32 %v7527_v8, %v5792_v0  ;;  %v7528_v42 = vunpack.c.h.bf16 %v7523_v15  ;;  %v6503_v15 = vpop.f32.mrb[58].mxu0 }
 0x1a9   : > { %v3191_v45 = vmul.f32 0.16666667, %v2935_v57  ;;  %v3193_v46 = vmul.f32 0.16666667, %v2937_v38  ;;  %v7529_v53 = vunpack.c.h.bf16 %v7525_v33  ;;  %v7531_v59 = vunpack.c.l.bf16 %v7530_v25 }
 0x1aa   : > { %v2168_v55 = vadd.f32 %v7528_v42, %v1128_v51  ;;  %v3444_v29 = vmul.f32 %v3188_v16, %v2164_v7  ;;  %v3446_v62 = vmul.f32 %v3190_v39, %v2166_v4  ;;  %v7533_v11 = vunpack.c.l.bf16 %v7532_v3  ;;  %v6505_v16 = vpop.f32.mrb[58].mxu1 }
 0x1ab   : > { %v2170_v43 = vadd.f32 %v7529_v53, %v1481_v50  ;;  %v2171_v34 = vadd.f32 %v7531_v59, %v1130_v30  ;;  %v3447_v27 = vmul.f32 %v3191_v45, %v2167_v61  ;;  %v3449_v12 = vmul.f32 %v3193_v46, %v2169_v47  ;;  %v6508_v53 = vld [vmem:[%s5772_s8 + $0x100] sm:$0xff] }
 0x1ac   : > { %v2173_v5 = vadd.f32 %v7533_v11, %v1483_v19  ;;  %v2424_v13 = vadd.f32 3.0, %v2168_v55  ;;  %v3700_v38 = vmul.f32 %v3444_v29, %v2164_v7  ;;  %v3702_v33 = vmul.f32 %v3446_v62, %v2166_v4  ;;  %v7534_v4 = vld [vmem:[#allocation21_spill] sm:$0xff] }
 0x1ad   : > { %v2426_v57 = vadd.f32 3.0, %v2170_v43  ;;  %v2427_v51 = vadd.f32 3.0, %v2171_v34  ;;  %v3703_v39 = vmul.f32 %v3447_v27, %v2167_v61  ;;  %v3705_v30 = vmul.f32 %v3449_v12, %v2169_v47 }
 0x1ae   : > { %v2429_v50 = vadd.f32 3.0, %v2173_v5  ;;  %v2680_v8 = vmax.f32 %v2424_v13, 0.0  ;;  %v5170_v19 = vpack.c.bf16 %v3700_v38, %v3699_v40  ;;  %v5171_v45 = vpack.c.bf16 %v3702_v33, %v3701_v17  ;;  %v6519_v17 = vpop.f32.mrb[59].mxu0 }
 0x1af   : > { %v2682_v42 = vmax.f32 %v2426_v57, 0.0  ;;  %v2683_v46 = vmax.f32 %v2427_v51, 0.0  ;;  %v1132_v29 = vadd.f32 %v7534_v4, %v5794_v1  ;;  %v1485_v62 = vadd.f32 %v6263_v10, %v5796_v2  ;;  %7535 = vst [vmem:[#allocation8_spill] sm:$0xff] %v6519_v17  ;;  %v1760_v10 = vld [vmem:[%s5772_s8 + $0x108] sm:$0xff] }
 0x1b0   : > { %v2685_v59 = vmax.f32 %v2429_v50, 0.0  ;;  %v2936_v11 = vmin.f32 %v2680_v8, 6.0  ;;  %4697 = vst [vmem:[%s6022_s13 + $0xd0] sm:$0xff] %v5170_v19  ;;  %4698 = vst [vmem:[%s6022_s13 + $0xd8] sm:$0xff] %v5171_v45  ;;  %v1136_v27 = vadd.f32 %v6269_v20, %v5790_v63  ;;  %v1919_v40 = vunpack.c.l.bf16 %v6508_v53  ;;  %v6528_v20 = vpop.f32.mrb[59].mxu1 }
 0x1b1   : > { %v2938_v7 = vmin.f32 %v2682_v42, 6.0  ;;  %v2939_v61 = vmin.f32 %v2683_v46, 6.0  ;;  %v7536_v57 = vunpack.c.h.bf16 %v7530_v25  ;;  %v7537_v33 = vunpack.c.h.bf16 %v7532_v3  ;;  %7538 = vst [vmem:[#allocation9_spill] sm:$0xff] %v6528_v20 }
 0x1b2   : > { %v2941_v47 = vmin.f32 %v2685_v59, 6.0  ;;  %v3192_v12 = vmul.f32 0.16666667, %v2936_v11  ;;  %v2175_v42 = vadd.f32 %v1919_v40, %v1136_v27  ;;  %v1489_v19 = vadd.f32 %v6271_v6, %v5792_v0 }
 0x1b3   : > { %v3194_v13 = vmul.f32 0.16666667, %v2938_v7  ;;  %v2172_v38 = vadd.f32 %v7536_v57, %v1132_v29  ;;  %v2174_v51 = vadd.f32 %v7537_v33, %v1485_v62  ;;  %v3195_v50 = vmul.f32 0.16666667, %v2939_v61 }
 0x1b4   : > { %v3197_v8 = vmul.f32 0.16666667, %v2941_v47  ;;  %v3448_v45 = vmul.f32 %v3192_v12, %v2168_v55  ;;  %v2431_v25 = vadd.f32 3.0, %v2175_v42  ;;  %v1921_v29 = vunpack.c.l.bf16 %v1760_v10 }
 0x1b5   : > { %v3450_v46 = vmul.f32 %v3194_v13, %v2170_v43  ;;  %v2428_v59 = vadd.f32 3.0, %v2172_v38  ;;  %v2430_v11 = vadd.f32 3.0, %v2174_v51  ;;  %v3451_v7 = vmul.f32 %v3195_v50, %v2171_v34 }
 0x1b6   : > { %v3453_v4 = vmul.f32 %v3197_v8, %v2173_v5  ;;  %v3704_v57 = vmul.f32 %v3448_v45, %v2168_v55  ;;  %v2687_v6 = vmax.f32 %v2431_v25, 0.0  ;;  %v2177_v40 = vadd.f32 %v1921_v29, %v1489_v19  ;;  %v6534_v45 = vpop.f32.mrb[60].mxu0 }
 0x1b7   : > { %v3706_v3 = vmul.f32 %v3450_v46, %v2170_v43  ;;  %v2684_v62 = vmax.f32 %v2428_v59, 0.0  ;;  %v2686_v61 = vmax.f32 %v2430_v11, 0.0  ;;  %v3707_v47 = vmul.f32 %v3451_v7, %v2171_v34  ;;  %v1761_v43 = vld [vmem:[%s5772_s8 + $0x110] sm:$0xff]  ;;  %v6536_v46 = vpop.f32.mrb[60].mxu1  ;;  %v6542_v19 = vpop.f32.mrb[61].mxu0 }
 0x1b8   : > { %v3709_v27 = vmul.f32 %v3453_v4, %v2173_v5  ;;  %v5172_v33 = vpack.c.bf16 %v3704_v57, %v3703_v39  ;;  %v2943_v17 = vmin.f32 %v2687_v6, 6.0  ;;  %v2433_v50 = vadd.f32 3.0, %v2177_v40  ;;  %v1762_v57 = vld [vmem:[%s5772_s8 + $0x118] sm:$0xff] }
 0x1b9   : > { %v5173_v12 = vpack.c.bf16 %v3706_v3, %v3705_v30  ;;  %v2940_v13 = vmin.f32 %v2684_v62, 6.0  ;;  %v2942_v20 = vmin.f32 %v2686_v61, 6.0  ;;  %v1138_v8 = vadd.f32 %v6273_v31, %v5794_v1 }
 0x1ba   : > { %v1920_v55 = vunpack.c.h.bf16 %v6508_v53  ;;  %4699 = vst [vmem:[%s6022_s13 + $0xe0] sm:$0xff] %v5172_v33  ;;  %v1491_v39 = vadd.f32 %v6275_v56, %v5796_v2  ;;  %v1922_v30 = vunpack.c.h.bf16 %v1760_v10  ;;  %v3199_v59 = vmul.f32 0.16666667, %v2943_v17  ;;  %v6549_v10 = vpop.f32.mrb[61].mxu1 }
 0x1bb   : > { %4700 = vst [vmem:[%s6022_s13 + $0xe8] sm:$0xff] %v5173_v12  ;;  %v3196_v34 = vmul.f32 0.16666667, %v2940_v13  ;;  %v3198_v5 = vmul.f32 0.16666667, %v2942_v20  ;;  %v2689_v31 = vmax.f32 %v2433_v50, 0.0  ;;  %v1140_v53 = vadd.f32 %v6281_v26, %v5790_v63 }
 0x1bc   : > { %v2176_v11 = vadd.f32 %v1920_v55, %v1138_v8  ;;  %v2178_v25 = vadd.f32 %v1922_v30, %v1491_v39  ;;  %v1923_v29 = vunpack.c.l.bf16 %v1761_v43  ;;  %v3455_v3 = vmul.f32 %v3199_v59, %v2175_v42  ;;  %v6551_v8 = vpop.f32.mrb[62].mxu0 }
 0x1bd   : > { %v3452_v7 = vmul.f32 %v3196_v34, %v2172_v38  ;;  %v3454_v4 = vmul.f32 %v3198_v5, %v2174_v51  ;;  %v2945_v62 = vmin.f32 %v2689_v31, 6.0  ;;  %v1493_v56 = vadd.f32 %v6283_v28, %v5792_v0  ;;  %v6553_v28 = vpop.f32.mrb[62].mxu1 }
 0x1be   : > { %v2432_v20 = vadd.f32 3.0, %v2176_v11  ;;  %v2434_v6 = vadd.f32 3.0, %v2178_v25  ;;  %v2179_v33 = vadd.f32 %v1923_v29, %v1140_v53  ;;  %v3711_v26 = vmul.f32 %v3455_v3, %v2175_v42 }
 0x1bf   : > { %v3708_v61 = vmul.f32 %v3452_v7, %v2172_v38  ;;  %v3710_v17 = vmul.f32 %v3454_v4, %v2174_v51  ;;  %v3201_v12 = vmul.f32 0.16666667, %v2945_v62  ;;  %v1925_v50 = vunpack.c.l.bf16 %v1762_v57 }
 0x1c0   : > { %v2688_v13 = vmax.f32 %v2432_v20, 0.0  ;;  %v2690_v5 = vmax.f32 %v2434_v6, 0.0  ;;  %v2435_v39 = vadd.f32 3.0, %v2179_v33  ;;  %v1142_v59 = vadd.f32 %v6285_v35, %v5794_v1 }
 0x1c1   : > { %v5174_v55 = vpack.c.bf16 %v3708_v61, %v3707_v47  ;;  %v5175_v34 = vpack.c.bf16 %v3710_v17, %v3709_v27  ;;  %v3457_v30 = vmul.f32 %v3201_v12, %v2177_v40  ;;  %v2181_v51 = vadd.f32 %v1925_v50, %v1493_v56  ;;  %v1763_v27 = vld [vmem:[%s5772_s8 + $0x120] sm:$0xff]  ;;  %v6564_v61 = vpop.f32.mrb[63].mxu0 }
 0x1c2   : > { %v2944_v38 = vmin.f32 %v2688_v13, 6.0  ;;  %v2946_v42 = vmin.f32 %v2690_v5, 6.0  ;;  %v2691_v31 = vmax.f32 %v2435_v39, 0.0  ;;  %v1924_v53 = vunpack.c.h.bf16 %v1761_v43  ;;  %v1764_v13 = vld [vmem:[%s5772_s8 + $0x128] sm:$0xff] }
 0x1c3   : > { %4701 = vst [vmem:[%s6022_s13 + $0xf0] sm:$0xff] %v5174_v55  ;;  %4702 = vst [vmem:[%s6022_s13 + $0xf8] sm:$0xff] %v5175_v34  ;;  %v1495_v47 = vadd.f32 %v6287_v18, %v5796_v2  ;;  %v3713_v7 = vmul.f32 %v3457_v30, %v2177_v40  ;;  %v2437_v29 = vadd.f32 3.0, %v2181_v51  ;;  %v1926_v3 = vunpack.c.h.bf16 %v1762_v57  ;;  %v6569_v57 = vpop.f32.mrb[63].mxu1 }
 0x1c4   : > { %v3200_v4 = vmul.f32 0.16666667, %v2944_v38  ;;  %v3202_v62 = vmul.f32 0.16666667, %v2946_v42  ;;  %v2947_v20 = vmin.f32 %v2691_v31, 6.0  ;;  %v2180_v56 = vadd.f32 %v1924_v53, %v1142_v59 }
 0x1c5   : > { %v1146_v35 = vadd.f32 %v6303_v24, %v5790_v63  ;;  %v2693_v6 = vmax.f32 %v2437_v29, 0.0  ;;  %v2182_v43 = vadd.f32 %v1926_v3, %v1495_v47  ;;  %v1927_v12 = vunpack.c.l.bf16 %v1763_v27 }
 0x1c6   : > { %v3456_v17 = vmul.f32 %v3200_v4, %v2176_v11  ;;  %v3458_v50 = vmul.f32 %v3202_v62, %v2178_v25  ;;  %v3203_v18 = vmul.f32 0.16666667, %v2947_v20  ;;  %v2436_v55 = vadd.f32 3.0, %v2180_v56 }
 0x1c7   : > { %v1499_v40 = vadd.f32 %v6305_v21, %v5792_v0  ;;  %v2949_v5 = vmin.f32 %v2693_v6, 6.0  ;;  %v2438_v39 = vadd.f32 3.0, %v2182_v43  ;;  %v2183_v24 = vadd.f32 %v1927_v12, %v1146_v35  ;;  %v7539_v35 = vld [vmem:[#allocation22_spill] sm:$0xff] }
 0x1c8   : > { %v3712_v34 = vmul.f32 %v3456_v17, %v2176_v11  ;;  %v3714_v30 = vmul.f32 %v3458_v50, %v2178_v25  ;;  %v3459_v38 = vmul.f32 %v3203_v18, %v2179_v33  ;;  %v2692_v59 = vmax.f32 %v2436_v55, 0.0  ;;  %v1765_v55 = vld [vmem:[%s5772_s8 + $0x130] sm:$0xff] }
 0x1c9   : > { %v1929_v42 = vunpack.c.l.bf16 %v1764_v13  ;;  %v3205_v53 = vmul.f32 0.16666667, %v2949_v5  ;;  %v2694_v47 = vmax.f32 %v2438_v39, 0.0  ;;  %v2439_v4 = vadd.f32 3.0, %v2183_v24 }
 0x1ca   : > { %v5176_v31 = vpack.c.bf16 %v3712_v34, %v3711_v26  ;;  %v5177_v29 = vpack.c.bf16 %v3714_v30, %v3713_v7  ;;  %v3715_v3 = vmul.f32 %v3459_v38, %v2179_v33  ;;  %v2948_v21 = vmin.f32 %v2692_v59, 6.0  ;;  %v7540_v26 = vld [vmem:[#allocation23_spill] sm:$0xff]  ;;  %v6578_v7 = vpop.f32.mrb[64].mxu0  ;;  %v6580_v33 = vpop.f32.mrb[64].mxu1 }
 0x1cb   : > { %v2185_v62 = vadd.f32 %v1929_v42, %v1499_v40  ;;  %v3461_v11 = vmul.f32 %v3205_v53, %v2181_v51  ;;  %v2950_v20 = vmin.f32 %v2694_v47, 6.0  ;;  %v2695_v17 = vmax.f32 %v2439_v4, 0.0  ;;  %7541 = vst [vmem:[#allocation10_spill] sm:$0xff] %v6580_v33  ;;  %v6582_v30 = vpop.f32.mrb[65].mxu0 }
 0x1cc   : > { %4703 = vst [vmem:[%s6022_s13 + $0x100] sm:$0xff] %v5176_v31  ;;  %v1148_v25 = vadd.f32 %v7539_v35, %v5794_v1  ;;  %4704 = vst [vmem:[%s6022_s13 + $0x108] sm:$0xff] %v5177_v29  ;;  %v3204_v6 = vmul.f32 0.16666667, %v2948_v21  ;;  %v1928_v50 = vunpack.c.h.bf16 %v1763_v27  ;;  %v1501_v18 = vadd.f32 %v7540_v26, %v5796_v2  ;;  %v7543_v27 = vld [vmem:[#allocation24_spill] sm:$0xff]  ;;  %v1766_v21 = vld [vmem:[%s5772_s8 + $0x138] sm:$0xff] }
 0x1cd   : > { %v2441_v12 = vadd.f32 3.0, %v2185_v62  ;;  %v3717_v40 = vmul.f32 %v3461_v11, %v2181_v51  ;;  %v3206_v34 = vmul.f32 0.16666667, %v2950_v20  ;;  %v2951_v5 = vmin.f32 %v2695_v17, 6.0  ;;  %7542 = vst [vmem:[#allocation11_spill] sm:$0xff] %v6582_v30  ;;  %v7544_v51 = vld [vmem:[#allocation25_spill] sm:$0xff] }
 0x1ce   : > { %v1930_v39 = vunpack.c.h.bf16 %v1764_v13  ;;  %v3460_v38 = vmul.f32 %v3204_v6, %v2180_v56  ;;  %v2184_v42 = vadd.f32 %v1928_v50, %v1148_v25  ;;  %v1150_v31 = vadd.f32 %v7543_v27, %v5790_v63  ;;  %v6589_v13 = vpop.f32.mrb[65].mxu1 }
 0x1cf   : > { %v2697_v59 = vmax.f32 %v2441_v12, 0.0  ;;  %v3462_v53 = vmul.f32 %v3206_v34, %v2182_v43  ;;  %v3207_v47 = vmul.f32 0.16666667, %v2951_v5  ;;  %v1931_v29 = vunpack.c.l.bf16 %v1765_v55  ;;  %7545 = vst [vmem:[#allocation20_spill] sm:$0xff] %v6589_v13  ;;  %v6591_v5 = vpop.f32.mrb[66].mxu0  ;;  %v6593_v27 = vpop.f32.mrb[66].mxu1 }
 0x1d0   : > { %v2186_v4 = vadd.f32 %v1930_v39, %v1501_v18  ;;  %v3716_v35 = vmul.f32 %v3460_v38, %v2180_v56  ;;  %v2440_v33 = vadd.f32 3.0, %v2184_v42  ;;  %v1503_v11 = vadd.f32 %v7544_v51, %v5792_v0  ;;  %7546 = vst [vmem:[#allocation12_spill] sm:$0xff] %v6591_v5  ;;  %7547 = vst [vmem:[#allocation13_spill] sm:$0xff] %v6593_v27 }
 0x1d1   : > { %v2953_v26 = vmin.f32 %v2697_v59, 6.0  ;;  %v3718_v20 = vmul.f32 %v3462_v53, %v2182_v43  ;;  %v3463_v17 = vmul.f32 %v3207_v47, %v2183_v24  ;;  %v2187_v6 = vadd.f32 %v1931_v29, %v1150_v31  ;;  %v7548_v31 = vld [vmem:[#allocation26_spill] sm:$0xff] }
 0x1d2   : > { %v2442_v25 = vadd.f32 3.0, %v2186_v4  ;;  %v5178_v12 = vpack.c.bf16 %v3716_v35, %v3715_v3  ;;  %v2696_v34 = vmax.f32 %v2440_v33, 0.0  ;;  %v1933_v18 = vunpack.c.l.bf16 %v1766_v21  ;;  %v7549_v35 = vld [vmem:[#allocation27_spill] sm:$0xff] }
 0x1d3   : > { %v3209_v50 = vmul.f32 0.16666667, %v2953_v26  ;;  %v5179_v56 = vpack.c.bf16 %v3718_v20, %v3717_v40  ;;  %v3719_v39 = vmul.f32 %v3463_v17, %v2183_v24  ;;  %v2443_v59 = vadd.f32 3.0, %v2187_v6  ;;  %v1767_v24 = vld [vmem:[%s5772_s8 + $0x140] sm:$0xff] }
 0x1d4   : > { %v2698_v38 = vmax.f32 %v2442_v25, 0.0  ;;  %4705 = vst [vmem:[%s6022_s13 + $0x110] sm:$0xff] %v5178_v12  ;;  %v2952_v43 = vmin.f32 %v2696_v34, 6.0  ;;  %v2189_v53 = vadd.f32 %v1933_v18, %v1503_v11  ;;  %v1152_v47 = vadd.f32 %v7548_v31, %v5794_v1  ;;  %v6604_v18 = vpop.f32.mrb[67].mxu0  ;;  %v1768_v31 = vld [vmem:[%s5772_s8 + $0x148] sm:$0xff] }
 0x1d5   : > { %v3465_v51 = vmul.f32 %v3209_v50, %v2185_v62  ;;  %4706 = vst [vmem:[%s6022_s13 + $0x118] sm:$0xff] %v5179_v56  ;;  %v2699_v33 = vmax.f32 %v2443_v59, 0.0  ;;  %v1932_v29 = vunpack.c.h.bf16 %v1765_v55  ;;  %v1505_v40 = vadd.f32 %v7549_v35, %v5796_v2  ;;  %7550 = vst [vmem:[#allocation21_spill] sm:$0xff] %v6604_v18 }
 0x1d6   : > { %v2954_v3 = vmin.f32 %v2698_v38, 6.0  ;;  %v3208_v20 = vmul.f32 0.16666667, %v2952_v43  ;;  %v2445_v17 = vadd.f32 3.0, %v2189_v53  ;;  %v1934_v25 = vunpack.c.h.bf16 %v1766_v21  ;;  %v6609_v21 = vpop.f32.mrb[67].mxu1 }
 0x1d7   : > { %v3721_v26 = vmul.f32 %v3465_v51, %v2185_v62  ;;  %v2955_v50 = vmin.f32 %v2699_v33, 6.0  ;;  %v2188_v34 = vadd.f32 %v1932_v29, %v1152_v47  ;;  %v1156_v11 = vadd.f32 %v6337_v23, %v5790_v63  ;;  %v7551_v62 = vld [vmem:[#allocation14_spill] sm:$0xff] }
 0x1d8   : > { %v3210_v12 = vmul.f32 0.16666667, %v2954_v3  ;;  %v3464_v56 = vmul.f32 %v3208_v20, %v2184_v42  ;;  %v2701_v38 = vmax.f32 %v2445_v17, 0.0  ;;  %v2190_v55 = vadd.f32 %v1934_v25, %v1505_v40 }
 0x1d9   : > { %v1935_v59 = vunpack.c.l.bf16 %v1767_v24  ;;  %v3211_v35 = vmul.f32 0.16666667, %v2955_v50  ;;  %v2444_v5 = vadd.f32 3.0, %v2188_v34  ;;  %v1509_v51 = vadd.f32 %v7551_v62, %v5792_v0 }
 0x1da   : > { %v3466_v27 = vmul.f32 %v3210_v12, %v2186_v4  ;;  %v3720_v43 = vmul.f32 %v3464_v56, %v2184_v42  ;;  %v2957_v47 = vmin.f32 %v2701_v38, 6.0  ;;  %v2446_v3 = vadd.f32 3.0, %v2190_v55 }
 0x1db   : > { %v2191_v23 = vadd.f32 %v1935_v59, %v1156_v11  ;;  %v3467_v29 = vmul.f32 %v3211_v35, %v2187_v6  ;;  %v2700_v20 = vmax.f32 %v2444_v5, 0.0  ;;  %v1937_v40 = vunpack.c.l.bf16 %v1768_v31  ;;  %v7552_v11 = vld [vmem:[#allocation28_spill] sm:$0xff] }
 0x1dc   : > { %v3722_v33 = vmul.f32 %v3466_v27, %v2186_v4  ;;  %v5180_v17 = vpack.c.bf16 %v3720_v43, %v3719_v39  ;;  %v3213_v25 = vmul.f32 0.16666667, %v2957_v47  ;;  %v2702_v12 = vmax.f32 %v2446_v3, 0.0  ;;  %v7553_v39 = vld [vmem:[#allocation29_spill] sm:$0xff]  ;;  %v1769_v43 = vld [vmem:[%s5772_s8 + $0x150] sm:$0xff] }
 0x1dd   : > { %v2447_v50 = vadd.f32 3.0, %v2191_v23  ;;  %v3723_v13 = vmul.f32 %v3467_v29, %v2187_v6  ;;  %v2956_v62 = vmin.f32 %v2700_v20, 6.0  ;;  %v2193_v30 = vadd.f32 %v1937_v40, %v1509_v51  ;;  %v6620_v6 = vpop.f32.mrb[68].mxu1 }
 0x1de   : > { %v5181_v18 = vpack.c.bf16 %v3722_v33, %v3721_v26  ;;  %4707 = vst [vmem:[%s6022_s13 + $0x120] sm:$0xff] %v5180_v17  ;;  %v3469_v42 = vmul.f32 %v3213_v25, %v2189_v53  ;;  %v2958_v56 = vmin.f32 %v2702_v12, 6.0  ;;  %v1158_v4 = vadd.f32 %v7552_v11, %v5794_v1  ;;  %v6618_v26 = vpop.f32.mrb[68].mxu0  ;;  %7555 = vst [vmem:[#allocation23_spill] sm:$0xff] %v6620_v6  ;;  %v1770_v11 = vld [vmem:[%s5772_s8 + $0x158] sm:$0xff] }
 0x1df   : > { %v2703_v38 = vmax.f32 %v2447_v50, 0.0  ;;  %v3212_v27 = vmul.f32 0.16666667, %v2956_v62  ;;  %v2449_v5 = vadd.f32 3.0, %v2193_v30  ;;  %v1936_v59 = vunpack.c.h.bf16 %v1767_v24  ;;  %7554 = vst [vmem:[#allocation22_spill] sm:$0xff] %v6618_v26  ;;  %v6622_v29 = vpop.f32.mrb[69].mxu0 }
 0x1e0   : > { %4708 = vst [vmem:[%s6022_s13 + $0x128] sm:$0xff] %v5181_v18  ;;  %v1511_v35 = vadd.f32 %v7553_v39, %v5796_v2  ;;  %v3725_v51 = vmul.f32 %v3469_v42, %v2189_v53  ;;  %v3214_v47 = vmul.f32 0.16666667, %v2958_v56  ;;  %v1938_v33 = vunpack.c.h.bf16 %v1768_v31  ;;  %v7556_v24 = vld [vmem:[#allocation2_spill] sm:$0xff]  ;;  %v7557_v53 = vld [vmem:[#allocation3_spill] sm:$0xff]  ;;  %v6629_v31 = vpop.f32.mrb[69].mxu1 }
 0x1e1   : > { %v2959_v3 = vmin.f32 %v2703_v38, 6.0  ;;  %v3468_v20 = vmul.f32 %v3212_v27, %v2188_v34  ;;  %v2705_v18 = vmax.f32 %v2449_v5, 0.0  ;;  %v2192_v40 = vadd.f32 %v1936_v59, %v1158_v4  ;;  %7558 = vst [vmem:[#allocation24_spill] sm:$0xff] %v6629_v31 }
 0x1e2   : > { %v1160_v17 = vadd.f32 %v7556_v24, %v5790_v63  ;;  %v3470_v25 = vmul.f32 %v3214_v47, %v2190_v55  ;;  %v2194_v50 = vadd.f32 %v1938_v33, %v1511_v35  ;;  %v1939_v62 = vunpack.c.l.bf16 %v1769_v43  ;;  %v6633_v24 = vpop.f32.mrb[70].mxu1 }
 0x1e3   : > { %v3215_v12 = vmul.f32 0.16666667, %v2959_v3  ;;  %v3724_v39 = vmul.f32 %v3468_v20, %v2188_v34  ;;  %v2961_v26 = vmin.f32 %v2705_v18, 6.0  ;;  %v2448_v6 = vadd.f32 3.0, %v2192_v40  ;;  %v6631_v3 = vpop.f32.mrb[70].mxu0  ;;  %7560 = vst [vmem:[#allocation26_spill] sm:$0xff] %v6633_v24 }
 0x1e4   : > { %v1513_v42 = vadd.f32 %v7557_v53, %v5792_v0  ;;  %v3726_v56 = vmul.f32 %v3470_v25, %v2190_v55  ;;  %v2450_v4 = vadd.f32 3.0, %v2194_v50  ;;  %v2195_v27 = vadd.f32 %v1939_v62, %v1160_v17  ;;  %7559 = vst [vmem:[#allocation25_spill] sm:$0xff] %v6631_v3 }
 0x1e5   : > { %v3471_v38 = vmul.f32 %v3215_v12, %v2191_v23  ;;  %v5182_v5 = vpack.c.bf16 %v3724_v39, %v3723_v13  ;;  %v3217_v59 = vmul.f32 0.16666667, %v2961_v26  ;;  %v2704_v47 = vmax.f32 %v2448_v6, 0.0 }
 0x1e6   : > { %v1941_v35 = vunpack.c.l.bf16 %v1770_v11  ;;  %v5183_v34 = vpack.c.bf16 %v3726_v56, %v3725_v51  ;;  %v2706_v20 = vmax.f32 %v2450_v4, 0.0  ;;  %v2451_v18 = vadd.f32 3.0, %v2195_v27 }
 0x1e7   : > { %v3727_v33 = vmul.f32 %v3471_v38, %v2191_v23  ;;  %4709 = vst [vmem:[%s6022_s13 + $0x130] sm:$0xff] %v5182_v5  ;;  %v3473_v53 = vmul.f32 %v3217_v59, %v2193_v30  ;;  %v2960_v55 = vmin.f32 %v2704_v47, 6.0  ;;  %v1162_v17 = vadd.f32 %v6353_v48, %v5794_v1  ;;  %v1771_v23 = vld [vmem:[%s5772_s8 + $0x160] sm:$0xff]  ;;  %v6644_v48 = vpop.f32.mrb[71].mxu0 }
 0x1e8   : > { %v2197_v25 = vadd.f32 %v1941_v35, %v1513_v42  ;;  %4710 = vst [vmem:[%s6022_s13 + $0x138] sm:$0xff] %v5183_v34  ;;  %v2962_v13 = vmin.f32 %v2706_v20, 6.0  ;;  %v2707_v26 = vmax.f32 %v2451_v18, 0.0  ;;  %v1940_v6 = vunpack.c.h.bf16 %v1769_v43  ;;  %v7561_v42 = vld [vmem:[#allocation15_spill] sm:$0xff]  ;;  %7562 = vst [vmem:[#allocation27_spill] sm:$0xff] %v6644_v48 }
 0x1e9   : > { %v1515_v51 = vadd.f32 %v6355_v37, %v5796_v2  ;;  %v3729_v12 = vmul.f32 %v3473_v53, %v2193_v30  ;;  %v3216_v62 = vmul.f32 0.16666667, %v2960_v55  ;;  %v1942_v56 = vunpack.c.h.bf16 %v1770_v11  ;;  %v1772_v20 = vld [vmem:[%s5772_s8 + $0x168] sm:$0xff]  ;;  %v7563_v30 = vld [vmem:[#allocation16_spill] sm:$0xff]  ;;  %v6649_v11 = vpop.f32.mrb[71].mxu1 }
 0x1ea   : > { %v2453_v39 = vadd.f32 3.0, %v2197_v25  ;;  %v3218_v38 = vmul.f32 0.16666667, %v2962_v13  ;;  %v2963_v4 = vmin.f32 %v2707_v26, 6.0  ;;  %v2196_v5 = vadd.f32 %v1940_v6, %v1162_v17 }
 0x1eb   : > { %v1166_v59 = vadd.f32 %v7561_v42, %v5790_v63  ;;  %v3472_v47 = vmul.f32 %v3216_v62, %v2192_v40  ;;  %v2198_v43 = vadd.f32 %v1942_v56, %v1515_v51  ;;  %v1943_v34 = vunpack.c.l.bf16 %v1771_v23 }
 0x1ec   : > { %v2709_v35 = vmax.f32 %v2453_v39, 0.0  ;;  %v3474_v18 = vmul.f32 %v3218_v38, %v2194_v50  ;;  %v3219_v37 = vmul.f32 0.16666667, %v2963_v4  ;;  %v2452_v24 = vadd.f32 3.0, %v2196_v5 }
 0x1ed   : > { %v1519_v53 = vadd.f32 %v7563_v30, %v5792_v0  ;;  %v3728_v55 = vmul.f32 %v3472_v47, %v2192_v40  ;;  %v2454_v13 = vadd.f32 3.0, %v2198_v43  ;;  %v2199_v26 = vadd.f32 %v1943_v34, %v1166_v59 }
 0x1ee   : > { %v2965_v17 = vmin.f32 %v2709_v35, 6.0  ;;  %v3730_v6 = vmul.f32 %v3474_v18, %v2194_v50  ;;  %v3475_v42 = vmul.f32 %v3219_v37, %v2195_v27  ;;  %v2708_v62 = vmax.f32 %v2452_v24, 0.0  ;;  %v1773_v37 = vld [vmem:[%s5772_s8 + $0x170] sm:$0xff] }
 0x1ef   : > { %v1945_v51 = vunpack.c.l.bf16 %v1772_v20  ;;  %v5184_v39 = vpack.c.bf16 %v3728_v55, %v3727_v33  ;;  %v2710_v38 = vmax.f32 %v2454_v13, 0.0  ;;  %v2455_v4 = vadd.f32 3.0, %v2199_v26  ;;  %v7564_v33 = vld [vmem:[#allocation17_spill] sm:$0xff] }
 0x1f0   : > { %v3221_v56 = vmul.f32 0.16666667, %v2965_v17  ;;  %v5185_v48 = vpack.c.bf16 %v3730_v6, %v3729_v12  ;;  %v3731_v3 = vmul.f32 %v3475_v42, %v2195_v27  ;;  %v2964_v30 = vmin.f32 %v2708_v62, 6.0  ;;  %v6658_v12 = vpop.f32.mrb[72].mxu0  ;;  %v6660_v27 = vpop.f32.mrb[72].mxu1 }
 0x1f1   : > { %v2201_v31 = vadd.f32 %v1945_v51, %v1519_v53  ;;  %4711 = vst [vmem:[%s6022_s13 + $0x140] sm:$0xff] %v5184_v39  ;;  %v2966_v47 = vmin.f32 %v2710_v38, 6.0  ;;  %v2711_v35 = vmax.f32 %v2455_v4, 0.0  ;;  %v1168_v50 = vadd.f32 %v6375_v32, %v5794_v1  ;;  %7565 = vst [vmem:[#allocation14_spill] sm:$0xff] %v6658_v12  ;;  %v6662_v6 = vpop.f32.mrb[73].mxu0  ;;  %v1774_v4 = vld [vmem:[%s5772_s8 + $0x178] sm:$0xff] }
 0x1f2   : > { %v3477_v40 = vmul.f32 %v3221_v56, %v2197_v25  ;;  %4712 = vst [vmem:[%s6022_s13 + $0x148] sm:$0xff] %v5185_v48  ;;  %v3220_v59 = vmul.f32 0.16666667, %v2964_v30  ;;  %v1944_v34 = vunpack.c.h.bf16 %v1771_v23  ;;  %v1521_v18 = vadd.f32 %v7564_v33, %v5796_v2  ;;  %7566 = vst [vmem:[#allocation28_spill] sm:$0xff] %v6660_v27  ;;  %v7568_v23 = vld [vmem:[#allocation18_spill] sm:$0xff] }
 0x1f3   : > { %v2457_v24 = vadd.f32 3.0, %v2201_v31  ;;  %v3222_v55 = vmul.f32 0.16666667, %v2966_v47  ;;  %v2967_v17 = vmin.f32 %v2711_v35, 6.0  ;;  %v1946_v13 = vunpack.c.h.bf16 %v1772_v20  ;;  %7567 = vst [vmem:[#allocation29_spill] sm:$0xff] %v6662_v6  ;;  %v6669_v20 = vpop.f32.mrb[73].mxu1 }
 0x1f4   : > { %v3733_v53 = vmul.f32 %v3477_v40, %v2197_v25  ;;  %v3476_v32 = vmul.f32 %v3220_v59, %v2196_v5  ;;  %v2200_v42 = vadd.f32 %v1944_v34, %v1168_v50  ;;  %v1170_v62 = vadd.f32 %v7568_v23, %v5790_v63  ;;  %v7569_v25 = vld [vmem:[#allocation4_spill] sm:$0xff]  ;;  %7570 = vst [vmem:[#allocation2_spill] sm:$0xff] %v6669_v20  ;;  %v6673_v23 = vpop.f32.mrb[74].mxu1 }
 0x1f5   : > { %v2713_v48 = vmax.f32 %v2457_v24, 0.0  ;;  %v3478_v51 = vmul.f32 %v3222_v55, %v2198_v43  ;;  %v3223_v39 = vmul.f32 0.16666667, %v2967_v17  ;;  %v2202_v56 = vadd.f32 %v1946_v13, %v1521_v18  ;;  %v6671_v17 = vpop.f32.mrb[74].mxu0  ;;  %7572 = vst [vmem:[#allocation15_spill] sm:$0xff] %v6673_v23  ;;  %v1776_v23 = vld [vmem:[%s5772_s8 + $0x188] sm:$0xff] }
 0x1f6   : > { %v1947_v38 = vunpack.c.l.bf16 %v1773_v37  ;;  %v3732_v30 = vmul.f32 %v3476_v32, %v2196_v5  ;;  %v2456_v27 = vadd.f32 3.0, %v2200_v42  ;;  %v1523_v40 = vadd.f32 %v7569_v25, %v5792_v0  ;;  %7571 = vst [vmem:[#allocation3_spill] sm:$0xff] %v6671_v17 }
 0x1f7   : > { %v2969_v33 = vmin.f32 %v2713_v48, 6.0  ;;  %v3734_v47 = vmul.f32 %v3478_v51, %v2198_v43  ;;  %v3479_v35 = vmul.f32 %v3223_v39, %v2199_v26  ;;  %v2458_v50 = vadd.f32 3.0, %v2202_v56 }
 0x1f8   : > { %v2203_v59 = vadd.f32 %v1947_v38, %v1170_v62  ;;  %v5186_v24 = vpack.c.bf16 %v3732_v30, %v3731_v3  ;;  %v2712_v55 = vmax.f32 %v2456_v27, 0.0  ;;  %v1949_v18 = vunpack.c.l.bf16 %v1774_v4  ;;  %v7573_v62 = vld [vmem:[#allocation5_spill] sm:$0xff]  ;;  %v7574_v30 = vld [vmem:[#allocation30_spill] sm:$0xff] }
 0x1f9   : > { %v3225_v34 = vmul.f32 0.16666667, %v2969_v33  ;;  %v5187_v5 = vpack.c.bf16 %v3734_v47, %v3733_v53  ;;  %v3735_v13 = vmul.f32 %v3479_v35, %v2199_v26  ;;  %v2714_v32 = vmax.f32 %v2458_v50, 0.0  ;;  %v1775_v26 = vld [vmem:[%s5772_s8 + $0x180] sm:$0xff] }
 0x1fa   : > { %v2459_v48 = vadd.f32 3.0, %v2203_v59  ;;  %4713 = vst [vmem:[%s6022_s13 + $0x150] sm:$0xff] %v5186_v24  ;;  %v2968_v43 = vmin.f32 %v2712_v55, 6.0  ;;  %v2205_v51 = vadd.f32 %v1949_v18, %v1523_v40  ;;  %v1172_v39 = vadd.f32 %v7573_v62, %v5794_v1  ;;  %v7575_v40 = vld [vmem:[#allocation19_spill] sm:$0xff]  ;;  %v6684_v62 = vpop.f32.mrb[75].mxu0 }
 0x1fb   : > { %v3481_v25 = vmul.f32 %v3225_v34, %v2201_v31  ;;  %4714 = vst [vmem:[%s6022_s13 + $0x158] sm:$0xff] %v5187_v5  ;;  %v2970_v3 = vmin.f32 %v2714_v32, 6.0  ;;  %v1948_v38 = vunpack.c.h.bf16 %v1773_v37  ;;  %v1525_v53 = vadd.f32 %v7574_v30, %v5796_v2  ;;  %7576 = vst [vmem:[#allocation16_spill] sm:$0xff] %v6684_v62 }
 0x1fc   : > { %v2715_v27 = vmax.f32 %v2459_v48, 0.0  ;;  %v3224_v47 = vmul.f32 0.16666667, %v2968_v43  ;;  %v2461_v35 = vadd.f32 3.0, %v2205_v51  ;;  %v1950_v50 = vunpack.c.h.bf16 %v1774_v4  ;;  %v6689_v4 = vpop.f32.mrb[75].mxu1 }
 0x1fd   : > { %v3737_v33 = vmul.f32 %v3481_v25, %v2201_v31  ;;  %v3226_v24 = vmul.f32 0.16666667, %v2970_v3  ;;  %v2204_v55 = vadd.f32 %v1948_v38, %v1172_v39  ;;  %v1176_v18 = vadd.f32 %v7575_v40, %v5790_v63  ;;  %v7577_v31 = vld [vmem:[#allocation31_spill] sm:$0xff] }
 0x1fe   : > { %v2971_v34 = vmin.f32 %v2715_v27, 6.0  ;;  %v3480_v5 = vmul.f32 %v3224_v47, %v2200_v42  ;;  %v2717_v32 = vmax.f32 %v2461_v35, 0.0  ;;  %v2206_v37 = vadd.f32 %v1950_v50, %v1525_v53 }
 0x1ff   : > { %v1951_v48 = vunpack.c.l.bf16 %v1775_v26  ;;  %v3482_v17 = vmul.f32 %v3226_v24, %v2202_v56  ;;  %v2460_v20 = vadd.f32 3.0, %v2204_v55  ;;  %v1529_v25 = vadd.f32 %v7577_v31, %v5792_v0 }
 0x200   : > { %v3227_v30 = vmul.f32 0.16666667, %v2971_v34  ;;  %v3736_v43 = vmul.f32 %v3480_v5, %v2200_v42  ;;  %v2973_v39 = vmin.f32 %v2717_v32, 6.0  ;;  %v2462_v3 = vadd.f32 3.0, %v2206_v37 }
 0x201   : > { %v2207_v27 = vadd.f32 %v1951_v48, %v1176_v18  ;;  %v3738_v38 = vmul.f32 %v3482_v17, %v2202_v56  ;;  %v2716_v47 = vmax.f32 %v2460_v20, 0.0  ;;  %v1953_v53 = vunpack.c.l.bf16 %v1776_v23  ;;  %v7578_v18 = vld [vmem:[#allocation32_spill] sm:$0xff] }
 0x202   : > { %v3483_v40 = vmul.f32 %v3227_v30, %v2203_v59  ;;  %v5188_v35 = vpack.c.bf16 %v3736_v43, %v3735_v13  ;;  %v3229_v50 = vmul.f32 0.16666667, %v2973_v39  ;;  %v2718_v24 = vmax.f32 %v2462_v3, 0.0  ;;  %v7579_v13 = vld [vmem:[#allocation33_spill] sm:$0xff]  ;;  %v1777_v43 = vld [vmem:[%s5772_s8 + $0x190] sm:$0xff] }
 0x203   : > { %v2463_v34 = vadd.f32 3.0, %v2207_v27  ;;  %v5189_v62 = vpack.c.bf16 %v3738_v38, %v3737_v33  ;;  %v2972_v31 = vmin.f32 %v2716_v47, 6.0  ;;  %v2209_v12 = vadd.f32 %v1953_v53, %v1529_v25  ;;  %v6698_v33 = vpop.f32.mrb[76].mxu0 }
 0x204   : > { %v3739_v6 = vmul.f32 %v3483_v40, %v2203_v59  ;;  %4715 = vst [vmem:[%s6022_s13 + $0x160] sm:$0xff] %v5188_v35  ;;  %v3485_v42 = vmul.f32 %v3229_v50, %v2205_v51  ;;  %v2974_v5 = vmin.f32 %v2718_v24, 6.0  ;;  %v1178_v56 = vadd.f32 %v7578_v18, %v5794_v1  ;;  %7580 = vst [vmem:[#allocation17_spill] sm:$0xff] %v6698_v33  ;;  %v6700_v59 = vpop.f32.mrb[76].mxu1  ;;  %v6702_v40 = vpop.f32.mrb[77].mxu0  ;;  %v1778_v18 = vld [vmem:[%s5772_s8 + $0x198] sm:$0xff] }
 0x205   : > { %v2719_v32 = vmax.f32 %v2463_v34, 0.0  ;;  %4716 = vst [vmem:[%s6022_s13 + $0x168] sm:$0xff] %v5189_v62  ;;  %v3228_v17 = vmul.f32 0.16666667, %v2972_v31  ;;  %v2465_v20 = vadd.f32 3.0, %v2209_v12  ;;  %v1952_v48 = vunpack.c.h.bf16 %v1775_v26  ;;  %7581 = vst [vmem:[#allocation18_spill] sm:$0xff] %v6700_v59 }
 0x206   : > { %v1531_v30 = vadd.f32 %v7579_v13, %v5796_v2  ;;  %v3741_v25 = vmul.f32 %v3485_v42, %v2205_v51  ;;  %v3230_v39 = vmul.f32 0.16666667, %v2974_v5  ;;  %v1954_v38 = vunpack.c.h.bf16 %v1776_v23  ;;  %v7582_v26 = vld [vmem:[#allocation6_spill] sm:$0xff]  ;;  %v7583_v51 = vld [vmem:[#allocation7_spill] sm:$0xff]  ;;  %v6709_v23 = vpop.f32.mrb[77].mxu1 }
 0x207   : > { %v2975_v3 = vmin.f32 %v2719_v32, 6.0  ;;  %v3484_v47 = vmul.f32 %v3228_v17, %v2204_v55  ;;  %v2721_v62 = vmax.f32 %v2465_v20, 0.0  ;;  %v2208_v53 = vadd.f32 %v1952_v48, %v1178_v56 }
 0x208   : > { %v1180_v35 = vadd.f32 %v7582_v26, %v5790_v63  ;;  %v3486_v50 = vmul.f32 %v3230_v39, %v2206_v37  ;;  %v2210_v34 = vadd.f32 %v1954_v38, %v1531_v30  ;;  %v1955_v31 = vunpack.c.l.bf16 %v1777_v43  ;;  %v6713_v26 = vpop.f32.mrb[78].mxu1 }
 0x209   : > { %v3231_v24 = vmul.f32 0.16666667, %v2975_v3  ;;  %v3740_v13 = vmul.f32 %v3484_v47, %v2204_v55  ;;  %v2977_v33 = vmin.f32 %v2721_v62, 6.0  ;;  %v2464_v59 = vadd.f32 3.0, %v2208_v53  ;;  %v6711_v3 = vpop.f32.mrb[78].mxu0  ;;  %7585 = vst [vmem:[#allocation5_spill] sm:$0xff] %v6713_v26 }
 0x20a   : > { %v1533_v42 = vadd.f32 %v7583_v51, %v5792_v0  ;;  %v3742_v5 = vmul.f32 %v3486_v50, %v2206_v37  ;;  %v2466_v56 = vadd.f32 3.0, %v2210_v34  ;;  %v2211_v17 = vadd.f32 %v1955_v31, %v1180_v35  ;;  %7584 = vst [vmem:[#allocation4_spill] sm:$0xff] %v6711_v3  ;;  %v7586_v35 = vld [vmem:[#allocation34_spill] sm:$0xff] }
 0x20b   : > { %v3487_v32 = vmul.f32 %v3231_v24, %v2207_v27  ;;  %v5190_v20 = vpack.c.bf16 %v3740_v13, %v3739_v6  ;;  %v3233_v48 = vmul.f32 0.16666667, %v2977_v33  ;;  %v2720_v39 = vmax.f32 %v2464_v59, 0.0 }
 0x20c   : > { %v1957_v30 = vunpack.c.l.bf16 %v1778_v18  ;;  %v5191_v55 = vpack.c.bf16 %v3742_v5, %v3741_v25  ;;  %v2722_v47 = vmax.f32 %v2466_v56, 0.0  ;;  %v2467_v62 = vadd.f32 3.0, %v2211_v17 }
 0x20d   : > { %v3743_v38 = vmul.f32 %v3487_v32, %v2207_v27  ;;  %4717 = vst [vmem:[%s6022_s13 + $0x170] sm:$0xff] %v5190_v20  ;;  %v3489_v51 = vmul.f32 %v3233_v48, %v2209_v12  ;;  %v2976_v37 = vmin.f32 %v2720_v39, 6.0  ;;  %v1182_v24 = vadd.f32 %v7586_v35, %v5794_v1  ;;  %v1779_v27 = vld [vmem:[%s5772_s8 + $0x1a0] sm:$0xff]  ;;  %v6724_v39 = vpop.f32.mrb[79].mxu0 }
 0x20e   : > { %v2213_v50 = vadd.f32 %v1957_v30, %v1533_v42  ;;  %4718 = vst [vmem:[%s6022_s13 + $0x178] sm:$0xff] %v5191_v55  ;;  %v2978_v6 = vmin.f32 %v2722_v47, 6.0  ;;  %v2723_v33 = vmax.f32 %v2467_v62, 0.0  ;;  %v1956_v59 = vunpack.c.h.bf16 %v1777_v43  ;;  %7587 = vst [vmem:[#allocation30_spill] sm:$0xff] %v6724_v39  ;;  %v1780_v62 = vld [vmem:[%s5772_s8 + $0x1a8] sm:$0xff] }
 0x20f   : > { %v1535_v25 = vadd.f32 %v6423_v36, %v5796_v2  ;;  %v3745_v31 = vmul.f32 %v3489_v51, %v2209_v12  ;;  %v3232_v13 = vmul.f32 0.16666667, %v2976_v37  ;;  %v1958_v32 = vunpack.c.h.bf16 %v1778_v18  ;;  %v6729_v18 = vpop.f32.mrb[79].mxu1 }
 0x210   : > { %v2469_v5 = vadd.f32 3.0, %v2213_v50  ;;  %v3234_v56 = vmul.f32 0.16666667, %v2978_v6  ;;  %v2979_v20 = vmin.f32 %v2723_v33, 6.0  ;;  %v2212_v48 = vadd.f32 %v1956_v59, %v1182_v24 }
 0x211   : > { %v1186_v42 = vadd.f32 %v6429_v14, %v5790_v63  ;;  %v3488_v30 = vmul.f32 %v3232_v13, %v2208_v53  ;;  %v2214_v43 = vadd.f32 %v1958_v32, %v1535_v25  ;;  %v1959_v47 = vunpack.c.l.bf16 %v1779_v27 }
 0x212   : > { %v2725_v55 = vmax.f32 %v2469_v5, 0.0  ;;  %v3490_v35 = vmul.f32 %v3234_v56, %v2210_v34  ;;  %v3235_v36 = vmul.f32 0.16666667, %v2979_v20  ;;  %v2468_v26 = vadd.f32 3.0, %v2212_v48 }
 0x213   : > { %v1539_v12 = vadd.f32 %v6431_v9, %v5792_v0  ;;  %v3744_v51 = vmul.f32 %v3488_v30, %v2208_v53  ;;  %v2470_v24 = vadd.f32 3.0, %v2214_v43  ;;  %v2215_v14 = vadd.f32 %v1959_v47, %v1186_v42 }
 0x214   : > { %v2981_v37 = vmin.f32 %v2725_v55, 6.0  ;;  %v3746_v6 = vmul.f32 %v3490_v35, %v2210_v34  ;;  %v3491_v33 = vmul.f32 %v3235_v36, %v2211_v17  ;;  %v2724_v59 = vmax.f32 %v2468_v26, 0.0  ;;  %v1781_v36 = vld [vmem:[%s5772_s8 + $0x1b0] sm:$0xff] }
 0x215   : > { %v1961_v25 = vunpack.c.l.bf16 %v1780_v62  ;;  %v5192_v13 = vpack.c.bf16 %v3744_v51, %v3743_v38  ;;  %v2726_v32 = vmax.f32 %v2470_v24, 0.0  ;;  %v2471_v56 = vadd.f32 3.0, %v2215_v14  ;;  %v7588_v38 = vld [vmem:[#allocation35_spill] sm:$0xff] }
 0x216   : > { %v3237_v5 = vmul.f32 0.16666667, %v2981_v37  ;;  %v5193_v20 = vpack.c.bf16 %v3746_v6, %v3745_v31  ;;  %v3747_v39 = vmul.f32 %v3491_v33, %v2211_v17  ;;  %v2980_v9 = vmin.f32 %v2724_v59, 6.0  ;;  %v6738_v31 = vpop.f32.mrb[80].mxu0  ;;  %v6740_v17 = vpop.f32.mrb[80].mxu1 }
 0x217   : > { %v2217_v3 = vadd.f32 %v1961_v25, %v1539_v12  ;;  %4719 = vst [vmem:[%s6022_s13 + $0x180] sm:$0xff] %v5192_v13  ;;  %v2982_v30 = vmin.f32 %v2726_v32, 6.0  ;;  %v2727_v55 = vmax.f32 %v2471_v56, 0.0  ;;  %v1188_v34 = vadd.f32 %v6439_v54, %v5794_v1  ;;  %7589 = vst [vmem:[#allocation19_spill] sm:$0xff] %v6740_v17  ;;  %v6742_v6 = vpop.f32.mrb[81].mxu0 }
 0x218   : > { %v3493_v53 = vmul.f32 %v3237_v5, %v2213_v50  ;;  %4720 = vst [vmem:[%s6022_s13 + $0x188] sm:$0xff] %v5193_v20  ;;  %v3236_v42 = vmul.f32 0.16666667, %v2980_v9  ;;  %v1960_v47 = vunpack.c.h.bf16 %v1779_v27  ;;  %v1541_v35 = vadd.f32 %v7588_v38, %v5796_v2  ;;  %v7590_v27 = vld [vmem:[#allocation36_spill] sm:$0xff]  ;;  %v1782_v20 = vld [vmem:[%s5772_s8 + $0x1b8] sm:$0xff] }
 0x219   : > { %v2473_v26 = vadd.f32 3.0, %v2217_v3  ;;  %v3238_v51 = vmul.f32 0.16666667, %v2982_v30  ;;  %v2983_v37 = vmin.f32 %v2727_v55, 6.0  ;;  %v1962_v24 = vunpack.c.h.bf16 %v1780_v62  ;;  %v6749_v62 = vpop.f32.mrb[81].mxu1 }
 0x21a   : > { %v3749_v12 = vmul.f32 %v3493_v53, %v2213_v50  ;;  %v3492_v54 = vmul.f32 %v3236_v42, %v2212_v48  ;;  %v2216_v59 = vadd.f32 %v1960_v47, %v1188_v34  ;;  %v1190_v25 = vadd.f32 %v7590_v27, %v5790_v63 }
 0x21b   : > { %v2729_v33 = vmax.f32 %v2473_v26, 0.0  ;;  %v3494_v13 = vmul.f32 %v3238_v51, %v2214_v43  ;;  %v3239_v5 = vmul.f32 0.16666667, %v2983_v37  ;;  %v2218_v32 = vadd.f32 %v1962_v24, %v1541_v35  ;;  %v6751_v51 = vpop.f32.mrb[82].mxu0 }
 0x21c   : > { %v1963_v56 = vunpack.c.l.bf16 %v1781_v36  ;;  %v3748_v9 = vmul.f32 %v3492_v54, %v2212_v48  ;;  %v2472_v17 = vadd.f32 3.0, %v2216_v59  ;;  %v1543_v50 = vadd.f32 %v6453_v49, %v5792_v0  ;;  %v6753_v49 = vpop.f32.mrb[82].mxu1 }
 0x21d   : > { %v2985_v38 = vmin.f32 %v2729_v33, 6.0  ;;  %v3750_v53 = vmul.f32 %v3494_v13, %v2214_v43  ;;  %v3495_v30 = vmul.f32 %v3239_v5, %v2215_v14  ;;  %v2474_v55 = vadd.f32 3.0, %v2218_v32 }
 0x21e   : > { %v2219_v34 = vadd.f32 %v1963_v56, %v1190_v25  ;;  %v5194_v42 = vpack.c.bf16 %v3748_v9, %v3747_v39  ;;  %v2728_v47 = vmax.f32 %v2472_v17, 0.0  ;;  %v1965_v35 = vunpack.c.l.bf16 %v1782_v20 }
 0x21f   : > { %v3241_v26 = vmul.f32 0.16666667, %v2985_v38  ;;  %v5195_v48 = vpack.c.bf16 %v3750_v53, %v3749_v12  ;;  %v3751_v37 = vmul.f32 %v3495_v30, %v2215_v14  ;;  %v2730_v24 = vmax.f32 %v2474_v55, 0.0  ;;  %v1783_v14 = vld [vmem:[%s5772_s8 + $0x1c0] sm:$0xff] }
 0x220   : > { %v2475_v54 = vadd.f32 3.0, %v2219_v34  ;;  %4721 = vst [vmem:[%s6022_s13 + $0x190] sm:$0xff] %v5194_v42  ;;  %v2984_v43 = vmin.f32 %v2728_v47, 6.0  ;;  %v2221_v27 = vadd.f32 %v1965_v35, %v1543_v50  ;;  %v1192_v25 = vadd.f32 %v6455_v52, %v5794_v1  ;;  %v6764_v52 = vpop.f32.mrb[83].mxu0  ;;  %v1784_v35 = vld [vmem:[%s5772_s8 + $0x1c8] sm:$0xff] }
 0x221   : > { %v3497_v33 = vmul.f32 %v3241_v26, %v2217_v3  ;;  %4722 = vst [vmem:[%s6022_s13 + $0x198] sm:$0xff] %v5195_v48  ;;  %v2986_v39 = vmin.f32 %v2730_v24, 6.0  ;;  %v1964_v13 = vunpack.c.h.bf16 %v1781_v36  ;;  %v1545_v12 = vadd.f32 %v6467_v58, %v5796_v2  ;;  %7591 = vst [vmem:[#allocation31_spill] sm:$0xff] %v6764_v52 }
 0x222   : > { %v2731_v17 = vmax.f32 %v2475_v54, 0.0  ;;  %v3240_v56 = vmul.f32 0.16666667, %v2984_v43  ;;  %v2477_v9 = vadd.f32 3.0, %v2221_v27  ;;  %v1966_v38 = vunpack.c.h.bf16 %v1782_v20  ;;  %v6769_v20 = vpop.f32.mrb[83].mxu1 }
 0x223   : > { %v3753_v5 = vmul.f32 %v3497_v33, %v2217_v3  ;;  %v3242_v53 = vmul.f32 0.16666667, %v2986_v39  ;;  %v2220_v55 = vadd.f32 %v1964_v13, %v1192_v25  ;;  %v1196_v50 = vadd.f32 %v6477_v22, %v5790_v63 }
 0x224   : > { %v2987_v30 = vmin.f32 %v2731_v17, 6.0  ;;  %v3496_v42 = vmul.f32 %v3240_v56, %v2216_v59  ;;  %v2733_v26 = vmax.f32 %v2477_v9, 0.0  ;;  %v2222_v36 = vadd.f32 %v1966_v38, %v1545_v12 }
 0x225   : > { %v1967_v47 = vunpack.c.l.bf16 %v1783_v14  ;;  %v3498_v48 = vmul.f32 %v3242_v53, %v2218_v32  ;;  %v2476_v24 = vadd.f32 3.0, %v2220_v55  ;;  %v1549_v3 = vadd.f32 %v6479_v44, %v5792_v0 }
 0x226   : > { %v3243_v58 = vmul.f32 0.16666667, %v2987_v30  ;;  %v3752_v54 = vmul.f32 %v3496_v42, %v2216_v59  ;;  %v2989_v33 = vmin.f32 %v2733_v26, 6.0  ;;  %v2478_v43 = vadd.f32 3.0, %v2222_v36 }
 0x227   : > { %v2223_v22 = vadd.f32 %v1967_v47, %v1196_v50  ;;  %v3754_v25 = vmul.f32 %v3498_v48, %v2218_v32  ;;  %v2732_v17 = vmax.f32 %v2476_v24, 0.0  ;;  %v1969_v13 = vunpack.c.l.bf16 %v1784_v35 }
 0x228   : > { %v3499_v39 = vmul.f32 %v3243_v58, %v2219_v34  ;;  %v5196_v12 = vpack.c.bf16 %v3752_v54, %v3751_v37  ;;  %v3245_v56 = vmul.f32 0.16666667, %v2989_v33  ;;  %v2734_v9 = vmax.f32 %v2478_v43, 0.0  ;;  %v1785_v58 = vld [vmem:[%s5772_s8 + $0x1d0] sm:$0xff] }
 0x229   : > { %v2479_v38 = vadd.f32 3.0, %v2223_v22  ;;  %v5197_v53 = vpack.c.bf16 %v3754_v25, %v3753_v5  ;;  %v2988_v44 = vmin.f32 %v2732_v17, 6.0  ;;  %v2225_v52 = vadd.f32 %v1969_v13, %v1549_v3  ;;  %v6778_v5 = vpop.f32.mrb[84].mxu0 }
 0x22a   : > { %v3755_v30 = vmul.f32 %v3499_v39, %v2219_v34  ;;  %4723 = vst [vmem:[%s6022_s13 + $0x1a0] sm:$0xff] %v5196_v12  ;;  %v3501_v59 = vmul.f32 %v3245_v56, %v2221_v27  ;;  %v2990_v42 = vmin.f32 %v2734_v9, 6.0  ;;  %v1198_v32 = vadd.f32 %v6481_v60, %v5794_v1  ;;  %v6780_v34 = vpop.f32.mrb[84].mxu1  ;;  %v6782_v43 = vpop.f32.mrb[85].mxu0  ;;  %v1786_v56 = vld [vmem:[%s5772_s8 + $0x1d8] sm:$0xff] }
 0x22b   : > { %v2735_v26 = vmax.f32 %v2479_v38, 0.0  ;;  %4724 = vst [vmem:[%s6022_s13 + $0x1a8] sm:$0xff] %v5197_v53  ;;  %v3244_v50 = vmul.f32 0.16666667, %v2988_v44  ;;  %v2481_v47 = vadd.f32 3.0, %v2225_v52  ;;  %v1968_v48 = vunpack.c.h.bf16 %v1783_v14 }
 0x22c   : > { %v1551_v37 = vadd.f32 %v6497_v41, %v5796_v2  ;;  %v3757_v24 = vmul.f32 %v3501_v59, %v2221_v27  ;;  %v3246_v3 = vmul.f32 0.16666667, %v2990_v42  ;;  %v1970_v33 = vunpack.c.h.bf16 %v1784_v35  ;;  %v6789_v35 = vpop.f32.mrb[85].mxu1 }
 0x22d   : > { %v2991_v54 = vmin.f32 %v2735_v26, 6.0  ;;  %v3500_v60 = vmul.f32 %v3244_v50, %v2220_v55  ;;  %v2737_v25 = vmax.f32 %v2481_v47, 0.0  ;;  %v2224_v39 = vadd.f32 %v1968_v48, %v1198_v32  ;;  %v6791_v48 = vpop.f32.mrb[86].mxu0 }
 0x22e   : > { %v1200_v14 = vadd.f32 %v6503_v15, %v5790_v63  ;;  %v3502_v17 = vmul.f32 %v3246_v3, %v2222_v36  ;;  %v2226_v13 = vadd.f32 %v1970_v33, %v1551_v37  ;;  %v1971_v12 = vunpack.c.l.bf16 %v1785_v58 }
 0x22f   : > { %v3247_v41 = vmul.f32 0.16666667, %v2991_v54  ;;  %v3756_v9 = vmul.f32 %v3500_v60, %v2220_v55  ;;  %v2993_v38 = vmin.f32 %v2737_v25, 6.0  ;;  %v2480_v53 = vadd.f32 3.0, %v2224_v39  ;;  %v7593_v25 = vld [vmem:[#allocation8_spill] sm:$0xff] }
 0x230   : > { %v1553_v27 = vadd.f32 %v6505_v16, %v5792_v0  ;;  %v3758_v44 = vmul.f32 %v3502_v17, %v2222_v36  ;;  %v2482_v42 = vadd.f32 3.0, %v2226_v13  ;;  %v2227_v26 = vadd.f32 %v1971_v12, %v1200_v14  ;;  %v6793_v16 = vpop.f32.mrb[86].mxu1  ;;  %v7594_v12 = vld [vmem:[#allocation9_spill] sm:$0xff] }
 0x231   : > { %v3503_v59 = vmul.f32 %v3247_v41, %v2223_v22  ;;  %v5198_v15 = vpack.c.bf16 %v3756_v9, %v3755_v30  ;;  %v3249_v32 = vmul.f32 0.16666667, %v2993_v38  ;;  %v2736_v50 = vmax.f32 %v2480_v53, 0.0  ;;  %7592 = vst [vmem:[#allocation32_spill] sm:$0xff] %v6793_v16 }
 0x232   : > { %v1973_v47 = vunpack.c.l.bf16 %v1786_v56  ;;  %v5199_v55 = vpack.c.bf16 %v3758_v44, %v3757_v24  ;;  %v2738_v3 = vmax.f32 %v2482_v42, 0.0  ;;  %v2483_v54 = vadd.f32 3.0, %v2227_v26 }
 0x233   : > { %v3759_v37 = vmul.f32 %v3503_v59, %v2223_v22  ;;  %4725 = vst [vmem:[%s6022_s13 + $0x1b0] sm:$0xff] %v5198_v15  ;;  %v3505_v33 = vmul.f32 %v3249_v32, %v2225_v52  ;;  %v2992_v36 = vmin.f32 %v2736_v50, 6.0  ;;  %v1202_v14 = vadd.f32 %v7593_v25, %v5794_v1  ;;  %v1787_v22 = vld [vmem:[%s5772_s8 + $0x1e0] sm:$0xff]  ;;  %v6804_v32 = vpop.f32.mrb[87].mxu0 }
 0x234   : > { %v2229_v60 = vadd.f32 %v1973_v47, %v1553_v27  ;;  %4726 = vst [vmem:[%s6022_s13 + $0x1b8] sm:$0xff] %v5199_v55  ;;  %v2994_v30 = vmin.f32 %v2738_v3, 6.0  ;;  %v2739_v17 = vmax.f32 %v2483_v54, 0.0  ;;  %v1972_v41 = vunpack.c.h.bf16 %v1785_v58  ;;  %7595 = vst [vmem:[#allocation33_spill] sm:$0xff] %v6804_v32  ;;  %v1788_v3 = vld [vmem:[%s5772_s8 + $0x1e8] sm:$0xff] }
 0x235   : > { %v1555_v24 = vadd.f32 %v7594_v12, %v5796_v2  ;;  %v3761_v9 = vmul.f32 %v3505_v33, %v2225_v52  ;;  %v3248_v38 = vmul.f32 0.16666667, %v2992_v36  ;;  %v1974_v44 = vunpack.c.h.bf16 %v1786_v56  ;;  %v6809_v56 = vpop.f32.mrb[87].mxu1 }
 0x236   : > { %v2485_v53 = vadd.f32 3.0, %v2229_v60  ;;  %v3250_v59 = vmul.f32 0.16666667, %v2994_v30  ;;  %v2995_v42 = vmin.f32 %v2739_v17, 6.0  ;;  %v2228_v15 = vadd.f32 %v1972_v41, %v1202_v14 }
 0x237   : > { %v1206_v27 = vadd.f32 %v6534_v45, %v5790_v63  ;;  %v3504_v50 = vmul.f32 %v3248_v38, %v2224_v39  ;;  %v2230_v58 = vadd.f32 %v1974_v44, %v1555_v24  ;;  %v1975_v55 = vunpack.c.l.bf16 %v1787_v22 }
 0x238   : > { %v2741_v47 = vmax.f32 %v2485_v53, 0.0  ;;  %v3506_v54 = vmul.f32 %v3250_v59, %v2226_v13  ;;  %v3251_v25 = vmul.f32 0.16666667, %v2995_v42  ;;  %v2484_v12 = vadd.f32 3.0, %v2228_v15 }
 0x239   : > { %v1559_v52 = vadd.f32 %v6536_v46, %v5792_v0  ;;  %v3760_v33 = vmul.f32 %v3504_v50, %v2224_v39  ;;  %v2486_v14 = vadd.f32 3.0, %v2230_v58  ;;  %v2231_v45 = vadd.f32 %v1975_v55, %v1206_v27 }
 0x23a   : > { %v2997_v36 = vmin.f32 %v2741_v47, 6.0  ;;  %v3762_v30 = vmul.f32 %v3506_v54, %v2226_v13  ;;  %v3507_v17 = vmul.f32 %v3251_v25, %v2227_v26  ;;  %v2740_v41 = vmax.f32 %v2484_v12, 0.0  ;;  %v1789_v25 = vld [vmem:[%s5772_s8 + $0x1f0] sm:$0xff] }
 0x23b   : > { %v1977_v24 = vunpack.c.l.bf16 %v1788_v3  ;;  %v5200_v38 = vpack.c.bf16 %v3760_v33, %v3759_v37  ;;  %v2742_v44 = vmax.f32 %v2486_v14, 0.0  ;;  %v2487_v59 = vadd.f32 3.0, %v2231_v45 }
 0x23c   : > { %v3253_v53 = vmul.f32 0.16666667, %v2997_v36  ;;  %v5201_v42 = vpack.c.bf16 %v3762_v30, %v3761_v9  ;;  %v3763_v32 = vmul.f32 %v3507_v17, %v2227_v26  ;;  %v2996_v46 = vmin.f32 %v2740_v41, 6.0  ;;  %v6818_v9 = vpop.f32.mrb[88].mxu0  ;;  %v6820_v26 = vpop.f32.mrb[88].mxu1 }
 0x23d   : > { %v2233_v16 = vadd.f32 %v1977_v24, %v1559_v52  ;;  %4727 = vst [vmem:[%s6022_s13 + $0x1c0] sm:$0xff] %v5200_v38  ;;  %v2998_v50 = vmin.f32 %v2742_v44, 6.0  ;;  %v2743_v47 = vmax.f32 %v2487_v59, 0.0  ;;  %v1208_v13 = vadd.f32 %v6542_v19, %v5794_v1  ;;  %v6822_v14 = vpop.f32.mrb[89].mxu0 }
 0x23e   : > { %v3509_v39 = vmul.f32 %v3253_v53, %v2229_v60  ;;  %4728 = vst [vmem:[%s6022_s13 + $0x1c8] sm:$0xff] %v5201_v42  ;;  %v3252_v27 = vmul.f32 0.16666667, %v2996_v46  ;;  %v1976_v54 = vunpack.c.h.bf16 %v1787_v22  ;;  %v1561_v37 = vadd.f32 %v6549_v10, %v5796_v2  ;;  %v1790_v53 = vld [vmem:[%s5772_s8 + $0x1f8] sm:$0xff] }
 0x23f   : > { %v2489_v55 = vadd.f32 3.0, %v2233_v16  ;;  %v3254_v52 = vmul.f32 0.16666667, %v2998_v50  ;;  %v2999_v33 = vmin.f32 %v2743_v47, 6.0  ;;  %v1978_v36 = vunpack.c.h.bf16 %v1788_v3  ;;  %v6829_v3 = vpop.f32.mrb[89].mxu1 }
 0x240   : > { %v3765_v12 = vmul.f32 %v3509_v39, %v2229_v60  ;;  %v3508_v19 = vmul.f32 %v3252_v27, %v2228_v15  ;;  %v2232_v17 = vadd.f32 %v1976_v54, %v1208_v13  ;;  %v1210_v22 = vadd.f32 %v6551_v8, %v5790_v63  ;;  %v6831_v54 = vpop.f32.mrb[90].mxu0 }
 0x241   : > { %v2745_v30 = vmax.f32 %v2489_v55, 0.0  ;;  %v3510_v41 = vmul.f32 %v3254_v52, %v2230_v58  ;;  %v3255_v10 = vmul.f32 0.16666667, %v2999_v33  ;;  %v2234_v24 = vadd.f32 %v1978_v36, %v1561_v37 }
 0x242   : > { %v1979_v38 = vunpack.c.l.bf16 %v1789_v25  ;;  %v3764_v44 = vmul.f32 %v3508_v19, %v2228_v15  ;;  %v2488_v42 = vadd.f32 3.0, %v2232_v17  ;;  %v1563_v60 = vadd.f32 %v6553_v28, %v5792_v0  ;;  %v6833_v28 = vpop.f32.mrb[90].mxu1 }
 0x243   : > { %v3001_v59 = vmin.f32 %v2745_v30, 6.0  ;;  %v3766_v46 = vmul.f32 %v3510_v41, %v2230_v58  ;;  %v3511_v39 = vmul.f32 %v3255_v10, %v2231_v45  ;;  %v2490_v50 = vadd.f32 3.0, %v2234_v24 }
 0x244   : > { %v2235_v47 = vadd.f32 %v1979_v38, %v1210_v22  ;;  %v5202_v8 = vpack.c.bf16 %v3764_v44, %v3763_v32  ;;  %v2744_v27 = vmax.f32 %v2488_v42, 0.0  ;;  %v1981_v55 = vunpack.c.l.bf16 %v1790_v53 }
 0x245   : > { %v3257_v13 = vmul.f32 0.16666667, %v3001_v59  ;;  %v5203_v15 = vpack.c.bf16 %v3766_v46, %v3765_v12  ;;  %v3767_v37 = vmul.f32 %v3511_v39, %v2231_v45  ;;  %v2746_v52 = vmax.f32 %v2490_v50, 0.0  ;;  %v1791_v45 = vld [vmem:[%s5772_s8 + $0x200] sm:$0xff] }
 0x246   : > { %v2491_v33 = vadd.f32 3.0, %v2235_v47  ;;  %4729 = vst [vmem:[%s6022_s13 + $0x1d0] sm:$0xff] %v5202_v8  ;;  %v3000_v58 = vmin.f32 %v2744_v27, 6.0  ;;  %v2237_v19 = vadd.f32 %v1981_v55, %v1563_v60  ;;  %v1212_v30 = vadd.f32 %v6564_v61, %v5794_v1  ;;  %v6844_v61 = vpop.f32.mrb[91].mxu0  ;;  %v1792_v27 = vld [vmem:[%s5772_s8 + $0x208] sm:$0xff] }
 0x247   : > { %v3513_v36 = vmul.f32 %v3257_v13, %v2233_v16  ;;  %4730 = vst [vmem:[%s6022_s13 + $0x1d8] sm:$0xff] %v5203_v15  ;;  %v3002_v32 = vmin.f32 %v2746_v52, 6.0  ;;  %v1980_v41 = vunpack.c.h.bf16 %v1789_v25  ;;  %v1565_v12 = vadd.f32 %v6569_v57, %v5796_v2  ;;  %7596 = vst [vmem:[#allocation6_spill] sm:$0xff] %v6844_v61 }
 0x248   : > { %v2747_v22 = vmax.f32 %v2491_v33, 0.0  ;;  %v3256_v38 = vmul.f32 0.16666667, %v3000_v58  ;;  %v2493_v44 = vadd.f32 3.0, %v2237_v19  ;;  %v1982_v59 = vunpack.c.h.bf16 %v1790_v53  ;;  %v6849_v53 = vpop.f32.mrb[91].mxu1 }
 0x249   : > { %v3769_v10 = vmul.f32 %v3513_v36, %v2233_v16  ;;  %v3258_v42 = vmul.f32 0.16666667, %v3002_v32  ;;  %v2236_v39 = vadd.f32 %v1980_v41, %v1212_v30  ;;  %v1216_v60 = vadd.f32 %v6578_v7, %v5790_v63  ;;  %v7597_v16 = vld [vmem:[#allocation10_spill] sm:$0xff] }
 0x24a   : > { %v3003_v46 = vmin.f32 %v2747_v22, 6.0  ;;  %v3512_v50 = vmul.f32 %v3256_v38, %v2232_v17  ;;  %v2749_v8 = vmax.f32 %v2493_v44, 0.0  ;;  %v2238_v25 = vadd.f32 %v1982_v59, %v1565_v12 }
 0x24b   : > { %v1983_v13 = vunpack.c.l.bf16 %v1791_v45  ;;  %v3514_v55 = vmul.f32 %v3258_v42, %v2234_v24  ;;  %v2492_v15 = vadd.f32 3.0, %v2236_v39  ;;  %v1569_v52 = vadd.f32 %v7597_v16, %v5792_v0 }
 0x24c   : > { %v3259_v57 = vmul.f32 0.16666667, %v3003_v46  ;;  %v3768_v33 = vmul.f32 %v3512_v50, %v2232_v17  ;;  %v3005_v36 = vmin.f32 %v2749_v8, 6.0  ;;  %v2494_v58 = vadd.f32 3.0, %v2238_v25 }
 0x24d   : > { %v2239_v7 = vadd.f32 %v1983_v13, %v1216_v60  ;;  %v3770_v30 = vmul.f32 %v3514_v55, %v2234_v24  ;;  %v2748_v22 = vmax.f32 %v2492_v15, 0.0  ;;  %v1985_v41 = vunpack.c.l.bf16 %v1792_v27  ;;  %v7598_v60 = vld [vmem:[#allocation11_spill] sm:$0xff] }
 0x24e   : > { %v3515_v32 = vmul.f32 %v3259_v57, %v2235_v47  ;;  %v5204_v12 = vpack.c.bf16 %v3768_v33, %v3767_v37  ;;  %v3261_v38 = vmul.f32 0.16666667, %v3005_v36  ;;  %v2750_v44 = vmax.f32 %v2494_v58, 0.0  ;;  %v7599_v37 = vld [vmem:[#allocation20_spill] sm:$0xff] }
 0x24f   : > { %v2495_v59 = vadd.f32 3.0, %v2239_v7  ;;  %v5205_v42 = vpack.c.bf16 %v3770_v30, %v3769_v10  ;;  %v3004_v16 = vmin.f32 %v2748_v22, 6.0  ;;  %v2241_v61 = vadd.f32 %v1985_v41, %v1569_v52  ;;  %v1793_v33 = vld [vmem:[%s5772_s8 + $0x210] sm:$0xff]  ;;  %v6858_v10 = vpop.f32.mrb[92].mxu0 }
 0x250   : > { %v3771_v46 = vmul.f32 %v3515_v32, %v2235_v47  ;;  %4731 = vst [vmem:[%s6022_s13 + $0x1e0] sm:$0xff] %v5204_v12  ;;  %v3517_v17 = vmul.f32 %v3261_v38, %v2237_v19  ;;  %v3006_v50 = vmin.f32 %v2750_v44, 6.0  ;;  %v1218_v24 = vadd.f32 %v7598_v60, %v5794_v1  ;;  %7600 = vst [vmem:[#allocation7_spill] sm:$0xff] %v6858_v10  ;;  %v6860_v47 = vpop.f32.mrb[92].mxu1  ;;  %v6862_v32 = vpop.f32.mrb[93].mxu0  ;;  %v1794_v60 = vld [vmem:[%s5772_s8 + $0x218] sm:$0xff] }
 0x251   : > { %v2751_v8 = vmax.f32 %v2495_v59, 0.0  ;;  %4732 = vst [vmem:[%s6022_s13 + $0x1e8] sm:$0xff] %v5205_v42  ;;  %v3260_v13 = vmul.f32 0.16666667, %v3004_v16  ;;  %v2497_v55 = vadd.f32 3.0, %v2241_v61  ;;  %v1984_v57 = vunpack.c.h.bf16 %v1791_v45  ;;  %7601 = vst [vmem:[#allocation34_spill] sm:$0xff] %v6860_v47 }
 0x252   : > { %v1571_v15 = vadd.f32 %v7599_v37, %v5796_v2  ;;  %v3773_v52 = vmul.f32 %v3517_v17, %v2237_v19  ;;  %v3262_v36 = vmul.f32 0.16666667, %v3006_v50  ;;  %v1986_v30 = vunpack.c.h.bf16 %v1792_v27  ;;  %7602 = vst [vmem:[#allocation35_spill] sm:$0xff] %v6862_v32  ;;  %v7603_v45 = vld [vmem:[#allocation12_spill] sm:$0xff]  ;;  %v7604_v19 = vld [vmem:[#allocation13_spill] sm:$0xff]  ;;  %v6869_v27 = vpop.f32.mrb[93].mxu1 }
 0x253   : > { %v3007_v58 = vmin.f32 %v2751_v8, 6.0  ;;  %v3516_v22 = vmul.f32 %v3260_v13, %v2236_v39  ;;  %v2753_v41 = vmax.f32 %v2497_v55, 0.0  ;;  %v2240_v12 = vadd.f32 %v1984_v57, %v1218_v24  ;;  %7605 = vst [vmem:[#allocation36_spill] sm:$0xff] %v6869_v27 }
 0x254   : > { %v1220_v38 = vadd.f32 %v7603_v45, %v5790_v63  ;;  %v3518_v44 = vmul.f32 %v3262_v36, %v2238_v25  ;;  %v2242_v42 = vadd.f32 %v1986_v30, %v1571_v15  ;;  %v1987_v16 = vunpack.c.l.bf16 %v1793_v33  ;;  %v6873_v45 = vpop.f32.mrb[94].mxu1 }
 0x255   : > { %v3263_v59 = vmul.f32 0.16666667, %v3007_v58  ;;  %v3772_v37 = vmul.f32 %v3516_v22, %v2236_v39  ;;  %v3009_v10 = vmin.f32 %v2753_v41, 6.0  ;;  %v2496_v47 = vadd.f32 3.0, %v2240_v12  ;;  %v6871_v58 = vpop.f32.mrb[94].mxu0  ;;  %7607 = vst [vmem:[#allocation9_spill] sm:$0xff] %v6873_v45 }
 0x256   : > { %v1573_v17 = vadd.f32 %v7604_v19, %v5792_v0  ;;  %v3774_v50 = vmul.f32 %v3518_v44, %v2238_v25  ;;  %v2498_v24 = vadd.f32 3.0, %v2242_v42  ;;  %v2243_v13 = vadd.f32 %v1987_v16, %v1220_v38  ;;  %7606 = vst [vmem:[#allocation8_spill] sm:$0xff] %v6871_v58  ;;  %v7608_v38 = vld [vmem:[#allocation21_spill] sm:$0xff] }
 0x257   : > { %v3519_v8 = vmul.f32 %v3263_v59, %v2239_v7  ;;  %v5206_v55 = vpack.c.bf16 %v3772_v37, %v3771_v46  ;;  %v3265_v57 = vmul.f32 0.16666667, %v3009_v10  ;;  %v2752_v36 = vmax.f32 %v2496_v47, 0.0 }
 0x258   : > { %v1989_v15 = vunpack.c.l.bf16 %v1794_v60  ;;  %v5207_v39 = vpack.c.bf16 %v3774_v50, %v3773_v52  ;;  %v2754_v22 = vmax.f32 %v2498_v24, 0.0  ;;  %v2499_v41 = vadd.f32 3.0, %v2243_v13 }
 0x259   : > { %v3775_v30 = vmul.f32 %v3519_v8, %v2239_v7  ;;  %4733 = vst [vmem:[%s6022_s13 + $0x1f0] sm:$0xff] %v5206_v55  ;;  %v3521_v19 = vmul.f32 %v3265_v57, %v2241_v61  ;;  %v3008_v25 = vmin.f32 %v2752_v36, 6.0  ;;  %v1222_v59 = vadd.f32 %v7608_v38, %v5794_v1  ;;  %v1795_v7 = vld [vmem:[%s5772_s8 + $0x220] sm:$0xff]  ;;  %v1796_v38 = vld [vmem:[%s5772_s8 + $0x228] sm:$0xff] }
 0x25a   : > { %v2245_v44 = vadd.f32 %v1989_v15, %v1573_v17  ;;  %4734 = vst [vmem:[%s6022_s13 + $0x1f8] sm:$0xff] %v5207_v39  ;;  %v3010_v46 = vmin.f32 %v2754_v22, 6.0  ;;  %v2755_v10 = vmax.f32 %v2499_v41, 0.0  ;;  %v1988_v47 = vunpack.c.h.bf16 %v1793_v33  ;;  %v7609_v17 = vld [vmem:[#allocation22_spill] sm:$0xff]  ;;  %v6884_v15 = vpop.f32.mrb[95].mxu0 }
 0x25b   : > { %v1575_v52 = vadd.f32 %v6609_v21, %v5796_v2  ;;  %v3777_v16 = vmul.f32 %v3521_v19, %v2241_v61  ;;  %v3264_v37 = vmul.f32 0.16666667, %v3008_v25  ;;  %v1990_v8 = vunpack.c.h.bf16 %v1794_v60  ;;  %7610 = vst [vmem:[#allocation10_spill] sm:$0xff] %v6884_v15  ;;  %v7611_v61 = vld [vmem:[#allocation23_spill] sm:$0xff]  ;;  %v6889_v60 = vpop.f32.mrb[95].mxu1 }
 0x25c   : > { %v2501_v50 = vadd.f32 3.0, %v2245_v44  ;;  %v3266_v24 = vmul.f32 0.16666667, %v3010_v46  ;;  %v3011_v55 = vmin.f32 %v2755_v10, 6.0  ;;  %v2244_v57 = vadd.f32 %v1988_v47, %v1222_v59 }
 0x25d   : > { %v1226_v36 = vadd.f32 %v7609_v17, %v5790_v63  ;;  %v3520_v39 = vmul.f32 %v3264_v37, %v2240_v12  ;;  %v2246_v33 = vadd.f32 %v1990_v8, %v1575_v52  ;;  %v1991_v41 = vunpack.c.l.bf16 %v1795_v7 }
 0x25e   : > { %v2757_v22 = vmax.f32 %v2501_v50, 0.0  ;;  %v3522_v45 = vmul.f32 %v3266_v24, %v2242_v42  ;;  %v3267_v21 = vmul.f32 0.16666667, %v3011_v55  ;;  %v2500_v58 = vadd.f32 3.0, %v2244_v57 }
 0x25f   : > { %v1579_v19 = vadd.f32 %v7611_v61, %v5792_v0  ;;  %v3776_v25 = vmul.f32 %v3520_v39, %v2240_v12  ;;  %v2502_v46 = vadd.f32 3.0, %v2246_v33  ;;  %v2247_v10 = vadd.f32 %v1991_v41, %v1226_v36 }
 0x260   : > { %v3013_v59 = vmin.f32 %v2757_v22, 6.0  ;;  %v3778_v47 = vmul.f32 %v3522_v45, %v2242_v42  ;;  %v3523_v17 = vmul.f32 %v3267_v21, %v2243_v13  ;;  %v2756_v37 = vmax.f32 %v2500_v58, 0.0  ;;  %v1797_v21 = vld [vmem:[%s5772_s8 + $0x230] sm:$0xff] }
 0x261   : > { %v1993_v52 = vunpack.c.l.bf16 %v1796_v38  ;;  %v5208_v50 = vpack.c.bf16 %v3776_v25, %v3775_v30  ;;  %v2758_v24 = vmax.f32 %v2502_v46, 0.0  ;;  %v2503_v55 = vadd.f32 3.0, %v2247_v10  ;;  %v7612_v30 = vld [vmem:[#allocation24_spill] sm:$0xff] }
 0x262   : > { %v3269_v8 = vmul.f32 0.16666667, %v3013_v59  ;;  %v5209_v15 = vpack.c.bf16 %v3778_v47, %v3777_v16  ;;  %v3779_v27 = vmul.f32 %v3523_v17, %v2243_v13  ;;  %v3012_v61 = vmin.f32 %v2756_v37, 6.0  ;;  %v6898_v16 = vpop.f32.mrb[96].mxu0  ;;  %v6900_v13 = vpop.f32.mrb[96].mxu1 }
 0x263   : > { %v2249_v32 = vadd.f32 %v1993_v52, %v1579_v19  ;;  %4735 = vst [vmem:[%s6022_s13 + $0x200] sm:$0xff] %v5208_v50  ;;  %v3014_v39 = vmin.f32 %v2758_v24, 6.0  ;;  %v2759_v22 = vmax.f32 %v2503_v55, 0.0  ;;  %v1228_v42 = vadd.f32 %v6622_v29, %v5794_v1  ;;  %7613 = vst [vmem:[#allocation11_spill] sm:$0xff] %v6900_v13  ;;  %v6902_v47 = vpop.f32.mrb[97].mxu0  ;;  %v1798_v55 = vld [vmem:[%s5772_s8 + $0x238] sm:$0xff] }
 0x264   : > { %v3525_v12 = vmul.f32 %v3269_v8, %v2245_v44  ;;  %4736 = vst [vmem:[%s6022_s13 + $0x208] sm:$0xff] %v5209_v15  ;;  %v3268_v45 = vmul.f32 0.16666667, %v3012_v61  ;;  %v1992_v36 = vunpack.c.h.bf16 %v1795_v7  ;;  %v1581_v41 = vadd.f32 %v7612_v30, %v5796_v2  ;;  %7614 = vst [vmem:[#allocation20_spill] sm:$0xff] %v6902_v47  ;;  %v7615_v7 = vld [vmem:[#allocation25_spill] sm:$0xff] }
 0x265   : > { %v2505_v58 = vadd.f32 3.0, %v2249_v32  ;;  %v3270_v25 = vmul.f32 0.16666667, %v3014_v39  ;;  %v3015_v59 = vmin.f32 %v2759_v22, 6.0  ;;  %v1994_v46 = vunpack.c.h.bf16 %v1796_v38  ;;  %v6909_v38 = vpop.f32.mrb[97].mxu1 }
 0x266   : > { %v3781_v19 = vmul.f32 %v3525_v12, %v2245_v44  ;;  %v3524_v29 = vmul.f32 %v3268_v45, %v2244_v57  ;;  %v2248_v17 = vadd.f32 %v1992_v36, %v1228_v42  ;;  %v1230_v37 = vadd.f32 %v7615_v7, %v5790_v63  ;;  %v7616_v44 = vld [vmem:[#allocation26_spill] sm:$0xff]  ;;  %7617 = vst [vmem:[#allocation12_spill] sm:$0xff] %v6909_v38  ;;  %v6913_v7 = vpop.f32.mrb[98].mxu1 }
 0x267   : > { %v2761_v15 = vmax.f32 %v2505_v58, 0.0  ;;  %v3526_v52 = vmul.f32 %v3270_v25, %v2246_v33  ;;  %v3271_v50 = vmul.f32 0.16666667, %v3015_v59  ;;  %v2250_v8 = vadd.f32 %v1994_v46, %v1581_v41  ;;  %v6911_v59 = vpop.f32.mrb[98].mxu0  ;;  %7619 = vst [vmem:[#allocation21_spill] sm:$0xff] %v6913_v7 }
 0x268   : > { %v1995_v24 = vunpack.c.l.bf16 %v1797_v21  ;;  %v3780_v61 = vmul.f32 %v3524_v29, %v2244_v57  ;;  %v2504_v13 = vadd.f32 3.0, %v2248_v17  ;;  %v1583_v12 = vadd.f32 %v7616_v44, %v5792_v0  ;;  %7618 = vst [vmem:[#allocation13_spill] sm:$0xff] %v6911_v59 }
 0x269   : > { %v3017_v30 = vmin.f32 %v2761_v15, 6.0  ;;  %v3782_v39 = vmul.f32 %v3526_v52, %v2246_v33  ;;  %v3527_v22 = vmul.f32 %v3271_v50, %v2247_v10  ;;  %v2506_v42 = vadd.f32 3.0, %v2250_v8 }
 0x26a   : > { %v2251_v45 = vadd.f32 %v1995_v24, %v1230_v37  ;;  %v5210_v58 = vpack.c.bf16 %v3780_v61, %v3779_v27  ;;  %v2760_v25 = vmax.f32 %v2504_v13, 0.0  ;;  %v1997_v41 = vunpack.c.l.bf16 %v1798_v55  ;;  %v7620_v37 = vld [vmem:[#allocation27_spill] sm:$0xff] }
 0x26b   : > { %v3273_v36 = vmul.f32 0.16666667, %v3017_v30  ;;  %v5211_v57 = vpack.c.bf16 %v3782_v39, %v3781_v19  ;;  %v3783_v46 = vmul.f32 %v3527_v22, %v2247_v10  ;;  %v2762_v29 = vmax.f32 %v2506_v42, 0.0  ;;  %v1799_v10 = vld [vmem:[%s5772_s8 + $0x240] sm:$0xff] }
 0x26c   : > { %v2507_v15 = vadd.f32 3.0, %v2251_v45  ;;  %4737 = vst [vmem:[%s6022_s13 + $0x210] sm:$0xff] %v5210_v58  ;;  %v3016_v33 = vmin.f32 %v2760_v25, 6.0  ;;  %v2253_v52 = vadd.f32 %v1997_v41, %v1583_v12  ;;  %v1232_v50 = vadd.f32 %v7620_v37, %v5794_v1  ;;  %v7621_v12 = vld [vmem:[#allocation14_spill] sm:$0xff]  ;;  %v6924_v41 = vpop.f32.mrb[99].mxu0  ;;  %v1800_v37 = vld [vmem:[%s5772_s8 + $0x248] sm:$0xff] }
 0x26d   : > { %v3529_v44 = vmul.f32 %v3273_v36, %v2249_v32  ;;  %4738 = vst [vmem:[%s6022_s13 + $0x218] sm:$0xff] %v5211_v57  ;;  %v3018_v27 = vmin.f32 %v2762_v29, 6.0  ;;  %v1996_v24 = vunpack.c.h.bf16 %v1797_v21  ;;  %v1585_v19 = vadd.f32 %v6649_v11, %v5796_v2  ;;  %7622 = vst [vmem:[#allocation22_spill] sm:$0xff] %v6924_v41 }
 0x26e   : > { %v2763_v13 = vmax.f32 %v2507_v15, 0.0  ;;  %v3272_v30 = vmul.f32 0.16666667, %v3016_v33  ;;  %v2509_v39 = vadd.f32 3.0, %v2253_v52  ;;  %v1998_v22 = vunpack.c.h.bf16 %v1798_v55  ;;  %v6929_v55 = vpop.f32.mrb[99].mxu1 }
 0x26f   : > { %v3785_v61 = vmul.f32 %v3529_v44, %v2249_v32  ;;  %v3274_v42 = vmul.f32 0.16666667, %v3018_v27  ;;  %v2252_v36 = vadd.f32 %v1996_v24, %v1232_v50  ;;  %v1236_v25 = vadd.f32 %v7621_v12, %v5790_v63  ;;  %v7623_v32 = vld [vmem:[#allocation28_spill] sm:$0xff] }
 0x270   : > { %v3019_v58 = vmin.f32 %v2763_v13, 6.0  ;;  %v3528_v57 = vmul.f32 %v3272_v30, %v2248_v17  ;;  %v2765_v29 = vmax.f32 %v2509_v39, 0.0  ;;  %v2254_v21 = vadd.f32 %v1998_v22, %v1585_v19 }
 0x271   : > { %v1999_v15 = vunpack.c.l.bf16 %v1799_v10  ;;  %v3530_v7 = vmul.f32 %v3274_v42, %v2250_v8  ;;  %v2508_v59 = vadd.f32 3.0, %v2252_v36  ;;  %v1589_v44 = vadd.f32 %v7623_v32, %v5792_v0 }
 0x272   : > { %v3275_v11 = vmul.f32 0.16666667, %v3019_v58  ;;  %v3784_v33 = vmul.f32 %v3528_v57, %v2248_v17  ;;  %v3021_v50 = vmin.f32 %v2765_v29, 6.0  ;;  %v2510_v27 = vadd.f32 3.0, %v2254_v21 }
 0x273   : > { %v2255_v13 = vadd.f32 %v1999_v15, %v1236_v25  ;;  %v3786_v24 = vmul.f32 %v3530_v7, %v2250_v8  ;;  %v2764_v30 = vmax.f32 %v2508_v59, 0.0  ;;  %v2001_v19 = vunpack.c.l.bf16 %v1800_v37  ;;  %v7624_v25 = vld [vmem:[#allocation29_spill] sm:$0xff] }
 0x274   : > { %v3531_v12 = vmul.f32 %v3275_v11, %v2251_v45  ;;  %v5212_v39 = vpack.c.bf16 %v3784_v33, %v3783_v46  ;;  %v3277_v22 = vmul.f32 0.16666667, %v3021_v50  ;;  %v2766_v42 = vmax.f32 %v2510_v27, 0.0  ;;  %v7625_v46 = vld [vmem:[#allocation2_spill] sm:$0xff]  ;;  %v1801_v33 = vld [vmem:[%s5772_s8 + $0x250] sm:$0xff] }
 0x275   : > { %v2511_v58 = vadd.f32 3.0, %v2255_v13  ;;  %v5213_v41 = vpack.c.bf16 %v3786_v24, %v3785_v61  ;;  %v3020_v32 = vmin.f32 %v2764_v30, 6.0  ;;  %v2257_v47 = vadd.f32 %v2001_v19, %v1589_v44  ;;  %v6938_v61 = vpop.f32.mrb[100].mxu0 }
 0x276   : > { %v3787_v38 = vmul.f32 %v3531_v12, %v2251_v45  ;;  %4739 = vst [vmem:[%s6022_s13 + $0x220] sm:$0xff] %v5212_v39  ;;  %v3533_v17 = vmul.f32 %v3277_v22, %v2253_v52  ;;  %v3022_v57 = vmin.f32 %v2766_v42, 6.0  ;;  %v1238_v8 = vadd.f32 %v7624_v25, %v5794_v1  ;;  %7626 = vst [vmem:[#allocation23_spill] sm:$0xff] %v6938_v61  ;;  %v6940_v45 = vpop.f32.mrb[100].mxu1  ;;  %v6942_v12 = vpop.f32.mrb[101].mxu0  ;;  %v1802_v25 = vld [vmem:[%s5772_s8 + $0x258] sm:$0xff] }
 0x277   : > { %v2767_v29 = vmax.f32 %v2511_v58, 0.0  ;;  %4740 = vst [vmem:[%s6022_s13 + $0x228] sm:$0xff] %v5213_v41  ;;  %v3276_v7 = vmul.f32 0.16666667, %v3020_v32  ;;  %v2513_v59 = vadd.f32 3.0, %v2257_v47  ;;  %v2000_v15 = vunpack.c.h.bf16 %v1799_v10  ;;  %7627 = vst [vmem:[#allocation24_spill] sm:$0xff] %v6940_v45 }
 0x278   : > { %v1591_v11 = vadd.f32 %v7625_v46, %v5796_v2  ;;  %v3789_v44 = vmul.f32 %v3533_v17, %v2253_v52  ;;  %v3278_v50 = vmul.f32 0.16666667, %v3022_v57  ;;  %v2002_v24 = vunpack.c.h.bf16 %v1800_v37  ;;  %7628 = vst [vmem:[#allocation25_spill] sm:$0xff] %v6942_v12  ;;  %v7629_v10 = vld [vmem:[#allocation3_spill] sm:$0xff]  ;;  %v6949_v37 = vpop.f32.mrb[101].mxu1 }
 0x279   : > { %v3023_v27 = vmin.f32 %v2767_v29, 6.0  ;;  %v3532_v30 = vmul.f32 %v3276_v7, %v2252_v36  ;;  %v2769_v41 = vmax.f32 %v2513_v59, 0.0  ;;  %v2256_v19 = vadd.f32 %v2000_v15, %v1238_v8  ;;  %v7630_v52 = vld [vmem:[#allocation15_spill] sm:$0xff]  ;;  %7631 = vst [vmem:[#allocation26_spill] sm:$0xff] %v6949_v37 }
 0x27a   : > { %v1240_v39 = vadd.f32 %v7629_v10, %v5790_v63  ;;  %v3534_v22 = vmul.f32 %v3278_v50, %v2254_v21  ;;  %v2258_v58 = vadd.f32 %v2002_v24, %v1591_v11  ;;  %v2003_v32 = vunpack.c.l.bf16 %v1801_v33  ;;  %v6953_v10 = vpop.f32.mrb[102].mxu1 }
 0x27b   : > { %v3279_v42 = vmul.f32 0.16666667, %v3023_v27  ;;  %v3788_v46 = vmul.f32 %v3532_v30, %v2252_v36  ;;  %v3025_v61 = vmin.f32 %v2769_v41, 6.0  ;;  %v2512_v45 = vadd.f32 3.0, %v2256_v19  ;;  %v6951_v27 = vpop.f32.mrb[102].mxu0  ;;  %7633 = vst [vmem:[#allocation14_spill] sm:$0xff] %v6953_v10 }
 0x27c   : > { %v1593_v17 = vadd.f32 %v7630_v52, %v5792_v0  ;;  %v3790_v57 = vmul.f32 %v3534_v22, %v2254_v21  ;;  %v2514_v8 = vadd.f32 3.0, %v2258_v58  ;;  %v2259_v7 = vadd.f32 %v2003_v32, %v1240_v39  ;;  %7632 = vst [vmem:[#allocation27_spill] sm:$0xff] %v6951_v27  ;;  %v7634_v39 = vld [vmem:[#allocation16_spill] sm:$0xff] }
 0x27d   : > { %v3535_v29 = vmul.f32 %v3279_v42, %v2255_v13  ;;  %v5214_v59 = vpack.c.bf16 %v3788_v46, %v3787_v38  ;;  %v3281_v15 = vmul.f32 0.16666667, %v3025_v61  ;;  %v2768_v50 = vmax.f32 %v2512_v45, 0.0 }
 0x27e   : > { %v2005_v11 = vunpack.c.l.bf16 %v1802_v25  ;;  %v5215_v36 = vpack.c.bf16 %v3790_v57, %v3789_v44  ;;  %v2770_v30 = vmax.f32 %v2514_v8, 0.0  ;;  %v2515_v41 = vadd.f32 3.0, %v2259_v7 }
 0x27f   : > { %v3791_v24 = vmul.f32 %v3535_v29, %v2255_v13  ;;  %4741 = vst [vmem:[%s6022_s13 + $0x230] sm:$0xff] %v5214_v59  ;;  %v3537_v52 = vmul.f32 %v3281_v15, %v2257_v47  ;;  %v3024_v21 = vmin.f32 %v2768_v50, 6.0  ;;  %v1242_v42 = vadd.f32 %v7634_v39, %v5794_v1  ;;  %v1803_v13 = vld [vmem:[%s5772_s8 + $0x260] sm:$0xff]  ;;  %v1804_v39 = vld [vmem:[%s5772_s8 + $0x268] sm:$0xff] }
 0x280   : > { %v2261_v22 = vadd.f32 %v2005_v11, %v1593_v17  ;;  %4742 = vst [vmem:[%s6022_s13 + $0x238] sm:$0xff] %v5215_v36  ;;  %v3026_v38 = vmin.f32 %v2770_v30, 6.0  ;;  %v2771_v61 = vmax.f32 %v2515_v41, 0.0  ;;  %v2004_v45 = vunpack.c.h.bf16 %v1801_v33  ;;  %v7635_v17 = vld [vmem:[#allocation17_spill] sm:$0xff]  ;;  %v6964_v11 = vpop.f32.mrb[103].mxu0 }
 0x281   : > { %v1595_v44 = vadd.f32 %v6689_v4, %v5796_v2  ;;  %v3793_v32 = vmul.f32 %v3537_v52, %v2257_v47  ;;  %v3280_v46 = vmul.f32 0.16666667, %v3024_v21  ;;  %v2006_v29 = vunpack.c.h.bf16 %v1802_v25  ;;  %7636 = vst [vmem:[#allocation28_spill] sm:$0xff] %v6964_v11  ;;  %v7637_v47 = vld [vmem:[#allocation18_spill] sm:$0xff]  ;;  %v6969_v25 = vpop.f32.mrb[103].mxu1 }
 0x282   : > { %v2517_v57 = vadd.f32 3.0, %v2261_v22  ;;  %v3282_v8 = vmul.f32 0.16666667, %v3026_v38  ;;  %v3027_v59 = vmin.f32 %v2771_v61, 6.0  ;;  %v2260_v15 = vadd.f32 %v2004_v45, %v1242_v42 }
 0x283   : > { %v1246_v50 = vadd.f32 %v7635_v17, %v5790_v63  ;;  %v3536_v36 = vmul.f32 %v3280_v46, %v2256_v19  ;;  %v2262_v33 = vadd.f32 %v2006_v29, %v1595_v44  ;;  %v2007_v41 = vunpack.c.l.bf16 %v1803_v13 }
 0x284   : > { %v2773_v30 = vmax.f32 %v2517_v57, 0.0  ;;  %v3538_v10 = vmul.f32 %v3282_v8, %v2258_v58  ;;  %v3283_v4 = vmul.f32 0.16666667, %v3027_v59  ;;  %v2516_v27 = vadd.f32 3.0, %v2260_v15 }
 0x285   : > { %v1599_v52 = vadd.f32 %v7637_v47, %v5792_v0  ;;  %v3792_v21 = vmul.f32 %v3536_v36, %v2256_v19  ;;  %v2518_v38 = vadd.f32 3.0, %v2262_v33  ;;  %v2263_v61 = vadd.f32 %v2007_v41, %v1246_v50  ;;  %v1805_v41 = vld [vmem:[%s5772_s8 + $0x270] sm:$0xff] }
 0x286   : > { %v3029_v42 = vmin.f32 %v2773_v30, 6.0  ;;  %v3794_v45 = vmul.f32 %v3538_v10, %v2258_v58  ;;  %v3539_v17 = vmul.f32 %v3283_v4, %v2259_v7  ;;  %v2772_v46 = vmax.f32 %v2516_v27, 0.0 }
 0x287   : > { %v2009_v44 = vunpack.c.l.bf16 %v1804_v39  ;;  %v5216_v57 = vpack.c.bf16 %v3792_v21, %v3791_v24  ;;  %v2774_v8 = vmax.f32 %v2518_v38, 0.0  ;;  %v2519_v59 = vadd.f32 3.0, %v2263_v61 }
 0x288   : > { %v3285_v29 = vmul.f32 0.16666667, %v3029_v42  ;;  %v5217_v11 = vpack.c.bf16 %v3794_v45, %v3793_v32  ;;  %v3795_v37 = vmul.f32 %v3539_v17, %v2259_v7  ;;  %v3028_v47 = vmin.f32 %v2772_v46, 6.0  ;;  %v6978_v32 = vpop.f32.mrb[104].mxu0  ;;  %v6980_v7 = vpop.f32.mrb[104].mxu1 }
 0x289   : > { %v2265_v12 = vadd.f32 %v2009_v44, %v1599_v52  ;;  %4743 = vst [vmem:[%s6022_s13 + $0x240] sm:$0xff] %v5216_v57  ;;  %v3030_v36 = vmin.f32 %v2774_v8, 6.0  ;;  %v2775_v30 = vmax.f32 %v2519_v59, 0.0  ;;  %v1248_v58 = vadd.f32 %v6702_v40, %v5794_v1  ;;  %v6982_v38 = vpop.f32.mrb[105].mxu0 }
 0x28a   : > { %v3541_v19 = vmul.f32 %v3285_v29, %v2261_v22  ;;  %4744 = vst [vmem:[%s6022_s13 + $0x248] sm:$0xff] %v5217_v11  ;;  %v3284_v10 = vmul.f32 0.16666667, %v3028_v47  ;;  %v2008_v50 = vunpack.c.h.bf16 %v1803_v13  ;;  %v1601_v24 = vadd.f32 %v6709_v23, %v5796_v2  ;;  %v7638_v13 = vld [vmem:[#allocation4_spill] sm:$0xff]  ;;  %v1806_v29 = vld [vmem:[%s5772_s8 + $0x278] sm:$0xff] }
 0x28b   : > { %v2521_v27 = vadd.f32 3.0, %v2265_v12  ;;  %v3286_v52 = vmul.f32 0.16666667, %v3030_v36  ;;  %v3031_v21 = vmin.f32 %v2775_v30, 6.0  ;;  %v2010_v42 = vunpack.c.h.bf16 %v1804_v39  ;;  %v6989_v39 = vpop.f32.mrb[105].mxu1 }
 0x28c   : > { %v3797_v4 = vmul.f32 %v3541_v19, %v2261_v22  ;;  %v3540_v40 = vmul.f32 %v3284_v10, %v2260_v15  ;;  %v2264_v45 = vadd.f32 %v2008_v50, %v1248_v58  ;;  %v1250_v17 = vadd.f32 %v7638_v13, %v5790_v63  ;;  %v7639_v22 = vld [vmem:[#allocation5_spill] sm:$0xff]  ;;  %7640 = vst [vmem:[#allocation29_spill] sm:$0xff] %v6989_v39  ;;  %v6993_v13 = vpop.f32.mrb[106].mxu1 }
 0x28d   : > { %v2777_v11 = vmax.f32 %v2521_v27, 0.0  ;;  %v3542_v46 = vmul.f32 %v3286_v52, %v2262_v33  ;;  %v3287_v23 = vmul.f32 0.16666667, %v3031_v21  ;;  %v2266_v44 = vadd.f32 %v2010_v42, %v1601_v24  ;;  %v6991_v21 = vpop.f32.mrb[106].mxu0  ;;  %7642 = vst [vmem:[#allocation3_spill] sm:$0xff] %v6993_v13 }
 0x28e   : > { %v2011_v57 = vunpack.c.l.bf16 %v1805_v41  ;;  %v3796_v8 = vmul.f32 %v3540_v40, %v2260_v15  ;;  %v2520_v47 = vadd.f32 3.0, %v2264_v45  ;;  %v1603_v19 = vadd.f32 %v7639_v22, %v5792_v0  ;;  %7641 = vst [vmem:[#allocation2_spill] sm:$0xff] %v6991_v21 }
 0x28f   : > { %v3033_v59 = vmin.f32 %v2777_v11, 6.0  ;;  %v3798_v36 = vmul.f32 %v3542_v46, %v2262_v33  ;;  %v3543_v30 = vmul.f32 %v3287_v23, %v2263_v61  ;;  %v2522_v58 = vadd.f32 3.0, %v2266_v44 }
 0x290   : > { %v2267_v10 = vadd.f32 %v2011_v57, %v1250_v17  ;;  %v5218_v27 = vpack.c.bf16 %v3796_v8, %v3795_v37  ;;  %v2776_v52 = vmax.f32 %v2520_v47, 0.0  ;;  %v2013_v24 = vunpack.c.l.bf16 %v1806_v29  ;;  %v7643_v17 = vld [vmem:[#allocation30_spill] sm:$0xff] }
 0x291   : > { %v3289_v50 = vmul.f32 0.16666667, %v3033_v59  ;;  %v5219_v15 = vpack.c.bf16 %v3798_v36, %v3797_v4  ;;  %v3799_v42 = vmul.f32 %v3543_v30, %v2263_v61  ;;  %v2778_v40 = vmax.f32 %v2522_v58, 0.0  ;;  %v1807_v61 = vld [vmem:[%s5772_s8 + $0x280] sm:$0xff] }
 0x292   : > { %v2523_v11 = vadd.f32 3.0, %v2267_v10  ;;  %4745 = vst [vmem:[%s6022_s13 + $0x250] sm:$0xff] %v5218_v27  ;;  %v3032_v33 = vmin.f32 %v2776_v52, 6.0  ;;  %v2269_v46 = vadd.f32 %v2013_v24, %v1603_v19  ;;  %v1252_v23 = vadd.f32 %v7643_v17, %v5794_v1  ;;  %v7004_v52 = vpop.f32.mrb[107].mxu0 }
 0x293   : > { %v3545_v22 = vmul.f32 %v3289_v50, %v2265_v12  ;;  %4746 = vst [vmem:[%s6022_s13 + $0x258] sm:$0xff] %v5219_v15  ;;  %v3034_v37 = vmin.f32 %v2778_v40, 6.0  ;;  %v2012_v8 = vunpack.c.h.bf16 %v1805_v41  ;;  %v1605_v4 = vadd.f32 %v6729_v18, %v5796_v2  ;;  %7644 = vst [vmem:[#allocation15_spill] sm:$0xff] %v7004_v52 }
 0x294   : > { %v2779_v57 = vmax.f32 %v2523_v11, 0.0  ;;  %v3288_v47 = vmul.f32 0.16666667, %v3032_v33  ;;  %v2525_v36 = vadd.f32 3.0, %v2269_v46  ;;  %v2014_v30 = vunpack.c.h.bf16 %v1806_v29  ;;  %v1808_v11 = vld [vmem:[%s5772_s8 + $0x288] sm:$0xff]  ;;  %v7009_v29 = vpop.f32.mrb[107].mxu1 }
 0x295   : > { %v3801_v59 = vmul.f32 %v3545_v22, %v2265_v12  ;;  %v3290_v58 = vmul.f32 0.16666667, %v3034_v37  ;;  %v2268_v50 = vadd.f32 %v2012_v8, %v1252_v23  ;;  %v1256_v19 = vadd.f32 %v6738_v31, %v5790_v63  ;;  %v7645_v12 = vld [vmem:[#allocation19_spill] sm:$0xff] }
 0x296   : > { %v3035_v27 = vmin.f32 %v2779_v57, 6.0  ;;  %v3544_v24 = vmul.f32 %v3288_v47, %v2264_v45  ;;  %v2781_v15 = vmax.f32 %v2525_v36, 0.0  ;;  %v2270_v41 = vadd.f32 %v2014_v30, %v1605_v4 }
 0x297   : > { %v2015_v40 = vunpack.c.l.bf16 %v1807_v61  ;;  %v3546_v17 = vmul.f32 %v3290_v58, %v2266_v44  ;;  %v2524_v13 = vadd.f32 3.0, %v2268_v50  ;;  %v1609_v22 = vadd.f32 %v7645_v12, %v5792_v0 }
 0x298   : > { %v3291_v18 = vmul.f32 0.16666667, %v3035_v27  ;;  %v3800_v33 = vmul.f32 %v3544_v24, %v2264_v45  ;;  %v3037_v23 = vmin.f32 %v2781_v15, 6.0  ;;  %v2526_v37 = vadd.f32 3.0, %v2270_v41 }
 0x299   : > { %v2271_v31 = vadd.f32 %v2015_v40, %v1256_v19  ;;  %v3802_v57 = vmul.f32 %v3546_v17, %v2266_v44  ;;  %v2780_v47 = vmax.f32 %v2524_v13, 0.0  ;;  %v2017_v4 = vunpack.c.l.bf16 %v1808_v11  ;;  %v1809_v17 = vld [vmem:[%s5772_s8 + $0x290] sm:$0xff] }
 0x29a   : > { %v3547_v8 = vmul.f32 %v3291_v18, %v2267_v10  ;;  %v5220_v36 = vpack.c.bf16 %v3800_v33, %v3799_v42  ;;  %v3293_v30 = vmul.f32 0.16666667, %v3037_v23  ;;  %v2782_v58 = vmax.f32 %v2526_v37, 0.0 }
 0x29b   : > { %v2527_v27 = vadd.f32 3.0, %v2271_v31  ;;  %v5221_v52 = vpack.c.bf16 %v3802_v57, %v3801_v59  ;;  %v3036_v12 = vmin.f32 %v2780_v47, 6.0  ;;  %v2273_v39 = vadd.f32 %v2017_v4, %v1609_v22  ;;  %v7018_v59 = vpop.f32.mrb[108].mxu0 }
 0x29c   : > { %v3803_v21 = vmul.f32 %v3547_v8, %v2267_v10  ;;  %4747 = vst [vmem:[%s6022_s13 + $0x260] sm:$0xff] %v5220_v36  ;;  %v3549_v45 = vmul.f32 %v3293_v30, %v2269_v46  ;;  %v3038_v24 = vmin.f32 %v2782_v58, 6.0  ;;  %v1258_v44 = vadd.f32 %v6742_v6, %v5794_v1  ;;  %v7020_v10 = vpop.f32.mrb[108].mxu1  ;;  %v7022_v37 = vpop.f32.mrb[109].mxu0  ;;  %v1810_v36 = vld [vmem:[%s5772_s8 + $0x298] sm:$0xff] }
 0x29d   : > { %v2783_v15 = vmax.f32 %v2527_v27, 0.0  ;;  %4748 = vst [vmem:[%s6022_s13 + $0x268] sm:$0xff] %v5221_v52  ;;  %v3292_v19 = vmul.f32 0.16666667, %v3036_v12  ;;  %v2529_v13 = vadd.f32 3.0, %v2273_v39  ;;  %v2016_v40 = vunpack.c.h.bf16 %v1807_v61 }
 0x29e   : > { %v1611_v42 = vadd.f32 %v6749_v62, %v5796_v2  ;;  %v3805_v18 = vmul.f32 %v3549_v45, %v2269_v46  ;;  %v3294_v22 = vmul.f32 0.16666667, %v3038_v24  ;;  %v2018_v23 = vunpack.c.h.bf16 %v1808_v11  ;;  %v7029_v11 = vpop.f32.mrb[109].mxu1 }
 0x29f   : > { %v3039_v33 = vmin.f32 %v2783_v15, 6.0  ;;  %v3548_v6 = vmul.f32 %v3292_v19, %v2268_v50  ;;  %v2785_v52 = vmax.f32 %v2529_v13, 0.0  ;;  %v2272_v57 = vadd.f32 %v2016_v40, %v1258_v44  ;;  %v7031_v40 = vpop.f32.mrb[110].mxu0 }
 0x2a0   : > { %v1260_v61 = vadd.f32 %v6751_v51, %v5790_v63  ;;  %v3550_v8 = vmul.f32 %v3294_v22, %v2270_v41  ;;  %v2274_v47 = vadd.f32 %v2018_v23, %v1611_v42  ;;  %v2019_v4 = vunpack.c.l.bf16 %v1809_v17 }
 0x2a1   : > { %v3295_v62 = vmul.f32 0.16666667, %v3039_v33  ;;  %v3804_v30 = vmul.f32 %v3548_v6, %v2268_v50  ;;  %v3041_v58 = vmin.f32 %v2785_v52, 6.0  ;;  %v2528_v27 = vadd.f32 3.0, %v2272_v57  ;;  %v7646_v52 = vld [vmem:[#allocation31_spill] sm:$0xff] }
 0x2a2   : > { %v1613_v46 = vadd.f32 %v6753_v49, %v5792_v0  ;;  %v3806_v12 = vmul.f32 %v3550_v8, %v2270_v41  ;;  %v2530_v24 = vadd.f32 3.0, %v2274_v47  ;;  %v2275_v15 = vadd.f32 %v2019_v4, %v1260_v61  ;;  %v7033_v49 = vpop.f32.mrb[110].mxu1 }
 0x2a3   : > { %v3551_v45 = vmul.f32 %v3295_v62, %v2271_v31  ;;  %v5222_v51 = vpack.c.bf16 %v3804_v30, %v3803_v21  ;;  %v3297_v44 = vmul.f32 0.16666667, %v3041_v58  ;;  %v2784_v19 = vmax.f32 %v2528_v27, 0.0 }
 0x2a4   : > { %v2021_v13 = vunpack.c.l.bf16 %v1810_v36  ;;  %v5223_v50 = vpack.c.bf16 %v3806_v12, %v3805_v18  ;;  %v2786_v22 = vmax.f32 %v2530_v24, 0.0  ;;  %v2531_v33 = vadd.f32 3.0, %v2275_v15 }
 0x2a5   : > { %v3807_v42 = vmul.f32 %v3551_v45, %v2271_v31  ;;  %4749 = vst [vmem:[%s6022_s13 + $0x270] sm:$0xff] %v5222_v51  ;;  %v3553_v23 = vmul.f32 %v3297_v44, %v2273_v39  ;;  %v3040_v41 = vmin.f32 %v2784_v19, 6.0  ;;  %v1262_v61 = vadd.f32 %v7646_v52, %v5794_v1  ;;  %v1811_v31 = vld [vmem:[%s5772_s8 + $0x2a0] sm:$0xff]  ;;  %v7044_v51 = vpop.f32.mrb[111].mxu0 }
 0x2a6   : > { %v2277_v6 = vadd.f32 %v2021_v13, %v1613_v46  ;;  %4750 = vst [vmem:[%s6022_s13 + $0x278] sm:$0xff] %v5223_v50  ;;  %v3042_v21 = vmin.f32 %v2786_v22, 6.0  ;;  %v2787_v8 = vmax.f32 %v2531_v33, 0.0  ;;  %v2020_v62 = vunpack.c.h.bf16 %v1809_v17  ;;  %7647 = vst [vmem:[#allocation16_spill] sm:$0xff] %v7044_v51  ;;  %v1812_v50 = vld [vmem:[%s5772_s8 + $0x2a8] sm:$0xff] }
 0x2a7   : > { %v1615_v18 = vadd.f32 %v6769_v20, %v5796_v2  ;;  %v3809_v4 = vmul.f32 %v3553_v23, %v2273_v39  ;;  %v3296_v30 = vmul.f32 0.16666667, %v3040_v41  ;;  %v2022_v27 = vunpack.c.h.bf16 %v1810_v36  ;;  %v7049_v36 = vpop.f32.mrb[111].mxu1 }
 0x2a8   : > { %v2533_v58 = vadd.f32 3.0, %v2277_v6  ;;  %v3298_v12 = vmul.f32 0.16666667, %v3042_v21  ;;  %v3043_v45 = vmin.f32 %v2787_v8, 6.0  ;;  %v2276_v24 = vadd.f32 %v2020_v62, %v1262_v61 }
 0x2a9   : > { %v1266_v46 = vadd.f32 %v6778_v5, %v5790_v63  ;;  %v3552_v44 = vmul.f32 %v3296_v30, %v2272_v57  ;;  %v2278_v17 = vadd.f32 %v2022_v27, %v1615_v18  ;;  %v2023_v13 = vunpack.c.l.bf16 %v1811_v31 }
 0x2aa   : > { %v2789_v19 = vmax.f32 %v2533_v58, 0.0  ;;  %v3554_v22 = vmul.f32 %v3298_v12, %v2274_v47  ;;  %v3299_v20 = vmul.f32 0.16666667, %v3043_v45  ;;  %v2532_v33 = vadd.f32 3.0, %v2276_v24 }
 0x2ab   : > { %v1619_v39 = vadd.f32 %v6780_v34, %v5792_v0  ;;  %v3808_v23 = vmul.f32 %v3552_v44, %v2272_v57  ;;  %v2534_v52 = vadd.f32 3.0, %v2278_v17  ;;  %v2279_v5 = vadd.f32 %v2023_v13, %v1266_v46 }
 0x2ac   : > { %v3045_v41 = vmin.f32 %v2789_v19, 6.0  ;;  %v3810_v61 = vmul.f32 %v3554_v22, %v2274_v47  ;;  %v3555_v21 = vmul.f32 %v3299_v20, %v2275_v15  ;;  %v2788_v8 = vmax.f32 %v2532_v33, 0.0  ;;  %v1813_v20 = vld [vmem:[%s5772_s8 + $0x2b0] sm:$0xff] }
 0x2ad   : > { %v2025_v62 = vunpack.c.l.bf16 %v1812_v50  ;;  %v5224_v18 = vpack.c.bf16 %v3808_v23, %v3807_v42  ;;  %v2790_v58 = vmax.f32 %v2534_v52, 0.0  ;;  %v2535_v27 = vadd.f32 3.0, %v2279_v5 }
 0x2ae   : > { %v3301_v30 = vmul.f32 0.16666667, %v3045_v41  ;;  %v5225_v12 = vpack.c.bf16 %v3810_v61, %v3809_v4  ;;  %v3811_v45 = vmul.f32 %v3555_v21, %v2275_v15  ;;  %v3044_v34 = vmin.f32 %v2788_v8, 6.0  ;;  %v7058_v4 = vpop.f32.mrb[112].mxu0  ;;  %v7060_v15 = vpop.f32.mrb[112].mxu1 }
 0x2af   : > { %v2281_v51 = vadd.f32 %v2025_v62, %v1619_v39  ;;  %4751 = vst [vmem:[%s6022_s13 + $0x280] sm:$0xff] %v5224_v18  ;;  %v3046_v44 = vmin.f32 %v2790_v58, 6.0  ;;  %v2791_v19 = vmax.f32 %v2535_v27, 0.0  ;;  %v1268_v47 = vadd.f32 %v6782_v43, %v5794_v1  ;;  %v7062_v52 = vpop.f32.mrb[113].mxu0 }
 0x2b0   : > { %v3557_v57 = vmul.f32 %v3301_v30, %v2277_v6  ;;  %4752 = vst [vmem:[%s6022_s13 + $0x288] sm:$0xff] %v5225_v12  ;;  %v3300_v46 = vmul.f32 0.16666667, %v3044_v34  ;;  %v2024_v22 = vunpack.c.h.bf16 %v1811_v31  ;;  %v1621_v42 = vadd.f32 %v6789_v35, %v5796_v2  ;;  %v1814_v30 = vld [vmem:[%s5772_s8 + $0x2b8] sm:$0xff] }
 0x2b1   : > { %v2537_v13 = vadd.f32 3.0, %v2281_v51  ;;  %v3302_v39 = vmul.f32 0.16666667, %v3046_v44  ;;  %v3047_v23 = vmin.f32 %v2791_v19, 6.0  ;;  %v2026_v41 = vunpack.c.h.bf16 %v1812_v50  ;;  %v7069_v50 = vpop.f32.mrb[113].mxu1 }
 0x2b2   : > { %v3813_v33 = vmul.f32 %v3557_v57, %v2277_v6  ;;  %v3556_v43 = vmul.f32 %v3300_v46, %v2276_v24  ;;  %v2280_v21 = vadd.f32 %v2024_v22, %v1268_v47  ;;  %v1270_v31 = vadd.f32 %v6791_v48, %v5790_v63  ;;  %v7648_v6 = vld [vmem:[#allocation32_spill] sm:$0xff] }
 0x2b3   : > { %v2793_v61 = vmax.f32 %v2537_v13, 0.0  ;;  %v3558_v8 = vmul.f32 %v3302_v39, %v2278_v17  ;;  %v3303_v35 = vmul.f32 0.16666667, %v3047_v23  ;;  %v2282_v62 = vadd.f32 %v2026_v41, %v1621_v42  ;;  %v7071_v42 = vpop.f32.mrb[114].mxu0 }
 0x2b4   : > { %v2027_v18 = vunpack.c.l.bf16 %v1813_v20  ;;  %v3812_v58 = vmul.f32 %v3556_v43, %v2276_v24  ;;  %v2536_v12 = vadd.f32 3.0, %v2280_v21  ;;  %v1623_v34 = vadd.f32 %v7648_v6, %v5792_v0  ;;  %v7073_v43 = vpop.f32.mrb[114].mxu1 }
 0x2b5   : > { %v3049_v27 = vmin.f32 %v2793_v61, 6.0  ;;  %v3814_v57 = vmul.f32 %v3558_v8, %v2278_v17  ;;  %v3559_v44 = vmul.f32 %v3303_v35, %v2279_v5  ;;  %v2538_v19 = vadd.f32 3.0, %v2282_v62  ;;  %7649 = vst [vmem:[#allocation17_spill] sm:$0xff] %v7073_v43 }
 0x2b6   : > { %v2283_v47 = vadd.f32 %v2027_v18, %v1270_v31  ;;  %v5226_v48 = vpack.c.bf16 %v3812_v58, %v3811_v45  ;;  %v2792_v13 = vmax.f32 %v2536_v12, 0.0  ;;  %v2029_v22 = vunpack.c.l.bf16 %v1814_v30  ;;  %v7650_v31 = vld [vmem:[#allocation33_spill] sm:$0xff] }
 0x2b7   : > { %v3305_v46 = vmul.f32 0.16666667, %v3049_v27  ;;  %v5227_v24 = vpack.c.bf16 %v3814_v57, %v3813_v33  ;;  %v3815_v39 = vmul.f32 %v3559_v44, %v2279_v5  ;;  %v2794_v23 = vmax.f32 %v2538_v19, 0.0  ;;  %v1815_v5 = vld [vmem:[%s5772_s8 + $0x2c0] sm:$0xff] }
 0x2b8   : > { %v2539_v41 = vadd.f32 3.0, %v2283_v47  ;;  %4753 = vst [vmem:[%s6022_s13 + $0x290] sm:$0xff] %v5226_v48  ;;  %v3048_v17 = vmin.f32 %v2792_v13, 6.0  ;;  %v2285_v8 = vadd.f32 %v2029_v22, %v1623_v34  ;;  %v1272_v35 = vadd.f32 %v7650_v31, %v5794_v1 }
 0x2b9   : > { %v3561_v61 = vmul.f32 %v3305_v46, %v2281_v51  ;;  %4754 = vst [vmem:[%s6022_s13 + $0x298] sm:$0xff] %v5227_v24  ;;  %v3050_v45 = vmin.f32 %v2794_v23, 6.0  ;;  %v2028_v58 = vunpack.c.h.bf16 %v1813_v20  ;;  %v1625_v33 = vadd.f32 %v6809_v56, %v5796_v2  ;;  %v7084_v46 = vpop.f32.mrb[115].mxu0  ;;  %v1816_v23 = vld [vmem:[%s5772_s8 + $0x2c8] sm:$0xff] }
 0x2ba   : > { %v2795_v18 = vmax.f32 %v2539_v41, 0.0  ;;  %v3304_v12 = vmul.f32 0.16666667, %v3048_v17  ;;  %v2541_v6 = vadd.f32 3.0, %v2285_v8  ;;  %v2030_v57 = vunpack.c.h.bf16 %v1814_v30  ;;  %7651 = vst [vmem:[#allocation18_spill] sm:$0xff] %v7084_v46  ;;  %v7089_v30 = vpop.f32.mrb[115].mxu1 }
 0x2bb   : > { %v3817_v27 = vmul.f32 %v3561_v61, %v2281_v51  ;;  %v3306_v44 = vmul.f32 0.16666667, %v3050_v45  ;;  %v2284_v48 = vadd.f32 %v2028_v58, %v1272_v35  ;;  %v1276_v34 = vadd.f32 %v6818_v9, %v5790_v63 }
 0x2bc   : > { %v3051_v19 = vmin.f32 %v2795_v18, 6.0  ;;  %v3560_v13 = vmul.f32 %v3304_v12, %v2280_v21  ;;  %v2797_v22 = vmax.f32 %v2541_v6, 0.0  ;;  %v2286_v20 = vadd.f32 %v2030_v57, %v1625_v33 }
 0x2bd   : > { %v2031_v24 = vunpack.c.l.bf16 %v1815_v5  ;;  %v3562_v41 = vmul.f32 %v3306_v44, %v2282_v62  ;;  %v2540_v31 = vadd.f32 3.0, %v2284_v48  ;;  %v1629_v51 = vadd.f32 %v6820_v26, %v5792_v0 }
 0x2be   : > { %v3307_v56 = vmul.f32 0.16666667, %v3051_v19  ;;  %v3816_v61 = vmul.f32 %v3560_v13, %v2280_v21  ;;  %v3053_v17 = vmin.f32 %v2797_v22, 6.0  ;;  %v2542_v35 = vadd.f32 3.0, %v2286_v20 }
 0x2bf   : > { %v2287_v9 = vadd.f32 %v2031_v24, %v1276_v34  ;;  %v3818_v45 = vmul.f32 %v3562_v41, %v2282_v62  ;;  %v2796_v58 = vmax.f32 %v2540_v31, 0.0  ;;  %v2033_v33 = vunpack.c.l.bf16 %v1816_v23 }
 0x2c0   : > { %v3563_v18 = vmul.f32 %v3307_v56, %v2283_v47  ;;  %v5228_v12 = vpack.c.bf16 %v3816_v61, %v3815_v39  ;;  %v3309_v6 = vmul.f32 0.16666667, %v3053_v17  ;;  %v2798_v57 = vmax.f32 %v2542_v35, 0.0  ;;  %v1817_v56 = vld [vmem:[%s5772_s8 + $0x2d0] sm:$0xff] }
 0x2c1   : > { %v2543_v44 = vadd.f32 3.0, %v2287_v9  ;;  %v5229_v19 = vpack.c.bf16 %v3818_v45, %v3817_v27  ;;  %v3052_v26 = vmin.f32 %v2796_v58, 6.0  ;;  %v2289_v43 = vadd.f32 %v2033_v33, %v1629_v51  ;;  %v7098_v27 = vpop.f32.mrb[116].mxu0 }
 0x2c2   : > { %v3819_v46 = vmul.f32 %v3563_v18, %v2283_v47  ;;  %4755 = vst [vmem:[%s6022_s13 + $0x2a0] sm:$0xff] %v5228_v12  ;;  %v3565_v21 = vmul.f32 %v3309_v6, %v2285_v8  ;;  %v3054_v13 = vmin.f32 %v2798_v57, 6.0  ;;  %v1278_v62 = vadd.f32 %v6822_v14, %v5794_v1  ;;  %v7100_v47 = vpop.f32.mrb[116].mxu1  ;;  %v7102_v35 = vpop.f32.mrb[117].mxu0  ;;  %v1818_v6 = vld [vmem:[%s5772_s8 + $0x2d8] sm:$0xff] }
 0x2c3   : > { %v2799_v22 = vmax.f32 %v2543_v44, 0.0  ;;  %4756 = vst [vmem:[%s6022_s13 + $0x2a8] sm:$0xff] %v5229_v19  ;;  %v3308_v34 = vmul.f32 0.16666667, %v3052_v26  ;;  %v2545_v24 = vadd.f32 3.0, %v2289_v43  ;;  %v2032_v41 = vunpack.c.h.bf16 %v1815_v5 }
 0x2c4   : > { %v1631_v39 = vadd.f32 %v6829_v3, %v5796_v2  ;;  %v3821_v31 = vmul.f32 %v3565_v21, %v2285_v8  ;;  %v3310_v51 = vmul.f32 0.16666667, %v3054_v13  ;;  %v2034_v17 = vunpack.c.h.bf16 %v1816_v23  ;;  %v7109_v23 = vpop.f32.mrb[117].mxu1 }
 0x2c5   : > { %v3055_v61 = vmin.f32 %v2799_v22, 6.0  ;;  %v3564_v14 = vmul.f32 %v3308_v34, %v2284_v48  ;;  %v2801_v45 = vmax.f32 %v2545_v24, 0.0  ;;  %v2288_v18 = vadd.f32 %v2032_v41, %v1278_v62  ;;  %v7111_v41 = vpop.f32.mrb[118].mxu0 }
 0x2c6   : > { %v1280_v5 = vadd.f32 %v6831_v54, %v5790_v63  ;;  %v3566_v58 = vmul.f32 %v3310_v51, %v2286_v20  ;;  %v2290_v33 = vadd.f32 %v2034_v17, %v1631_v39  ;;  %v2035_v12 = vunpack.c.l.bf16 %v1817_v56  ;;  %7652 = vst [vmem:[#allocation4_spill] sm:$0xff] %v7111_v41 }
 0x2c7   : > { %v3311_v3 = vmul.f32 0.16666667, %v3055_v61  ;;  %v3820_v57 = vmul.f32 %v3564_v14, %v2284_v48  ;;  %v3057_v44 = vmin.f32 %v2801_v45, 6.0  ;;  %v2544_v19 = vadd.f32 3.0, %v2288_v18  ;;  %v7654_v45 = vld [vmem:[#allocation6_spill] sm:$0xff] }
 0x2c8   : > { %v1633_v8 = vadd.f32 %v6833_v28, %v5792_v0  ;;  %v3822_v26 = vmul.f32 %v3566_v58, %v2286_v20  ;;  %v2546_v13 = vadd.f32 3.0, %v2290_v33  ;;  %v2291_v22 = vadd.f32 %v2035_v12, %v1280_v5  ;;  %v7113_v28 = vpop.f32.mrb[118].mxu1 }
 0x2c9   : > { %v3567_v21 = vmul.f32 %v3311_v3, %v2287_v9  ;;  %v5230_v54 = vpack.c.bf16 %v3820_v57, %v3819_v46  ;;  %v3313_v62 = vmul.f32 0.16666667, %v3057_v44  ;;  %v2800_v34 = vmax.f32 %v2544_v19, 0.0  ;;  %7653 = vst [vmem:[#allocation5_spill] sm:$0xff] %v7113_v28 }
 0x2ca   : > { %v2037_v24 = vunpack.c.l.bf16 %v1818_v6  ;;  %v5231_v48 = vpack.c.bf16 %v3822_v26, %v3821_v31  ;;  %v2802_v51 = vmax.f32 %v2546_v13, 0.0  ;;  %v2547_v61 = vadd.f32 3.0, %v2291_v22 }
 0x2cb   : > { %v3823_v39 = vmul.f32 %v3567_v21, %v2287_v9  ;;  %4757 = vst [vmem:[%s6022_s13 + $0x2b0] sm:$0xff] %v5230_v54  ;;  %v3569_v17 = vmul.f32 %v3313_v62, %v2289_v43  ;;  %v3056_v20 = vmin.f32 %v2800_v34, 6.0  ;;  %v1282_v5 = vadd.f32 %v7654_v45, %v5794_v1  ;;  %v1819_v9 = vld [vmem:[%s5772_s8 + $0x2e0] sm:$0xff]  ;;  %v7124_v62 = vpop.f32.mrb[119].mxu0 }
 0x2cc   : > { %v2293_v14 = vadd.f32 %v2037_v24, %v1633_v8  ;;  %4758 = vst [vmem:[%s6022_s13 + $0x2b8] sm:$0xff] %v5231_v48  ;;  %v3058_v46 = vmin.f32 %v2802_v51, 6.0  ;;  %v2803_v58 = vmax.f32 %v2547_v61, 0.0  ;;  %v2036_v3 = vunpack.c.h.bf16 %v1817_v56  ;;  %v7655_v8 = vld [vmem:[#allocation7_spill] sm:$0xff]  ;;  %7656 = vst [vmem:[#allocation30_spill] sm:$0xff] %v7124_v62 }
 0x2cd   : > { %v1635_v31 = vadd.f32 %v6849_v53, %v5796_v2  ;;  %v3825_v12 = vmul.f32 %v3569_v17, %v2289_v43  ;;  %v3312_v57 = vmul.f32 0.16666667, %v3056_v20  ;;  %v2038_v19 = vunpack.c.h.bf16 %v1818_v6  ;;  %v1820_v51 = vld [vmem:[%s5772_s8 + $0x2e8] sm:$0xff]  ;;  %v7657_v43 = vld [vmem:[#allocation34_spill] sm:$0xff]  ;;  %v7129_v6 = vpop.f32.mrb[119].mxu1 }
 0x2ce   : > { %v2549_v44 = vadd.f32 3.0, %v2293_v14  ;;  %v3314_v26 = vmul.f32 0.16666667, %v3058_v46  ;;  %v3059_v21 = vmin.f32 %v2803_v58, 6.0  ;;  %v2292_v13 = vadd.f32 %v2036_v3, %v1282_v5 }
 0x2cf   : > { %v1286_v54 = vadd.f32 %v7655_v8, %v5790_v63  ;;  %v3568_v34 = vmul.f32 %v3312_v57, %v2288_v18  ;;  %v2294_v56 = vadd.f32 %v2038_v19, %v1635_v31  ;;  %v2039_v48 = vunpack.c.l.bf16 %v1819_v9 }
 0x2d0   : > { %v2805_v24 = vmax.f32 %v2549_v44, 0.0  ;;  %v3570_v61 = vmul.f32 %v3314_v26, %v2290_v33  ;;  %v3315_v53 = vmul.f32 0.16666667, %v3059_v21  ;;  %v2548_v45 = vadd.f32 3.0, %v2292_v13 }
 0x2d1   : > { %v1639_v17 = vadd.f32 %v7657_v43, %v5792_v0  ;;  %v3824_v20 = vmul.f32 %v3568_v34, %v2288_v18  ;;  %v2550_v46 = vadd.f32 3.0, %v2294_v56  ;;  %v2295_v58 = vadd.f32 %v2039_v48, %v1286_v54  ;;  %v7658_v54 = vld [vmem:[#allocation35_spill] sm:$0xff] }
 0x2d2   : > { %v3061_v5 = vmin.f32 %v2805_v24, 6.0  ;;  %v3826_v3 = vmul.f32 %v3570_v61, %v2290_v33  ;;  %v3571_v8 = vmul.f32 %v3315_v53, %v2291_v22  ;;  %v2804_v57 = vmax.f32 %v2548_v45, 0.0 }
 0x2d3   : > { %v2041_v31 = vunpack.c.l.bf16 %v1820_v51  ;;  %v5232_v44 = vpack.c.bf16 %v3824_v20, %v3823_v39  ;;  %v2806_v26 = vmax.f32 %v2550_v46, 0.0  ;;  %v2551_v21 = vadd.f32 3.0, %v2295_v58  ;;  %v7659_v39 = vld [vmem:[#allocation36_spill] sm:$0xff] }
 0x2d4   : > { %v3317_v19 = vmul.f32 0.16666667, %v3061_v5  ;;  %v5233_v62 = vpack.c.bf16 %v3826_v3, %v3825_v12  ;;  %v3827_v28 = vmul.f32 %v3571_v8, %v2291_v22  ;;  %v3060_v43 = vmin.f32 %v2804_v57, 6.0  ;;  %v1821_v20 = vld [vmem:[%s5772_s8 + $0x2f0] sm:$0xff]  ;;  %v7138_v12 = vpop.f32.mrb[120].mxu0  ;;  %v7140_v22 = vpop.f32.mrb[120].mxu1 }
 0x2d5   : > { %v2297_v41 = vadd.f32 %v2041_v31, %v1639_v17  ;;  %4759 = vst [vmem:[%s6022_s13 + $0x2c0] sm:$0xff] %v5232_v44  ;;  %v3062_v34 = vmin.f32 %v2806_v26, 6.0  ;;  %v2807_v24 = vmax.f32 %v2551_v21, 0.0  ;;  %v1288_v33 = vadd.f32 %v7658_v54, %v5794_v1  ;;  %7660 = vst [vmem:[#allocation19_spill] sm:$0xff] %v7138_v12  ;;  %v7142_v8 = vpop.f32.mrb[121].mxu0  ;;  %v1822_v54 = vld [vmem:[%s5772_s8 + $0x2f8] sm:$0xff] }
 0x2d6   : > { %v3573_v18 = vmul.f32 %v3317_v19, %v2293_v14  ;;  %4760 = vst [vmem:[%s6022_s13 + $0x2c8] sm:$0xff] %v5233_v62  ;;  %v3316_v48 = vmul.f32 0.16666667, %v3060_v43  ;;  %v2040_v53 = vunpack.c.h.bf16 %v1819_v9  ;;  %v1641_v45 = vadd.f32 %v7659_v39, %v5796_v2  ;;  %7661 = vst [vmem:[#allocation31_spill] sm:$0xff] %v7140_v22  ;;  %v7662_v9 = vld [vmem:[#allocation8_spill] sm:$0xff] }
 0x2d7   : > { %v2553_v61 = vadd.f32 3.0, %v2297_v41  ;;  %v3318_v5 = vmul.f32 0.16666667, %v3062_v34  ;;  %v3063_v46 = vmin.f32 %v2807_v24, 6.0  ;;  %v2042_v3 = vunpack.c.h.bf16 %v1820_v51  ;;  %v7149_v51 = vpop.f32.mrb[121].mxu1 }
 0x2d8   : > { %v3829_v17 = vmul.f32 %v3573_v18, %v2293_v14  ;;  %v3572_v57 = vmul.f32 %v3316_v48, %v2292_v13  ;;  %v2296_v31 = vadd.f32 %v2040_v53, %v1288_v33  ;;  %v1290_v44 = vadd.f32 %v7662_v9, %v5790_v63  ;;  %v7663_v14 = vld [vmem:[#allocation9_spill] sm:$0xff]  ;;  %7664 = vst [vmem:[#allocation32_spill] sm:$0xff] %v7149_v51  ;;  %v7153_v9 = vpop.f32.mrb[122].mxu1 }
 0x2d9   : > { %v2809_v62 = vmax.f32 %v2553_v61, 0.0  ;;  %v3574_v19 = vmul.f32 %v3318_v5, %v2294_v56  ;;  %v3319_v26 = vmul.f32 0.16666667, %v3063_v46  ;;  %v2298_v21 = vadd.f32 %v2042_v3, %v1641_v45  ;;  %v7151_v46 = vpop.f32.mrb[122].mxu0  ;;  %7666 = vst [vmem:[#allocation6_spill] sm:$0xff] %v7153_v9 }
 0x2da   : > { %v2043_v43 = vunpack.c.l.bf16 %v1821_v20  ;;  %v3828_v39 = vmul.f32 %v3572_v57, %v2292_v13  ;;  %v2552_v22 = vadd.f32 3.0, %v2296_v31  ;;  %v1643_v18 = vadd.f32 %v7663_v14, %v5792_v0  ;;  %7665 = vst [vmem:[#allocation33_spill] sm:$0xff] %v7151_v46 }
 0x2db   : > { %v3065_v12 = vmin.f32 %v2809_v62, 6.0  ;;  %v3830_v34 = vmul.f32 %v3574_v19, %v2294_v56  ;;  %v3575_v24 = vmul.f32 %v3319_v26, %v2295_v58  ;;  %v2554_v33 = vadd.f32 3.0, %v2298_v21 }
 0x2dc   : > { %v2299_v48 = vadd.f32 %v2043_v43, %v1290_v44  ;;  %v5234_v61 = vpack.c.bf16 %v3828_v39, %v3827_v28  ;;  %v2808_v5 = vmax.f32 %v2552_v22, 0.0  ;;  %v2045_v45 = vunpack.c.l.bf16 %v1822_v54  ;;  %v7667_v44 = vld [vmem:[#allocation10_spill] sm:$0xff] }
 0x2dd   : > { %v3321_v53 = vmul.f32 0.16666667, %v3065_v12  ;;  %v5235_v13 = vpack.c.bf16 %v3830_v34, %v3829_v17  ;;  %v3831_v3 = vmul.f32 %v3575_v24, %v2295_v58  ;;  %v2810_v57 = vmax.f32 %v2554_v33, 0.0  ;;  %v1823_v58 = vld [vmem:[%s5772_s8 + $0x300] sm:$0xff] }
 0x2de   : > { %v2555_v62 = vadd.f32 3.0, %v2299_v48  ;;  %4761 = vst [vmem:[%s6022_s13 + $0x2d0] sm:$0xff] %v5234_v61  ;;  %v3064_v56 = vmin.f32 %v2808_v5, 6.0  ;;  %v2301_v19 = vadd.f32 %v2045_v45, %v1643_v18  ;;  %v1292_v26 = vadd.f32 %v7667_v44, %v5794_v1  ;;  %v7164_v5 = vpop.f32.mrb[123].mxu0 }
 0x2df   : > { %v3577_v14 = vmul.f32 %v3321_v53, %v2297_v41  ;;  %4762 = vst [vmem:[%s6022_s13 + $0x2d8] sm:$0xff] %v5235_v13  ;;  %v3066_v28 = vmin.f32 %v2810_v57, 6.0  ;;  %v2044_v22 = vunpack.c.h.bf16 %v1821_v20  ;;  %v1645_v17 = vadd.f32 %v6889_v60, %v5796_v2  ;;  %7668 = vst [vmem:[#allocation7_spill] sm:$0xff] %v7164_v5 }
 0x2e0   : > { %v2811_v12 = vmax.f32 %v2555_v62, 0.0  ;;  %v3320_v39 = vmul.f32 0.16666667, %v3064_v56  ;;  %v2557_v34 = vadd.f32 3.0, %v2301_v19  ;;  %v2046_v24 = vunpack.c.h.bf16 %v1822_v54  ;;  %v1824_v62 = vld [vmem:[%s5772_s8 + $0x308] sm:$0xff]  ;;  %v7169_v54 = vpop.f32.mrb[123].mxu1 }
 0x2e1   : > { %v3833_v43 = vmul.f32 %v3577_v14, %v2297_v41  ;;  %v3322_v33 = vmul.f32 0.16666667, %v3066_v28  ;;  %v2300_v53 = vadd.f32 %v2044_v22, %v1292_v26  ;;  %v1296_v18 = vadd.f32 %v6898_v16, %v5790_v63  ;;  %v7669_v41 = vld [vmem:[#allocation11_spill] sm:$0xff] }
 0x2e2   : > { %v3067_v61 = vmin.f32 %v2811_v12, 6.0  ;;  %v3576_v45 = vmul.f32 %v3320_v39, %v2296_v31  ;;  %v2813_v13 = vmax.f32 %v2557_v34, 0.0  ;;  %v2302_v20 = vadd.f32 %v2046_v24, %v1645_v17 }
 0x2e3   : > { %v2047_v57 = vunpack.c.l.bf16 %v1823_v58  ;;  %v3578_v44 = vmul.f32 %v3322_v33, %v2298_v21  ;;  %v2556_v9 = vadd.f32 3.0, %v2300_v53  ;;  %v1649_v14 = vadd.f32 %v7669_v41, %v5792_v0 }
 0x2e4   : > { %v3323_v60 = vmul.f32 0.16666667, %v3067_v61  ;;  %v3832_v56 = vmul.f32 %v3576_v45, %v2296_v31  ;;  %v3069_v26 = vmin.f32 %v2813_v13, 6.0  ;;  %v2558_v28 = vadd.f32 3.0, %v2302_v20 }
 0x2e5   : > { %v2303_v16 = vadd.f32 %v2047_v57, %v1296_v18  ;;  %v3834_v12 = vmul.f32 %v3578_v44, %v2298_v21  ;;  %v2812_v39 = vmax.f32 %v2556_v9, 0.0  ;;  %v2049_v17 = vunpack.c.l.bf16 %v1824_v62  ;;  %v7670_v18 = vld [vmem:[#allocation20_spill] sm:$0xff] }
 0x2e6   : > { %v3579_v22 = vmul.f32 %v3323_v60, %v2299_v48  ;;  %v5236_v34 = vpack.c.bf16 %v3832_v56, %v3831_v3  ;;  %v3325_v24 = vmul.f32 0.16666667, %v3069_v26  ;;  %v2814_v33 = vmax.f32 %v2558_v28, 0.0  ;;  %v7671_v3 = vld [vmem:[#allocation12_spill] sm:$0xff] }
 0x2e7   : > { %v2559_v61 = vadd.f32 3.0, %v2303_v16  ;;  %v5237_v5 = vpack.c.bf16 %v3834_v12, %v3833_v43  ;;  %v3068_v41 = vmin.f32 %v2812_v39, 6.0  ;;  %v2305_v51 = vadd.f32 %v2049_v17, %v1649_v14  ;;  %v1825_v56 = vld [vmem:[%s5772_s8 + $0x310] sm:$0xff]  ;;  %v7178_v43 = vpop.f32.mrb[124].mxu0 }
 0x2e8   : > { %v3835_v46 = vmul.f32 %v3579_v22, %v2299_v48  ;;  %4763 = vst [vmem:[%s6022_s13 + $0x2e0] sm:$0xff] %v5236_v34  ;;  %v3581_v31 = vmul.f32 %v3325_v24, %v2301_v19  ;;  %v3070_v45 = vmin.f32 %v2814_v33, 6.0  ;;  %v1298_v21 = vadd.f32 %v7670_v18, %v5794_v1  ;;  %7672 = vst [vmem:[#allocation34_spill] sm:$0xff] %v7178_v43  ;;  %v7180_v48 = vpop.f32.mrb[124].mxu1  ;;  %v7182_v22 = vpop.f32.mrb[125].mxu0  ;;  %v1826_v18 = vld [vmem:[%s5772_s8 + $0x318] sm:$0xff] }
 0x2e9   : > { %v2815_v13 = vmax.f32 %v2559_v61, 0.0  ;;  %4764 = vst [vmem:[%s6022_s13 + $0x2e8] sm:$0xff] %v5237_v5  ;;  %v3324_v57 = vmul.f32 0.16666667, %v3068_v41  ;;  %v2561_v9 = vadd.f32 3.0, %v2305_v51  ;;  %v2048_v44 = vunpack.c.h.bf16 %v1823_v58  ;;  %7673 = vst [vmem:[#allocation35_spill] sm:$0xff] %v7180_v48 }
 0x2ea   : > { %v1651_v60 = vadd.f32 %v7671_v3, %v5796_v2  ;;  %v3837_v14 = vmul.f32 %v3581_v31, %v2301_v19  ;;  %v3326_v26 = vmul.f32 0.16666667, %v3070_v45  ;;  %v2050_v12 = vunpack.c.h.bf16 %v1824_v62  ;;  %7674 = vst [vmem:[#allocation36_spill] sm:$0xff] %v7182_v22  ;;  %v7675_v58 = vld [vmem:[#allocation13_spill] sm:$0xff]  ;;  %v7189_v62 = vpop.f32.mrb[125].mxu1 }
 0x2eb   : > { %v3071_v28 = vmin.f32 %v2815_v13, 6.0  ;;  %v3580_v39 = vmul.f32 %v3324_v57, %v2300_v53  ;;  %v2817_v5 = vmax.f32 %v2561_v9, 0.0  ;;  %v2304_v17 = vadd.f32 %v2048_v44, %v1298_v21  ;;  %v7676_v19 = vld [vmem:[#allocation21_spill] sm:$0xff]  ;;  %7677 = vst [vmem:[#allocation8_spill] sm:$0xff] %v7189_v62 }
 0x2ec   : > { %v1300_v34 = vadd.f32 %v7675_v58, %v5790_v63  ;;  %v3582_v24 = vmul.f32 %v3326_v26, %v2302_v20  ;;  %v2306_v61 = vadd.f32 %v2050_v12, %v1651_v60  ;;  %v2051_v41 = vunpack.c.l.bf16 %v1825_v56  ;;  %v7193_v58 = vpop.f32.mrb[126].mxu1 }
 0x2ed   : > { %v3327_v33 = vmul.f32 0.16666667, %v3071_v28  ;;  %v3836_v3 = vmul.f32 %v3580_v39, %v2300_v53  ;;  %v3073_v43 = vmin.f32 %v2817_v5, 6.0  ;;  %v2560_v48 = vadd.f32 3.0, %v2304_v17  ;;  %v7191_v28 = vpop.f32.mrb[126].mxu0  ;;  %7679 = vst [vmem:[#allocation10_spill] sm:$0xff] %v7193_v58 }
 0x2ee   : > { %v1653_v31 = vadd.f32 %v7676_v19, %v5792_v0  ;;  %v3838_v45 = vmul.f32 %v3582_v24, %v2302_v20  ;;  %v2562_v21 = vadd.f32 3.0, %v2306_v61  ;;  %v2307_v57 = vadd.f32 %v2051_v41, %v1300_v34  ;;  %7678 = vst [vmem:[#allocation9_spill] sm:$0xff] %v7191_v28  ;;  %v7680_v34 = vld [vmem:[#allocation22_spill] sm:$0xff] }
 0x2ef   : > { %v3583_v13 = vmul.f32 %v3327_v33, %v2303_v16  ;;  %v5238_v9 = vpack.c.bf16 %v3836_v3, %v3835_v46  ;;  %v3329_v44 = vmul.f32 0.16666667, %v3073_v43  ;;  %v2816_v26 = vmax.f32 %v2560_v48, 0.0 }
 0x2f0   : > { %v2053_v60 = vunpack.c.l.bf16 %v1826_v18  ;;  %v5239_v53 = vpack.c.bf16 %v3838_v45, %v3837_v14  ;;  %v2818_v39 = vmax.f32 %v2562_v21, 0.0  ;;  %v2563_v5 = vadd.f32 3.0, %v2307_v57 }
 0x2f1   : > { %v3839_v12 = vmul.f32 %v3583_v13, %v2303_v16  ;;  %4765 = vst [vmem:[%s6022_s13 + $0x2f0] sm:$0xff] %v5238_v9  ;;  %v3585_v19 = vmul.f32 %v3329_v44, %v2305_v51  ;;  %v3072_v20 = vmin.f32 %v2816_v26, 6.0  ;;  %v1302_v33 = vadd.f32 %v7680_v34, %v5794_v1  ;;  %v1827_v16 = vld [vmem:[%s5772_s8 + $0x320] sm:$0xff]  ;;  %v1828_v34 = vld [vmem:[%s5772_s8 + $0x328] sm:$0xff] }
 0x2f2   : > { %v2309_v24 = vadd.f32 %v2053_v60, %v1653_v31  ;;  %4766 = vst [vmem:[%s6022_s13 + $0x2f8] sm:$0xff] %v5239_v53  ;;  %v3074_v46 = vmin.f32 %v2818_v39, 6.0  ;;  %v2819_v43 = vmax.f32 %v2563_v5, 0.0  ;;  %v2052_v48 = vunpack.c.h.bf16 %v1825_v56  ;;  %v7681_v31 = vld [vmem:[#allocation23_spill] sm:$0xff]  ;;  %v7204_v60 = vpop.f32.mrb[127].mxu0 }
 0x2f3   : > { %v1655_v14 = vadd.f32 %v6929_v55, %v5796_v2  ;;  %v3841_v41 = vmul.f32 %v3585_v19, %v2305_v51  ;;  %v3328_v3 = vmul.f32 0.16666667, %v3072_v20  ;;  %v2054_v13 = vunpack.c.h.bf16 %v1826_v18  ;;  %7682 = vst [vmem:[#allocation11_spill] sm:$0xff] %v7204_v60  ;;  %v7683_v51 = vld [vmem:[#allocation24_spill] sm:$0xff]  ;;  %v7209_v18 = vpop.f32.mrb[127].mxu1 }
 0x2f4   : > { %v2565_v45 = vadd.f32 3.0, %v2309_v24  ;;  %v3330_v21 = vmul.f32 0.16666667, %v3074_v46  ;;  %v3075_v9 = vmin.f32 %v2819_v43, 6.0  ;;  %v2308_v44 = vadd.f32 %v2052_v48, %v1302_v33 }
 0x2f5   : > { %v1306_v26 = vadd.f32 %v7681_v31, %v5790_v63  ;;  %v3584_v53 = vmul.f32 %v3328_v3, %v2304_v17  ;;  %v2310_v56 = vadd.f32 %v2054_v13, %v1655_v14  ;;  %v2055_v5 = vunpack.c.l.bf16 %v1827_v16 }
 0x2f6   : > { %v2821_v39 = vmax.f32 %v2565_v45, 0.0  ;;  %v3586_v58 = vmul.f32 %v3330_v21, %v2306_v61  ;;  %v3331_v55 = vmul.f32 0.16666667, %v3075_v9  ;;  %v2564_v28 = vadd.f32 3.0, %v2308_v44 }
 0x2f7   : > { %v1659_v19 = vadd.f32 %v7683_v51, %v5792_v0  ;;  %v3840_v20 = vmul.f32 %v3584_v53, %v2304_v17  ;;  %v2566_v46 = vadd.f32 3.0, %v2310_v56  ;;  %v2311_v43 = vadd.f32 %v2055_v5, %v1306_v26  ;;  %v7684_v26 = vld [vmem:[#allocation25_spill] sm:$0xff]  ;;  %v7685_v5 = vld [vmem:[#allocation26_spill] sm:$0xff] }
 0x2f8   : > { %v3077_v33 = vmin.f32 %v2821_v39, 6.0  ;;  %v3842_v48 = vmul.f32 %v3586_v58, %v2306_v61  ;;  %v3587_v31 = vmul.f32 %v3331_v55, %v2307_v57  ;;  %v2820_v3 = vmax.f32 %v2564_v28, 0.0 }
 0x2f9   : > { %v2057_v14 = vunpack.c.l.bf16 %v1828_v34  ;;  %v5240_v45 = vpack.c.bf16 %v3840_v20, %v3839_v12  ;;  %v2822_v21 = vmax.f32 %v2566_v46, 0.0  ;;  %v2567_v9 = vadd.f32 3.0, %v2311_v43  ;;  %v1829_v20 = vld [vmem:[%s5772_s8 + $0x330] sm:$0xff] }
 0x2fa   : > { %v3333_v13 = vmul.f32 0.16666667, %v3077_v33  ;;  %v5241_v60 = vpack.c.bf16 %v3842_v48, %v3841_v41  ;;  %v3843_v62 = vmul.f32 %v3587_v31, %v2307_v57  ;;  %v3076_v51 = vmin.f32 %v2820_v3, 6.0  ;;  %v7686_v3 = vld [vmem:[#allocation27_spill] sm:$0xff] }
 0x2fb   : > { %v2313_v22 = vadd.f32 %v2057_v14, %v1659_v19  ;;  %4767 = vst [vmem:[%s6022_s13 + $0x300] sm:$0xff] %v5240_v45  ;;  %v3078_v53 = vmin.f32 %v2822_v21, 6.0  ;;  %v2823_v39 = vmax.f32 %v2567_v9, 0.0  ;;  %v1308_v61 = vadd.f32 %v7684_v26, %v5794_v1  ;;  %v1830_v9 = vld [vmem:[%s5772_s8 + $0x338] sm:$0xff] }
 0x2fc   : > { %v3589_v17 = vmul.f32 %v3333_v13, %v2309_v24  ;;  %4768 = vst [vmem:[%s6022_s13 + $0x308] sm:$0xff] %v5241_v60  ;;  %v3332_v58 = vmul.f32 0.16666667, %v3076_v51  ;;  %v2056_v12 = vunpack.c.h.bf16 %v1827_v16  ;;  %v1661_v55 = vadd.f32 %v7685_v5, %v5796_v2 }
 0x2fd   : > { %v2569_v28 = vadd.f32 3.0, %v2313_v22  ;;  %v3334_v57 = vmul.f32 0.16666667, %v3078_v53  ;;  %v3079_v33 = vmin.f32 %v2823_v39, 6.0  ;;  %v2058_v19 = vunpack.c.h.bf16 %v1828_v34 }
 0x2fe   : > { %v3845_v41 = vmul.f32 %v3589_v17, %v2309_v24  ;;  %v3588_v46 = vmul.f32 %v3332_v58, %v2308_v44  ;;  %v2312_v31 = vadd.f32 %v2056_v12, %v1308_v61  ;;  %v1310_v14 = vadd.f32 %v7686_v3, %v5790_v63  ;;  %v7687_v24 = vld [vmem:[#allocation14_spill] sm:$0xff]  ;;  %v7688_v3 = vld [vmem:[#allocation28_spill] sm:$0xff] }
 0x2ff   : > { %v2825_v48 = vmax.f32 %v2569_v28, 0.0  ;;  %v3590_v45 = vmul.f32 %v3334_v57, %v2310_v56  ;;  %v3335_v60 = vmul.f32 0.16666667, %v3079_v33  ;;  %v2314_v13 = vadd.f32 %v2058_v19, %v1661_v55 }
 0x300   : > { %v2059_v21 = vunpack.c.l.bf16 %v1829_v20  ;;  %v3844_v16 = vmul.f32 %v3588_v46, %v2308_v44  ;;  %v2568_v26 = vadd.f32 3.0, %v2312_v31  ;;  %v1663_v17 = vadd.f32 %v7687_v24, %v5792_v0 }
 0x301   : > { %v3081_v51 = vmin.f32 %v2825_v48, 6.0  ;;  %v3846_v53 = vmul.f32 %v3590_v45, %v2310_v56  ;;  %v3591_v34 = vmul.f32 %v3335_v60, %v2311_v43  ;;  %v2570_v39 = vadd.f32 3.0, %v2314_v13 }
 0x302   : > { %v2315_v61 = vadd.f32 %v2059_v21, %v1310_v14  ;;  %v5242_v58 = vpack.c.bf16 %v3844_v16, %v3843_v62  ;;  %v2824_v12 = vmax.f32 %v2568_v26, 0.0  ;;  %v2061_v5 = vunpack.c.l.bf16 %v1830_v9  ;;  %v1831_v21 = vld [vmem:[%s5772_s8 + $0x340] sm:$0xff] }
 0x303   : > { %v3337_v28 = vmul.f32 0.16666667, %v3081_v51  ;;  %v5243_v55 = vpack.c.bf16 %v3846_v53, %v3845_v41  ;;  %v3847_v57 = vmul.f32 %v3591_v34, %v2311_v43  ;;  %v2826_v33 = vmax.f32 %v2570_v39, 0.0 }
 0x304   : > { %v2571_v44 = vadd.f32 3.0, %v2315_v61  ;;  %4769 = vst [vmem:[%s6022_s13 + $0x310] sm:$0xff] %v5242_v58  ;;  %v3080_v46 = vmin.f32 %v2824_v12, 6.0  ;;  %v2317_v48 = vadd.f32 %v2061_v5, %v1663_v17  ;;  %v1312_v56 = vadd.f32 %v7688_v3, %v5794_v1  ;;  %v1832_v12 = vld [vmem:[%s5772_s8 + $0x348] sm:$0xff] }
 0x305   : > { %v3593_v19 = vmul.f32 %v3337_v28, %v2313_v22  ;;  %4770 = vst [vmem:[%s6022_s13 + $0x318] sm:$0xff] %v5243_v55  ;;  %v3082_v45 = vmin.f32 %v2826_v33, 6.0  ;;  %v2060_v62 = vunpack.c.h.bf16 %v1829_v20  ;;  %v1665_v14 = vadd.f32 %v6969_v25, %v5796_v2 }
 0x306   : > { %v2827_v60 = vmax.f32 %v2571_v44, 0.0  ;;  %v3336_v43 = vmul.f32 0.16666667, %v3080_v46  ;;  %v2573_v16 = vadd.f32 3.0, %v2317_v48  ;;  %v2062_v51 = vunpack.c.h.bf16 %v1830_v9 }
 0x307   : > { %v3849_v41 = vmul.f32 %v3593_v19, %v2313_v22  ;;  %v3338_v26 = vmul.f32 0.16666667, %v3082_v45  ;;  %v2316_v53 = vadd.f32 %v2060_v62, %v1312_v56  ;;  %v1316_v17 = vadd.f32 %v6978_v32, %v5790_v63 }
 0x308   : > { %v3083_v24 = vmin.f32 %v2827_v60, 6.0  ;;  %v3592_v34 = vmul.f32 %v3336_v43, %v2312_v31  ;;  %v2829_v39 = vmax.f32 %v2573_v16, 0.0  ;;  %v2318_v58 = vadd.f32 %v2062_v51, %v1665_v14 }
 0x309   : > { %v2063_v28 = vunpack.c.l.bf16 %v1831_v21  ;;  %v3594_v20 = vmul.f32 %v3338_v26, %v2314_v13  ;;  %v2572_v55 = vadd.f32 3.0, %v2316_v53  ;;  %v1669_v25 = vadd.f32 %v6980_v7, %v5792_v0 }
 0x30a   : > { %v3339_v5 = vmul.f32 0.16666667, %v3083_v24  ;;  %v3848_v22 = vmul.f32 %v3592_v34, %v2312_v31  ;;  %v3085_v9 = vmin.f32 %v2829_v39, 6.0  ;;  %v2574_v33 = vadd.f32 3.0, %v2318_v58  ;;  %v7689_v34 = vld [vmem:[#allocation29_spill] sm:$0xff] }
 0x30b   : > { %v2319_v44 = vadd.f32 %v2063_v28, %v1316_v17  ;;  %v3850_v19 = vmul.f32 %v3594_v20, %v2314_v13  ;;  %v2828_v32 = vmax.f32 %v2572_v55, 0.0  ;;  %v2065_v3 = vunpack.c.l.bf16 %v1832_v12  ;;  %v1833_v28 = vld [vmem:[%s5772_s8 + $0x350] sm:$0xff] }
 0x30c   : > { %v3595_v46 = vmul.f32 %v3339_v5, %v2315_v61  ;;  %v5244_v56 = vpack.c.bf16 %v3848_v22, %v3847_v57  ;;  %v3341_v45 = vmul.f32 0.16666667, %v3085_v9  ;;  %v2830_v60 = vmax.f32 %v2574_v33, 0.0  ;;  %v7690_v9 = vld [vmem:[#allocation2_spill] sm:$0xff] }
 0x30d   : > { %v2575_v62 = vadd.f32 3.0, %v2319_v44  ;;  %v5245_v14 = vpack.c.bf16 %v3850_v19, %v3849_v41  ;;  %v3084_v16 = vmin.f32 %v2828_v32, 6.0  ;;  %v2321_v51 = vadd.f32 %v2065_v3, %v1669_v25  ;;  %v1834_v3 = vld [vmem:[%s5772_s8 + $0x358] sm:$0xff] }
 0x30e   : > { %v3851_v43 = vmul.f32 %v3595_v46, %v2315_v61  ;;  %4771 = vst [vmem:[%s6022_s13 + $0x320] sm:$0xff] %v5244_v56  ;;  %v3597_v7 = vmul.f32 %v3341_v45, %v2317_v48  ;;  %v3086_v31 = vmin.f32 %v2830_v60, 6.0  ;;  %v1318_v13 = vadd.f32 %v6982_v38, %v5794_v1 }
 0x30f   : > { %v2831_v26 = vmax.f32 %v2575_v62, 0.0  ;;  %4772 = vst [vmem:[%s6022_s13 + $0x328] sm:$0xff] %v5245_v14  ;;  %v3340_v24 = vmul.f32 0.16666667, %v3084_v16  ;;  %v2577_v17 = vadd.f32 3.0, %v2321_v51  ;;  %v2064_v57 = vunpack.c.h.bf16 %v1831_v21 }
 0x310   : > { %v1671_v39 = vadd.f32 %v7689_v34, %v5796_v2  ;;  %v3853_v41 = vmul.f32 %v3597_v7, %v2317_v48  ;;  %v3342_v61 = vmul.f32 0.16666667, %v3086_v31  ;;  %v2066_v5 = vunpack.c.h.bf16 %v1832_v12  ;;  %v7691_v48 = vld [vmem:[#allocation3_spill] sm:$0xff] }
 0x311   : > { %v3087_v20 = vmin.f32 %v2831_v26, 6.0  ;;  %v3596_v55 = vmul.f32 %v3340_v24, %v2316_v53  ;;  %v2833_v25 = vmax.f32 %v2577_v17, 0.0  ;;  %v2320_v22 = vadd.f32 %v2064_v57, %v1318_v13 }
 0x312   : > { %v1320_v33 = vadd.f32 %v7690_v9, %v5790_v63  ;;  %v3598_v38 = vmul.f32 %v3342_v61, %v2318_v58  ;;  %v2322_v46 = vadd.f32 %v2066_v5, %v1671_v39  ;;  %v2067_v32 = vunpack.c.l.bf16 %v1833_v28  ;;  %v1835_v9 = vld [vmem:[%s5772_s8 + $0x360] sm:$0xff] }
 0x313   : > { %v3343_v19 = vmul.f32 0.16666667, %v3087_v20  ;;  %v3852_v21 = vmul.f32 %v3596_v55, %v2316_v53  ;;  %v3089_v56 = vmin.f32 %v2833_v25, 6.0  ;;  %v2576_v45 = vadd.f32 3.0, %v2320_v22  ;;  %v7692_v20 = vld [vmem:[#allocation15_spill] sm:$0xff] }
 0x314   : > { %v1673_v60 = vadd.f32 %v7691_v48, %v5792_v0  ;;  %v3854_v62 = vmul.f32 %v3598_v38, %v2318_v58  ;;  %v2578_v14 = vadd.f32 3.0, %v2322_v46  ;;  %v2323_v16 = vadd.f32 %v2067_v32, %v1320_v33 }
 0x315   : > { %v3599_v12 = vmul.f32 %v3343_v19, %v2319_v44  ;;  %v5246_v7 = vpack.c.bf16 %v3852_v21, %v3851_v43  ;;  %v3345_v31 = vmul.f32 0.16666667, %v3089_v56  ;;  %v2832_v26 = vmax.f32 %v2576_v45, 0.0 }
 0x316   : > { %v2069_v13 = vunpack.c.l.bf16 %v1834_v3  ;;  %v5247_v24 = vpack.c.bf16 %v3854_v62, %v3853_v41  ;;  %v2834_v57 = vmax.f32 %v2578_v14, 0.0  ;;  %v2579_v53 = vadd.f32 3.0, %v2323_v16 }
 0x317   : > { %v3855_v17 = vmul.f32 %v3599_v12, %v2319_v44  ;;  %4773 = vst [vmem:[%s6022_s13 + $0x330] sm:$0xff] %v5246_v7  ;;  %v3601_v34 = vmul.f32 %v3345_v31, %v2321_v51  ;;  %v3088_v39 = vmin.f32 %v2832_v26, 6.0  ;;  %v1322_v58 = vadd.f32 %v7692_v20, %v5794_v1  ;;  %v1836_v12 = vld [vmem:[%s5772_s8 + $0x368] sm:$0xff] }
 0x318   : > { %v2325_v61 = vadd.f32 %v2069_v13, %v1673_v60  ;;  %4774 = vst [vmem:[%s6022_s13 + $0x338] sm:$0xff] %v5247_v24  ;;  %v3090_v5 = vmin.f32 %v2834_v57, 6.0  ;;  %v2835_v55 = vmax.f32 %v2579_v53, 0.0  ;;  %v2068_v43 = vunpack.c.h.bf16 %v1833_v28 }
 0x319   : > { %v1675_v25 = vadd.f32 %v7009_v29, %v5796_v2  ;;  %v3857_v41 = vmul.f32 %v3601_v34, %v2321_v51  ;;  %v3344_v44 = vmul.f32 0.16666667, %v3088_v39  ;;  %v2070_v38 = vunpack.c.h.bf16 %v1834_v3 }
 0x31a   : > { %v2581_v33 = vadd.f32 3.0, %v2325_v61  ;;  %v3346_v19 = vmul.f32 0.16666667, %v3090_v5  ;;  %v3091_v32 = vmin.f32 %v2835_v55, 6.0  ;;  %v2324_v21 = vadd.f32 %v2068_v43, %v1322_v58 }
 0x31b   : > { %v1326_v56 = vadd.f32 %v7018_v59, %v5790_v63  ;;  %v3600_v45 = vmul.f32 %v3344_v44, %v2320_v22  ;;  %v2326_v60 = vadd.f32 %v2070_v38, %v1675_v25  ;;  %v2071_v62 = vunpack.c.l.bf16 %v1835_v9 }
 0x31c   : > { %v2837_v48 = vmax.f32 %v2581_v33, 0.0  ;;  %v3602_v28 = vmul.f32 %v3346_v19, %v2322_v46  ;;  %v3347_v14 = vmul.f32 0.16666667, %v3091_v32  ;;  %v2580_v7 = vadd.f32 3.0, %v2324_v21  ;;  %v1837_v19 = vld [vmem:[%s5772_s8 + $0x370] sm:$0xff] }
 0x31d   : > { %v1679_v29 = vadd.f32 %v7020_v10, %v5792_v0  ;;  %v3856_v51 = vmul.f32 %v3600_v45, %v2320_v22  ;;  %v2582_v31 = vadd.f32 3.0, %v2326_v60  ;;  %v2327_v26 = vadd.f32 %v2071_v62, %v1326_v56 }
 0x31e   : > { %v3093_v3 = vmin.f32 %v2837_v48, 6.0  ;;  %v3858_v13 = vmul.f32 %v3602_v28, %v2322_v46  ;;  %v3603_v24 = vmul.f32 %v3347_v14, %v2323_v16  ;;  %v2836_v59 = vmax.f32 %v2580_v7, 0.0 }
 0x31f   : > { %v2073_v57 = vunpack.c.l.bf16 %v1836_v12  ;;  %v5248_v53 = vpack.c.bf16 %v3856_v51, %v3855_v17  ;;  %v2838_v39 = vmax.f32 %v2582_v31, 0.0  ;;  %v2583_v20 = vadd.f32 3.0, %v2327_v26  ;;  %v1838_v51 = vld [vmem:[%s5772_s8 + $0x378] sm:$0xff] }
 0x320   : > { %v3349_v34 = vmul.f32 0.16666667, %v3093_v3  ;;  %v5249_v58 = vpack.c.bf16 %v3858_v13, %v3857_v41  ;;  %v3859_v5 = vmul.f32 %v3603_v24, %v2323_v16  ;;  %v3092_v55 = vmin.f32 %v2836_v59, 6.0 }
 0x321   : > { %v2329_v43 = vadd.f32 %v2073_v57, %v1679_v29  ;;  %4775 = vst [vmem:[%s6022_s13 + $0x340] sm:$0xff] %v5248_v53  ;;  %v3094_v22 = vmin.f32 %v2838_v39, 6.0  ;;  %v2839_v25 = vmax.f32 %v2583_v20, 0.0  ;;  %v1328_v46 = vadd.f32 %v7022_v37, %v5794_v1 }
 0x322   : > { %v3605_v10 = vmul.f32 %v3349_v34, %v2325_v61  ;;  %4776 = vst [vmem:[%s6022_s13 + $0x348] sm:$0xff] %v5249_v58  ;;  %v3348_v44 = vmul.f32 0.16666667, %v3092_v55  ;;  %v2072_v17 = vunpack.c.h.bf16 %v1835_v9  ;;  %v1681_v38 = vadd.f32 %v7029_v11, %v5796_v2 }
 0x323   : > { %v2585_v33 = vadd.f32 3.0, %v2329_v43  ;;  %v3350_v16 = vmul.f32 0.16666667, %v3094_v22  ;;  %v3095_v32 = vmin.f32 %v2839_v25, 6.0  ;;  %v2074_v56 = vunpack.c.h.bf16 %v1836_v12 }
 0x324   : > { %v3861_v41 = vmul.f32 %v3605_v10, %v2325_v61  ;;  %v3604_v45 = vmul.f32 %v3348_v44, %v2324_v21  ;;  %v2328_v62 = vadd.f32 %v2072_v17, %v1328_v46  ;;  %v1330_v28 = vadd.f32 %v7031_v40, %v5790_v63  ;;  %v1839_v44 = vld [vmem:[%s5772_s8 + $0x380] sm:$0xff] }
 0x325   : > { %v2841_v48 = vmax.f32 %v2585_v33, 0.0  ;;  %v3606_v37 = vmul.f32 %v3350_v16, %v2326_v60  ;;  %v3351_v14 = vmul.f32 0.16666667, %v3095_v32  ;;  %v2330_v7 = vadd.f32 %v2074_v56, %v1681_v38 }
 0x326   : > { %v2075_v29 = vunpack.c.l.bf16 %v1837_v19  ;;  %v3860_v9 = vmul.f32 %v3604_v45, %v2324_v21  ;;  %v2584_v11 = vadd.f32 3.0, %v2328_v62  ;;  %v1683_v61 = vadd.f32 %v7033_v49, %v5792_v0  ;;  %v7693_v49 = vld [vmem:[#allocation16_spill] sm:$0xff] }
 0x327   : > { %v3097_v3 = vmin.f32 %v2841_v48, 6.0  ;;  %v3862_v31 = vmul.f32 %v3606_v37, %v2326_v60  ;;  %v3607_v12 = vmul.f32 %v3351_v14, %v2327_v26  ;;  %v2586_v13 = vadd.f32 3.0, %v2330_v7  ;;  %v1840_v14 = vld [vmem:[%s5772_s8 + $0x388] sm:$0xff] }
 0x328   : > { %v2331_v24 = vadd.f32 %v2075_v29, %v1330_v28  ;;  %v5250_v59 = vpack.c.bf16 %v3860_v9, %v3859_v5  ;;  %v2840_v40 = vmax.f32 %v2584_v11, 0.0  ;;  %v2077_v53 = vunpack.c.l.bf16 %v1838_v51 }
 0x329   : > { %v3353_v57 = vmul.f32 0.16666667, %v3097_v3  ;;  %v5251_v34 = vpack.c.bf16 %v3862_v31, %v3861_v41  ;;  %v3863_v39 = vmul.f32 %v3607_v12, %v2327_v26  ;;  %v2842_v20 = vmax.f32 %v2586_v13, 0.0 }
 0x32a   : > { %v2587_v21 = vadd.f32 3.0, %v2331_v24  ;;  %4777 = vst [vmem:[%s6022_s13 + $0x350] sm:$0xff] %v5250_v59  ;;  %v3096_v55 = vmin.f32 %v2840_v40, 6.0  ;;  %v2333_v10 = vadd.f32 %v2077_v53, %v1683_v61  ;;  %v1332_v60 = vadd.f32 %v7693_v49, %v5794_v1 }
 0x32b   : > { %v3609_v58 = vmul.f32 %v3353_v57, %v2329_v43  ;;  %4778 = vst [vmem:[%s6022_s13 + $0x358] sm:$0xff] %v5251_v34  ;;  %v3098_v22 = vmin.f32 %v2842_v20, 6.0  ;;  %v2076_v5 = vunpack.c.h.bf16 %v1837_v19  ;;  %v1685_v46 = vadd.f32 %v7049_v36, %v5796_v2 }
 0x32c   : > { %v2843_v25 = vmax.f32 %v2587_v21, 0.0  ;;  %v3352_v26 = vmul.f32 0.16666667, %v3096_v55  ;;  %v2589_v17 = vadd.f32 3.0, %v2333_v10  ;;  %v2078_v38 = vunpack.c.h.bf16 %v1838_v51 }
 0x32d   : > { %v3865_v33 = vmul.f32 %v3609_v58, %v2329_v43  ;;  %v3354_v41 = vmul.f32 0.16666667, %v3098_v22  ;;  %v2332_v32 = vadd.f32 %v2076_v5, %v1332_v60  ;;  %v1336_v56 = vadd.f32 %v7058_v4, %v5790_v63  ;;  %v1841_v22 = vld [vmem:[%s5772_s8 + $0x390] sm:$0xff] }
 0x32e   : > { %v3099_v16 = vmin.f32 %v2843_v25, 6.0  ;;  %v3608_v45 = vmul.f32 %v3352_v26, %v2328_v62  ;;  %v2845_v48 = vmax.f32 %v2589_v17, 0.0  ;;  %v2334_v28 = vadd.f32 %v2078_v38, %v1685_v46 }
 0x32f   : > { %v2079_v37 = vunpack.c.l.bf16 %v1839_v44  ;;  %v3610_v19 = vmul.f32 %v3354_v41, %v2330_v7  ;;  %v2588_v9 = vadd.f32 3.0, %v2332_v32  ;;  %v1689_v36 = vadd.f32 %v7060_v15, %v5792_v0 }
 0x330   : > { %v3355_v29 = vmul.f32 0.16666667, %v3099_v16  ;;  %v3864_v43 = vmul.f32 %v3608_v45, %v2328_v62  ;;  %v3101_v51 = vmin.f32 %v2845_v48, 6.0  ;;  %v2590_v3 = vadd.f32 3.0, %v2334_v28  ;;  %v1842_v45 = vld [vmem:[%s5772_s8 + $0x398] sm:$0xff] }
 0x331   : > { %v2335_v11 = vadd.f32 %v2079_v37, %v1336_v56  ;;  %v3866_v61 = vmul.f32 %v3610_v19, %v2330_v7  ;;  %v2844_v4 = vmax.f32 %v2588_v9, 0.0  ;;  %v2081_v12 = vunpack.c.l.bf16 %v1840_v14 }
 0x332   : > { %v3611_v31 = vmul.f32 %v3355_v29, %v2331_v24  ;;  %v5252_v13 = vpack.c.bf16 %v3864_v43, %v3863_v39  ;;  %v3357_v59 = vmul.f32 0.16666667, %v3101_v51  ;;  %v2846_v57 = vmax.f32 %v2590_v3, 0.0 }
 0x333   : > { %v2591_v40 = vadd.f32 3.0, %v2335_v11  ;;  %v5253_v53 = vpack.c.bf16 %v3866_v61, %v3865_v33  ;;  %v3100_v20 = vmin.f32 %v2844_v4, 6.0  ;;  %v2337_v21 = vadd.f32 %v2081_v12, %v1689_v36 }
 0x334   : > { %v3867_v34 = vmul.f32 %v3611_v31, %v2331_v24  ;;  %4779 = vst [vmem:[%s6022_s13 + $0x360] sm:$0xff] %v5252_v13  ;;  %v3613_v15 = vmul.f32 %v3357_v59, %v2333_v10  ;;  %v3102_v62 = vmin.f32 %v2846_v57, 6.0  ;;  %v1338_v7 = vadd.f32 %v7062_v52, %v5794_v1  ;;  %v7695_v59 = vld [vmem:[#allocation18_spill] sm:$0xff] }
 0x335   : > { %v2847_v58 = vmax.f32 %v2591_v40, 0.0  ;;  %4780 = vst [vmem:[%s6022_s13 + $0x368] sm:$0xff] %v5253_v53  ;;  %v3356_v55 = vmul.f32 0.16666667, %v3100_v20  ;;  %v2593_v49 = vadd.f32 3.0, %v2337_v21  ;;  %v2080_v39 = vunpack.c.h.bf16 %v1839_v44  ;;  %v1843_v20 = vld [vmem:[%s5772_s8 + $0x3a0] sm:$0xff] }
 0x336   : > { %v1691_v60 = vadd.f32 %v7069_v50, %v5796_v2  ;;  %v3869_v25 = vmul.f32 %v3613_v15, %v2333_v10  ;;  %v3358_v24 = vmul.f32 0.16666667, %v3102_v62  ;;  %v2082_v46 = vunpack.c.h.bf16 %v1840_v14  ;;  %v7694_v10 = vld [vmem:[#allocation17_spill] sm:$0xff] }
 0x337   : > { %v3103_v5 = vmin.f32 %v2847_v58, 6.0  ;;  %v3612_v33 = vmul.f32 %v3356_v55, %v2332_v32  ;;  %v2849_v26 = vmax.f32 %v2593_v49, 0.0  ;;  %v2336_v17 = vadd.f32 %v2080_v39, %v1338_v7 }
 0x338   : > { %v1340_v38 = vadd.f32 %v7071_v42, %v5790_v63  ;;  %v3614_v52 = vmul.f32 %v3358_v24, %v2334_v28  ;;  %v2338_v16 = vadd.f32 %v2082_v46, %v1691_v60  ;;  %v2083_v56 = vunpack.c.l.bf16 %v1841_v22  ;;  %v1844_v46 = vld [vmem:[%s5772_s8 + $0x3a8] sm:$0xff] }
 0x339   : > { %v3359_v41 = vmul.f32 0.16666667, %v3103_v5  ;;  %v3868_v44 = vmul.f32 %v3612_v33, %v2332_v32  ;;  %v3105_v48 = vmin.f32 %v2849_v26, 6.0  ;;  %v2592_v50 = vadd.f32 3.0, %v2336_v17 }
 0x33a   : > { %v1693_v37 = vadd.f32 %v7694_v10, %v5792_v0  ;;  %v3870_v19 = vmul.f32 %v3614_v52, %v2334_v28  ;;  %v2594_v29 = vadd.f32 3.0, %v2338_v16  ;;  %v2339_v9 = vadd.f32 %v2083_v56, %v1340_v38 }
 0x33b   : > { %v3615_v14 = vmul.f32 %v3359_v41, %v2335_v11  ;;  %v5254_v36 = vpack.c.bf16 %v3868_v44, %v3867_v34  ;;  %v3361_v43 = vmul.f32 0.16666667, %v3105_v48  ;;  %v2848_v42 = vmax.f32 %v2592_v50, 0.0 }
 0x33c   : > { %v2085_v51 = vunpack.c.l.bf16 %v1842_v45  ;;  %v5255_v3 = vpack.c.bf16 %v3870_v19, %v3869_v25  ;;  %v2850_v31 = vmax.f32 %v2594_v29, 0.0  ;;  %v2595_v32 = vadd.f32 3.0, %v2339_v9 }
 0x33d   : > { %v3871_v61 = vmul.f32 %v3615_v14, %v2335_v11  ;;  %4781 = vst [vmem:[%s6022_s13 + $0x370] sm:$0xff] %v5254_v36  ;;  %v3617_v4 = vmul.f32 %v3361_v43, %v2337_v21  ;;  %v3104_v12 = vmin.f32 %v2848_v42, 6.0  ;;  %v1342_v28 = vadd.f32 %v7695_v59, %v5794_v1 }
 0x33e   : > { %v2341_v13 = vadd.f32 %v2085_v51, %v1693_v37  ;;  %4782 = vst [vmem:[%s6022_s13 + $0x378] sm:$0xff] %v5255_v3  ;;  %v3106_v57 = vmin.f32 %v2850_v31, 6.0  ;;  %v2851_v40 = vmax.f32 %v2595_v32, 0.0  ;;  %v2084_v53 = vunpack.c.h.bf16 %v1841_v22  ;;  %v1845_v31 = vld [vmem:[%s5772_s8 + $0x3b0] sm:$0xff] }
 0x33f   : > { %v1695_v34 = vadd.f32 %v7089_v30, %v5796_v2  ;;  %v3873_v15 = vmul.f32 %v3617_v4, %v2337_v21  ;;  %v3360_v11 = vmul.f32 0.16666667, %v3104_v12  ;;  %v2086_v58 = vunpack.c.h.bf16 %v1842_v45 }
 0x340   : > { %v2597_v62 = vadd.f32 3.0, %v2341_v13  ;;  %v3362_v7 = vmul.f32 0.16666667, %v3106_v57  ;;  %v3107_v55 = vmin.f32 %v2851_v40, 6.0  ;;  %v2340_v49 = vadd.f32 %v2084_v53, %v1342_v28  ;;  %v7696_v40 = vld [vmem:[#allocation4_spill] sm:$0xff] }
 0x341   : > { %v1346_v39 = vadd.f32 %v7098_v27, %v5790_v63  ;;  %v3616_v60 = vmul.f32 %v3360_v11, %v2336_v17  ;;  %v2342_v24 = vadd.f32 %v2086_v58, %v1695_v34  ;;  %v2087_v5 = vunpack.c.l.bf16 %v1843_v20 }
 0x342   : > { %v2853_v25 = vmax.f32 %v2597_v62, 0.0  ;;  %v3618_v22 = vmul.f32 %v3362_v7, %v2338_v16  ;;  %v3363_v33 = vmul.f32 0.16666667, %v3107_v55  ;;  %v2596_v26 = vadd.f32 3.0, %v2340_v49  ;;  %v1846_v62 = vld [vmem:[%s5772_s8 + $0x3b8] sm:$0xff] }
 0x343   : > { %v1699_v30 = vadd.f32 %v7100_v47, %v5792_v0  ;;  %v3872_v21 = vmul.f32 %v3616_v60, %v2336_v17  ;;  %v2598_v52 = vadd.f32 3.0, %v2342_v24  ;;  %v2343_v41 = vadd.f32 %v2087_v5, %v1346_v39 }
 0x344   : > { %v3109_v38 = vmin.f32 %v2853_v25, 6.0  ;;  %v3874_v56 = vmul.f32 %v3618_v22, %v2338_v16  ;;  %v3619_v45 = vmul.f32 %v3363_v33, %v2339_v9  ;;  %v2852_v27 = vmax.f32 %v2596_v26, 0.0 }
 0x345   : > { %v2089_v44 = vunpack.c.l.bf16 %v1844_v46  ;;  %v5256_v48 = vpack.c.bf16 %v3872_v21, %v3871_v61  ;;  %v2854_v10 = vmax.f32 %v2598_v52, 0.0  ;;  %v2599_v37 = vadd.f32 3.0, %v2343_v41 }
 0x346   : > { %v3365_v50 = vmul.f32 0.16666667, %v3109_v38  ;;  %v5257_v19 = vpack.c.bf16 %v3874_v56, %v3873_v15  ;;  %v3875_v14 = vmul.f32 %v3619_v45, %v2339_v9  ;;  %v3108_v29 = vmin.f32 %v2852_v27, 6.0  ;;  %v7698_v45 = vld [vmem:[#allocation30_spill] sm:$0xff] }
 0x347   : > { %v2345_v36 = vadd.f32 %v2089_v44, %v1699_v30  ;;  %4783 = vst [vmem:[%s6022_s13 + $0x380] sm:$0xff] %v5256_v48  ;;  %v3110_v17 = vmin.f32 %v2854_v10, 6.0  ;;  %v2855_v43 = vmax.f32 %v2599_v37, 0.0  ;;  %v1348_v16 = vadd.f32 %v7102_v35, %v5794_v1  ;;  %v1847_v10 = vld [vmem:[%s5772_s8 + $0x3c0] sm:$0xff] }
 0x348   : > { %v3621_v47 = vmul.f32 %v3365_v50, %v2341_v13  ;;  %4784 = vst [vmem:[%s6022_s13 + $0x388] sm:$0xff] %v5257_v19  ;;  %v3364_v42 = vmul.f32 0.16666667, %v3108_v29  ;;  %v2088_v3 = vunpack.c.h.bf16 %v1843_v20  ;;  %v1701_v61 = vadd.f32 %v7109_v23, %v5796_v2 }
 0x349   : > { %v2601_v51 = vadd.f32 3.0, %v2345_v36  ;;  %v3366_v9 = vmul.f32 0.16666667, %v3110_v17  ;;  %v3111_v4 = vmin.f32 %v2855_v43, 6.0  ;;  %v2090_v12 = vunpack.c.h.bf16 %v1844_v46  ;;  %v7699_v43 = vld [vmem:[#allocation19_spill] sm:$0xff] }
 0x34a   : > { %v3877_v32 = vmul.f32 %v3621_v47, %v2341_v13  ;;  %v3620_v59 = vmul.f32 %v3364_v42, %v2340_v49  ;;  %v2344_v57 = vadd.f32 %v2088_v3, %v1348_v16  ;;  %v1350_v53 = vadd.f32 %v7696_v40, %v5790_v63  ;;  %v7697_v13 = vld [vmem:[#allocation5_spill] sm:$0xff] }
 0x34b   : > { %v2857_v28 = vmax.f32 %v2601_v51, 0.0  ;;  %v3622_v35 = vmul.f32 %v3366_v9, %v2342_v24  ;;  %v3367_v34 = vmul.f32 0.16666667, %v3111_v4  ;;  %v2346_v15 = vadd.f32 %v2090_v12, %v1701_v61 }
 0x34c   : > { %v2091_v11 = vunpack.c.l.bf16 %v1845_v31  ;;  %v3876_v20 = vmul.f32 %v3620_v59, %v2340_v49  ;;  %v2600_v23 = vadd.f32 3.0, %v2344_v57  ;;  %v1703_v7 = vadd.f32 %v7697_v13, %v5792_v0 }
 0x34d   : > { %v3113_v58 = vmin.f32 %v2857_v28, 6.0  ;;  %v3878_v55 = vmul.f32 %v3622_v35, %v2342_v24  ;;  %v3623_v39 = vmul.f32 %v3367_v34, %v2343_v41  ;;  %v2602_v60 = vadd.f32 3.0, %v2346_v15 }
 0x34e   : > { %v2347_v25 = vadd.f32 %v2091_v11, %v1350_v53  ;;  %v5258_v5 = vpack.c.bf16 %v3876_v20, %v3875_v14  ;;  %v2856_v22 = vmax.f32 %v2600_v23, 0.0  ;;  %v2093_v33 = vunpack.c.l.bf16 %v1846_v62 }
 0x34f   : > { %v3369_v46 = vmul.f32 0.16666667, %v3113_v58  ;;  %v5259_v26 = vpack.c.bf16 %v3878_v55, %v3877_v32  ;;  %v3879_v30 = vmul.f32 %v3623_v39, %v2343_v41  ;;  %v2858_v21 = vmax.f32 %v2602_v60, 0.0  ;;  %v1848_v32 = vld [vmem:[%s5772_s8 + $0x3c8] sm:$0xff] }
 0x350   : > { %v2603_v49 = vadd.f32 3.0, %v2347_v25  ;;  %4785 = vst [vmem:[%s6022_s13 + $0x390] sm:$0xff] %v5258_v5  ;;  %v3112_v52 = vmin.f32 %v2856_v22, 6.0  ;;  %v2349_v56 = vadd.f32 %v2093_v33, %v1703_v7  ;;  %v1352_v24 = vadd.f32 %v7698_v45, %v5794_v1 }
 0x351   : > { %v3625_v38 = vmul.f32 %v3369_v46, %v2345_v36  ;;  %4786 = vst [vmem:[%s6022_s13 + $0x398] sm:$0xff] %v5259_v26  ;;  %v3114_v27 = vmin.f32 %v2858_v21, 6.0  ;;  %v2092_v48 = vunpack.c.h.bf16 %v1845_v31  ;;  %v1705_v50 = vadd.f32 %v7129_v6, %v5796_v2  ;;  %v7700_v6 = vld [vmem:[#allocation31_spill] sm:$0xff]  ;;  %v7701_v26 = vld [vmem:[#allocation32_spill] sm:$0xff] }
 0x352   : > { %v2859_v44 = vmax.f32 %v2603_v49, 0.0  ;;  %v3368_v41 = vmul.f32 0.16666667, %v3112_v52  ;;  %v2605_v19 = vadd.f32 3.0, %v2349_v56  ;;  %v2094_v14 = vunpack.c.h.bf16 %v1846_v62  ;;  %v1849_v21 = vld [vmem:[%s5772_s8 + $0x3d0] sm:$0xff] }
 0x353   : > { %v3881_v37 = vmul.f32 %v3625_v38, %v2345_v36  ;;  %v3370_v29 = vmul.f32 0.16666667, %v3114_v27  ;;  %v2348_v17 = vadd.f32 %v2092_v48, %v1352_v24  ;;  %v1356_v16 = vadd.f32 %v7699_v43, %v5790_v63 }
 0x354   : > { %v3115_v47 = vmin.f32 %v2859_v44, 6.0  ;;  %v3624_v42 = vmul.f32 %v3368_v41, %v2344_v57  ;;  %v2861_v51 = vmax.f32 %v2605_v19, 0.0  ;;  %v2350_v3 = vadd.f32 %v2094_v14, %v1705_v50  ;;  %v7702_v44 = vld [vmem:[#allocation33_spill] sm:$0xff] }
 0x355   : > { %v2095_v61 = vunpack.c.l.bf16 %v1847_v10  ;;  %v3626_v31 = vmul.f32 %v3370_v29, %v2346_v15  ;;  %v2604_v4 = vadd.f32 3.0, %v2348_v17  ;;  %v1709_v36 = vadd.f32 %v7700_v6, %v5792_v0  ;;  %v1850_v19 = vld [vmem:[%s5772_s8 + $0x3d8] sm:$0xff] }
 0x356   : > { %v3371_v9 = vmul.f32 0.16666667, %v3115_v47  ;;  %v3880_v12 = vmul.f32 %v3624_v42, %v2344_v57  ;;  %v3117_v59 = vmin.f32 %v2861_v51, 6.0  ;;  %v2606_v28 = vadd.f32 3.0, %v2350_v3 }
 0x357   : > { %v2351_v40 = vadd.f32 %v2095_v61, %v1356_v16  ;;  %v3882_v53 = vmul.f32 %v3626_v31, %v2346_v15  ;;  %v2860_v34 = vmax.f32 %v2604_v4, 0.0  ;;  %v2097_v11 = vunpack.c.l.bf16 %v1848_v32 }
 0x358   : > { %v3627_v35 = vmul.f32 %v3371_v9, %v2347_v25  ;;  %v5260_v62 = vpack.c.bf16 %v3880_v12, %v3879_v30  ;;  %v3373_v20 = vmul.f32 0.16666667, %v3117_v59  ;;  %v2862_v58 = vmax.f32 %v2606_v28, 0.0 }
 0x359   : > { %v2607_v23 = vadd.f32 3.0, %v2351_v40  ;;  %v5261_v13 = vpack.c.bf16 %v3882_v53, %v3881_v37  ;;  %v3116_v55 = vmin.f32 %v2860_v34, 6.0  ;;  %v2353_v39 = vadd.f32 %v2097_v11, %v1709_v36  ;;  %v7704_v53 = vld [vmem:[#allocation7_spill] sm:$0xff] }
 0x35a   : > { %v3883_v7 = vmul.f32 %v3627_v35, %v2347_v25  ;;  %4787 = vst [vmem:[%s6022_s13 + $0x3a0] sm:$0xff] %v5260_v62  ;;  %v3629_v57 = vmul.f32 %v3373_v20, %v2349_v56  ;;  %v3118_v60 = vmin.f32 %v2862_v58, 6.0  ;;  %v1358_v15 = vadd.f32 %v7142_v8, %v5794_v1  ;;  %v1851_v20 = vld [vmem:[%s5772_s8 + $0x3e0] sm:$0xff] }
 0x35b   : > { %v2863_v5 = vmax.f32 %v2607_v23, 0.0  ;;  %4788 = vst [vmem:[%s6022_s13 + $0x3a8] sm:$0xff] %v5261_v13  ;;  %v3372_v46 = vmul.f32 0.16666667, %v3116_v55  ;;  %v2609_v22 = vadd.f32 3.0, %v2353_v39  ;;  %v2096_v33 = vunpack.c.h.bf16 %v1847_v10 }
 0x35c   : > { %v1711_v30 = vadd.f32 %v7701_v26, %v5796_v2  ;;  %v3885_v49 = vmul.f32 %v3629_v57, %v2349_v56  ;;  %v3374_v25 = vmul.f32 0.16666667, %v3118_v60  ;;  %v2098_v52 = vunpack.c.h.bf16 %v1848_v32  ;;  %v7703_v56 = vld [vmem:[#allocation6_spill] sm:$0xff]  ;;  %v1852_v26 = vld [vmem:[%s5772_s8 + $0x3e8] sm:$0xff] }
 0x35d   : > { %v3119_v38 = vmin.f32 %v2863_v5, 6.0  ;;  %v3628_v45 = vmul.f32 %v3372_v46, %v2348_v17  ;;  %v2865_v24 = vmax.f32 %v2609_v22, 0.0  ;;  %v2352_v27 = vadd.f32 %v2096_v33, %v1358_v15  ;;  %v7705_v60 = vld [vmem:[#allocation34_spill] sm:$0xff] }
 0x35e   : > { %v1360_v48 = vadd.f32 %v7702_v44, %v5790_v63  ;;  %v3630_v8 = vmul.f32 %v3374_v25, %v2350_v3  ;;  %v2354_v37 = vadd.f32 %v2098_v52, %v1711_v30  ;;  %v2099_v41 = vunpack.c.l.bf16 %v1849_v21 }
 0x35f   : > { %v3375_v50 = vmul.f32 0.16666667, %v3119_v38  ;;  %v3884_v10 = vmul.f32 %v3628_v45, %v2348_v17  ;;  %v3121_v14 = vmin.f32 %v2865_v24, 6.0  ;;  %v2608_v29 = vadd.f32 3.0, %v2352_v27 }
 0x360   : > { %v1713_v47 = vadd.f32 %v7703_v56, %v5792_v0  ;;  %v3886_v43 = vmul.f32 %v3630_v8, %v2350_v3  ;;  %v2610_v42 = vadd.f32 3.0, %v2354_v37  ;;  %v2355_v51 = vadd.f32 %v2099_v41, %v1360_v48 }
 0x361   : > { %v3631_v16 = vmul.f32 %v3375_v50, %v2351_v40  ;;  %v5262_v61 = vpack.c.bf16 %v3884_v10, %v3883_v7  ;;  %v3377_v32 = vmul.f32 0.16666667, %v3121_v14  ;;  %v2864_v31 = vmax.f32 %v2608_v29, 0.0 }
 0x362   : > { %v2101_v9 = vunpack.c.l.bf16 %v1850_v19  ;;  %v5263_v4 = vpack.c.bf16 %v3886_v43, %v3885_v49  ;;  %v2866_v36 = vmax.f32 %v2610_v42, 0.0  ;;  %v2611_v17 = vadd.f32 3.0, %v2355_v51 }
 0x363   : > { %v3887_v6 = vmul.f32 %v3631_v16, %v2351_v40  ;;  %4789 = vst [vmem:[%s6022_s13 + $0x3b0] sm:$0xff] %v5262_v61  ;;  %v3633_v12 = vmul.f32 %v3377_v32, %v2353_v39  ;;  %v3120_v59 = vmin.f32 %v2864_v31, 6.0  ;;  %v1362_v3 = vadd.f32 %v7704_v53, %v5794_v1 }
 0x364   : > { %v2357_v28 = vadd.f32 %v2101_v9, %v1713_v47  ;;  %4790 = vst [vmem:[%s6022_s13 + $0x3b8] sm:$0xff] %v5263_v4  ;;  %v3122_v35 = vmin.f32 %v2866_v36, 6.0  ;;  %v2867_v34 = vmax.f32 %v2611_v17, 0.0  ;;  %v2100_v11 = vunpack.c.h.bf16 %v1849_v21  ;;  %v7708_v9 = vld [vmem:[#allocation8_spill] sm:$0xff] }
 0x365   : > { %v1715_v62 = vadd.f32 %v7169_v54, %v5796_v2  ;;  %v3889_v58 = vmul.f32 %v3633_v12, %v2353_v39  ;;  %v3376_v40 = vmul.f32 0.16666667, %v3120_v59  ;;  %v2102_v13 = vunpack.c.h.bf16 %v1850_v19  ;;  %v7706_v54 = vld [vmem:[#allocation35_spill] sm:$0xff] }
 0x366   : > { %v2613_v23 = vadd.f32 3.0, %v2357_v28  ;;  %v3378_v7 = vmul.f32 0.16666667, %v3122_v35  ;;  %v3123_v55 = vmin.f32 %v2867_v34, 6.0  ;;  %v2356_v57 = vadd.f32 %v2100_v11, %v1362_v3  ;;  %v7709_v35 = vld [vmem:[#allocation9_spill] sm:$0xff] }
 0x367   : > { %v1366_v5 = vadd.f32 %v7705_v60, %v5790_v63  ;;  %v3632_v15 = vmul.f32 %v3376_v40, %v2352_v27  ;;  %v2358_v22 = vadd.f32 %v2102_v13, %v1715_v62  ;;  %v2103_v33 = vunpack.c.l.bf16 %v1851_v20 }
 0x368   : > { %v2869_v46 = vmax.f32 %v2613_v23, 0.0  ;;  %v3634_v30 = vmul.f32 %v3378_v7, %v2354_v37  ;;  %v3379_v21 = vmul.f32 0.16666667, %v3123_v55  ;;  %v2612_v49 = vadd.f32 3.0, %v2356_v57  ;;  %v1854_v23 = vld [vmem:[%s5772_s8 + $0x3f8] sm:$0xff] }
 0x369   : > { %v1719_v39 = vadd.f32 %v7706_v54, %v5792_v0  ;;  %v3888_v25 = vmul.f32 %v3632_v15, %v2352_v27  ;;  %v2614_v52 = vadd.f32 3.0, %v2358_v22  ;;  %v7355_v45 = vadd.f32 %v2103_v33, %v1366_v5 }
 0x36a   : > { %v3125_v38 = vmin.f32 %v2869_v46, 6.0  ;;  %v3890_v24 = vmul.f32 %v3634_v30, %v2354_v37  ;;  %v3635_v44 = vmul.f32 %v3379_v21, %v2355_v51  ;;  %v2868_v48 = vmax.f32 %v2612_v49, 0.0  ;;  %v7707_v37 = vld [vmem:[#allocation36_spill] sm:$0xff] }
 0x36b   : > { %v2105_v8 = vunpack.c.l.bf16 %v1852_v26  ;;  %v5264_v50 = vpack.c.bf16 %v3888_v25, %v3887_v6  ;;  %v2870_v19 = vmax.f32 %v2614_v52, 0.0  ;;  %v2615_v10 = vadd.f32 3.0, %v7355_v45  ;;  %v1853_v6 = vld [vmem:[%s5772_s8 + $0x3f0] sm:$0xff] }
 0x36c   : > { %v3381_v41 = vmul.f32 0.16666667, %v3125_v38  ;;  %v5265_v14 = vpack.c.bf16 %v3890_v24, %v3889_v58  ;;  %v3891_v29 = vmul.f32 %v3635_v44, %v2355_v51  ;;  %v3124_v56 = vmin.f32 %v2868_v48, 6.0  ;;  %v7711_v38 = vld [vmem:[#allocation11_spill] sm:$0xff] }
 0x36d   : > { %v2361_v27 = vadd.f32 %v2105_v8, %v1719_v39  ;;  %4791 = vst [vmem:[%s6022_s13 + $0x3c0] sm:$0xff] %v5264_v50  ;;  %v3126_v43 = vmin.f32 %v2870_v19, 6.0  ;;  %v2871_v16 = vmax.f32 %v2615_v10, 0.0  ;;  %v1368_v42 = vadd.f32 %v7707_v37, %v5794_v1 }
 0x36e   : > { %v3637_v47 = vmul.f32 %v3381_v41, %v2357_v28  ;;  %4792 = vst [vmem:[%s6022_s13 + $0x3c8] sm:$0xff] %v5265_v14  ;;  %v3380_v61 = vmul.f32 0.16666667, %v3124_v56  ;;  %v2104_v31 = vunpack.c.h.bf16 %v1851_v20  ;;  %v1721_v4 = vadd.f32 %v7708_v9, %v5796_v2 }
 0x36f   : > { %v2617_v32 = vadd.f32 3.0, %v2361_v27  ;;  %v3382_v51 = vmul.f32 0.16666667, %v3126_v43  ;;  %v3127_v17 = vmin.f32 %v2871_v16, 6.0  ;;  %v2106_v12 = vunpack.c.h.bf16 %v1852_v26 }
 0x370   : > { %v3893_v36 = vmul.f32 %v3637_v47, %v2357_v28  ;;  %v3636_v59 = vmul.f32 %v3380_v61, %v2356_v57  ;;  %v2360_v3 = vadd.f32 %v2104_v31, %v1368_v42  ;;  %v1370_v34 = vadd.f32 %v7709_v35, %v5790_v63  ;;  %v7710_v28 = vld [vmem:[#allocation10_spill] sm:$0xff] }
 0x371   : > { %v2873_v53 = vmax.f32 %v2617_v32, 0.0  ;;  %v3638_v11 = vmul.f32 %v3382_v51, %v2358_v22  ;;  %v3383_v62 = vmul.f32 0.16666667, %v3127_v17  ;;  %v2362_v58 = vadd.f32 %v2106_v12, %v1721_v4 }
 0x372   : > { %v2107_v40 = vunpack.c.l.bf16 %v1853_v6  ;;  %v3892_v20 = vmul.f32 %v3636_v59, %v2356_v57  ;;  %v2616_v7 = vadd.f32 3.0, %v2360_v3  ;;  %v1723_v55 = vadd.f32 %v7710_v28, %v5792_v0 }
 0x373   : > { %v3129_v13 = vmin.f32 %v2873_v53, 6.0  ;;  %v3894_v60 = vmul.f32 %v3638_v11, %v2358_v22  ;;  %v2618_v5 = vadd.f32 3.0, %v2362_v58  ;;  %v2109_v63 = vunpack.c.l.bf16 %v1854_v23 }
 0x374   : > { %v2363_v15 = vadd.f32 %v2107_v40, %v1370_v34  ;;  %v5266_v46 = vpack.c.bf16 %v3892_v20, %v3891_v29  ;;  %v2872_v26 = vmax.f32 %v2616_v7, 0.0  ;;  %v3639_v21 = vmul.f32 %v3383_v62, %v7355_v45 }
 0x375   : > { %v3385_v33 = vmul.f32 0.16666667, %v3129_v13  ;;  %v5267_v30 = vpack.c.bf16 %v3894_v60, %v3893_v36  ;;  %v2874_v49 = vmax.f32 %v2618_v5, 0.0  ;;  %v2365_v25 = vadd.f32 %v2109_v63, %v1723_v55 }
 0x376   : > { %v2619_v54 = vadd.f32 3.0, %v2363_v15  ;;  %4793 = vst [vmem:[%s6022_s13 + $0x3d0] sm:$0xff] %v5266_v46  ;;  %v3128_v39 = vmin.f32 %v2872_v26, 6.0  ;;  %v1372_v0 = vadd.f32 %v7711_v38, %v5794_v1  ;;  %v2108_v24 = vunpack.c.h.bf16 %v1853_v6 }
 0x377   : > { %v3641_v57 = vmul.f32 %v3385_v33, %v2361_v27  ;;  %4794 = vst [vmem:[%s6022_s13 + $0x3d8] sm:$0xff] %v5267_v30  ;;  %v3130_v22 = vmin.f32 %v2874_v49, 6.0  ;;  %v1725_v44 = vadd.f32 %v7209_v18, %v5796_v2  ;;  %v2621_v8 = vadd.f32 3.0, %v2365_v25 }
 0x378   : > { %v2875_v52 = vmax.f32 %v2619_v54, 0.0  ;;  %v3384_v48 = vmul.f32 0.16666667, %v3128_v39  ;;  %v2110_v50 = vunpack.c.h.bf16 %v1854_v23  ;;  %v2364_v10 = vadd.f32 %v2108_v24, %v1372_v0 }
 0x379   : > { %v3386_v41 = vmul.f32 0.16666667, %v3130_v22  ;;  %v3895_v14 = vmul.f32 %v3639_v21, %v7355_v45  ;;  %v2877_v56 = vmax.f32 %v2621_v8, 0.0  ;;  %v3897_v1 = vmul.f32 %v3641_v57, %v2361_v27 }
 0x37a   : > { %v3131_v19 = vmin.f32 %v2875_v52, 6.0  ;;  %v3640_v29 = vmul.f32 %v3384_v48, %v2360_v3  ;;  %v2366_v47 = vadd.f32 %v2110_v50, %v1725_v44  ;;  %v2620_v37 = vadd.f32 3.0, %v2364_v10 }
 0x37b   : > { %v3642_v43 = vmul.f32 %v3386_v41, %v2362_v58  ;;  %v3133_v61 = vmin.f32 %v2877_v56, 6.0 }
 0x37c   : > { %v3387_v16 = vmul.f32 0.16666667, %v3131_v19  ;;  %v3896_v42 = vmul.f32 %v3640_v29, %v2360_v3  ;;  %v2622_v2 = vadd.f32 3.0, %v2366_v47  ;;  %v2876_v32 = vmax.f32 %v2620_v37, 0.0 }
 0x37d   : > { %v3898_v18 = vmul.f32 %v3642_v43, %v2362_v58  ;;  %v3389_v9 = vmul.f32 0.16666667, %v3133_v61 }
 0x37e   : > { %v5268_v31 = vpack.c.bf16 %v3896_v42, %v3895_v14  ;;  %v2878_v4 = vmax.f32 %v2622_v2, 0.0  ;;  %v3643_v36 = vmul.f32 %v3387_v16, %v2363_v15  ;;  %v3132_v45 = vmin.f32 %v2876_v32, 6.0 }
 0x37f   : > { %v5269_v6 = vpack.c.bf16 %v3898_v18, %v3897_v1  ;;  %v3645_v51 = vmul.f32 %v3389_v9, %v2365_v25 }
 0x380   : > { %4795 = vst [vmem:[%s6022_s13 + $0x3e0] sm:$0xff] %v5268_v31  ;;  %v3134_v27 = vmin.f32 %v2878_v4, 6.0  ;;  %v3388_v17 = vmul.f32 0.16666667, %v3132_v45  ;;  %v3899_v59 = vmul.f32 %v3643_v36, %v2363_v15 }
 0x381   : > { %4796 = vst [vmem:[%s6022_s13 + $0x3e8] sm:$0xff] %v5269_v6  ;;  %v3901_v3 = vmul.f32 %v3645_v51, %v2365_v25 }
 0x382   : > { %v3390_v12 = vmul.f32 0.16666667, %v3134_v27  ;;  %v3644_v53 = vmul.f32 %v3388_v17, %v2364_v10 }
 0x384   : > { %v3646_v35 = vmul.f32 %v3390_v12, %v2366_v47  ;;  %v3900_v34 = vmul.f32 %v3644_v53, %v2364_v10 }
 0x386   : > { %v3902_v11 = vmul.f32 %v3646_v35, %v2366_v47  ;;  %v5270_v62 = vpack.c.bf16 %v3900_v34, %v3899_v59 }
 0x388   : > { %v5271_v58 = vpack.c.bf16 %v3902_v11, %v3901_v3  ;;  %4797 = vst [vmem:[%s6022_s13 + $0x3f0] sm:$0xff] %v5270_v62 }
 0x38a   : > { %4798 = vst [vmem:[%s6022_s13 + $0x3f8] sm:$0xff] %v5271_v58 }
 0x38b PF: > { %s14_s15 = sadd.s32 1, %s5478_s15  }
 0x38c   : > { %p11_p4 = scmp.ge.s32.totalorder %s14_s15, 4  }
 0x38e   :  { %13 = sbr.rel (!%p11_p4) target bundleno = 1 (0x1), region = 69 }

</bundles_post_ra>
